<compile_context>
chip_gen: v7x
topology: tpu7x:2x2x1
jax: 0.10.0
libtpu: 0.0.40
codegen_flags: <defaults>
</compile_context>

<pallas_src>
import jax
import jax.numpy as jnp
import numpy as np
from jax.experimental import pallas as pl
from jax.experimental.pallas import tpu as pltpu

# Fixed geometry implied by the module (fc1 expects 2000 = 5*20*20 -> 28x28x1 input).
_IMG = 28
_P = _IMG * _IMG                       # 784 flat positions per image (28-wide grid)
_K = 5                                 # conv kernel size
_C1, _C2 = 3, 5                        # conv1 / conv2 output channels
_HO2 = _IMG - 2 * (_K - 1)             # 20: spatial size after two valid 5x5 convs
_SPAN2 = (_HO2 - 1) * _IMG + _HO2      # 552: flat span covering one 20x20 output grid
_MAXOFF = (_K - 1) * _IMG + (_K - 1)   # 116: largest (kh,kw) offset in flat coords
_NFC1, _NOUT = 100, 10
_OFFS = tuple(kh * _IMG + kw for kh in range(_K) for kw in range(_K))  # 25 tap offsets


# ------------------------------ fused kernel ---------------------------------

def _fused_kernel_factory(B):
    L2 = (B - 1) * _P + _SPAN2         # conv2 output length (flat 28-grid coords)
    L1 = L2 + _MAXOFF                  # conv1 output length needed by conv2
    assert L1 + _MAXOFF == B * _P      # conv1 taps exactly fit the input length

    def kernel(x_ref, w1_ref, b1_ref, w2_ref, b2_ref, w1z_ref, bf1_ref,
               wf2_ref, bf2_ref, o_ref):
        # x_ref: (1, B*784) f32 — images flattened on the lane axis (28-wide grid).
        x = x_ref[...]

        # conv1 (1->3) + ReLU as im2col matmul: taps on sublanes, positions on lanes.
        p1 = jnp.concatenate([x[:, s:s + L1] for s in _OFFS], axis=0)        # (25, L1)
        h1 = jnp.dot(w1_ref[...], p1, preferred_element_type=jnp.float32)    # (3, L1)
        h1 = jnp.maximum(h1 + b1_ref[...], 0.0)

        # conv2 (3->5) + ReLU; patch rows ordered (kh, kw, ci) to match w2 columns.
        p2 = jnp.concatenate([h1[:, s:s + L2] for s in _OFFS], axis=0)       # (75, L2)
        h2 = jnp.dot(w2_ref[...], p2, preferred_element_type=jnp.float32)    # (5, L2)
        h2 = jnp.maximum(h2 + b2_ref[...], 0.0)

        # fc1 + ReLU: one matmul of conv2's flat 28-grid output against the zero-padded
        # packed fc1 weight (2760, 100).  Row layout per batch is [c0|c1|...|c4] slabs of
        # 552 flat positions each; the j >= 20 wrap columns hit exact-zero weights, so no
        # flatten / relayout of h2 is required.
        rows = jnp.concatenate(
            [jnp.concatenate(
                [h2[c:c + 1, b * _P:b * _P + _SPAN2] for c in range(_C2)], axis=1)
             for b in range(B)], axis=0)                                      # (B, 2760)
        hfc1 = jnp.dot(rows, w1z_ref[...], preferred_element_type=jnp.float32)
        hfc1 = jnp.maximum(hfc1 + bf1_ref[...], 0.0)                          # (B, 100)

        # fc2 + log_softmax.
        z = jnp.dot(hfc1, wf2_ref[...], preferred_element_type=jnp.float32) + bf2_ref[...]
        m = jnp.max(z, axis=-1, keepdims=True)
        lse = m + jnp.log(jnp.sum(jnp.exp(z - m), axis=-1, keepdims=True))
        o_ref[...] = (z - lse).astype(o_ref.dtype)

    return kernel


# --------------------------- one-time weight repack ---------------------------

def prepare_params(params):
    """Repack PyTorch-layout weights into kernel-friendly layouts (done once)."""
    w_c1, b_c1, w_c2, b_c2, w_f1, b_f1, w_f2, b_f2 = params
    f32 = jnp.float32

    w1m = w_c1.reshape(_C1, _K * _K).astype(f32)                         # (3, 25)
    b1 = b_c1.reshape(_C1, 1).astype(f32)
    # Columns ordered (kh, kw, ci) to match the conv2 im2col patch row order.
    w2m = jnp.transpose(w_c2, (0, 2, 3, 1)).reshape(_C2, _K * _K * _C1).astype(f32)
    b2 = b_c2.reshape(_C2, 1).astype(f32)

    # fc1 weight -> packed (5*552, 100): index p = i*28 + j over the 28-wide grid, zeros
    # at the j >= 20 "wrap" columns, channels stacked c-major, so the kernel contracts
    # conv2's flat output directly with a single matmul.
    w1z = w_f1.reshape(_NFC1, _C2, _HO2, _HO2)
    w1z = jnp.pad(w1z, ((0, 0), (0, 0), (0, 0), (0, _IMG - _HO2)))
    w1z = jnp.transpose(w1z, (1, 2, 3, 0)).reshape(_C2, _HO2 * _IMG, _NFC1)
    w1z = w1z[:, :_SPAN2, :].reshape(_C2 * _SPAN2, _NFC1).astype(f32)     # (2760, 100)

    bf1 = b_f1.reshape(1, _NFC1).astype(f32)
    wf2t = w_f2.T.astype(f32)                                             # (100, 10)
    bf2 = b_f2.reshape(1, _NOUT).astype(f32)
    return (w1m, b1, w2m, b2, w1z, bf1, wf2t, bf2)


def forward(x, prepped):
    B = x.shape[0]
    xf = x.reshape(1, B * _P).astype(jnp.float32)   # free row-major flatten
    return pl.pallas_call(
        _fused_kernel_factory(B),
        out_shape=jax.ShapeDtypeStruct((B, _NOUT), jnp.float32),
        in_specs=[pl.BlockSpec(memory_space=pltpu.MemorySpace.VMEM)] * 9,
        out_specs=pl.BlockSpec(memory_space=pltpu.MemorySpace.VMEM),
    )(xf, *prepped)


# -------------------------------- reference -----------------------------------

def reference(x, params):
    """Pure-JAX reference (high precision) for correctness checking."""
    (w_c1, b_c1, w_c2, b_c2, w_f1, b_f1, w_f2, b_f2) = params

    def conv(x, w, b):
        y = jax.lax.conv_general_dilated(
            x, w, window_strides=(1, 1), padding='VALID',
            dimension_numbers=('NCHW', 'OIHW', 'NCHW'),
            precision=jax.lax.Precision.HIGHEST)
        return jax.nn.relu(y + b[None, :, None, None])

    h = conv(x, w_c1, b_c1)
    h = conv(h, w_c2, b_c2)
    h = h.reshape(h.shape[0], -1)
    h = jax.nn.relu(jnp.dot(h, w_f1.T, precision=jax.lax.Precision.HIGHEST) + b_f1)
    z = jnp.dot(h, w_f2.T, precision=jax.lax.Precision.HIGHEST) + b_f2
    return jax.nn.log_softmax(z, axis=1)


# ----------------------------------- main --------------------------------------

if __name__ == "__main__":
    key = jax.random.PRNGKey(0)
    kx, k1, k2, k3, k4, k5, k6, k7, k8 = jax.random.split(key, 9)

    B = 2
    x = jax.random.normal(kx, (B, 1, 28, 28), dtype=jnp.float32)

    def uniform_init(k, shape, fan_in):
        bound = 1.0 / np.sqrt(fan_in)
        return jax.random.uniform(k, shape, jnp.float32, -bound, bound)

    params = (
        uniform_init(k1, (3, 1, 5, 5), 1 * 5 * 5),   # conv1.weight
        uniform_init(k2, (3,), 1 * 5 * 5),           # conv1.bias
        uniform_init(k3, (5, 3, 5, 5), 3 * 5 * 5),   # conv2.weight
        uniform_init(k4, (5,), 3 * 5 * 5),           # conv2.bias
        uniform_init(k5, (100, 2000), 2000),         # fc1.weight
        uniform_init(k6, (100,), 2000),              # fc1.bias
        uniform_init(k7, (10, 100), 100),            # fc2.weight
        uniform_init(k8, (10,), 100),                # fc2.bias
    )

    prepped = jax.block_until_ready(prepare_params(params))   # one-time repack
    out = jax.jit(forward)(x, prepped)
    out = jax.block_until_ready(out)
    assert out.shape == (B, 10), out.shape

    ref = reference(x, params)
    # Tolerance covers default-precision MXU matmuls (bf16 multipliers, f32
    # accumulation) vs. the HIGHEST-precision reference.
    np.testing.assert_allclose(np.asarray(out), np.asarray(ref), rtol=5e-3, atol=5e-3)

    print("KERNEL_OK")
</pallas_src>

<mosaic_0001>
module attributes {stable_mosaic.version = 11 : i64} {
  func.func @kernel(%arg0: memref<1x1568xf32, #tpu.memory_space<vmem>>, %arg1: memref<3x25xf32, #tpu.memory_space<vmem>>, %arg2: memref<3x1xf32, #tpu.memory_space<vmem>>, %arg3: memref<5x75xf32, #tpu.memory_space<vmem>>, %arg4: memref<5x1xf32, #tpu.memory_space<vmem>>, %arg5: memref<2760x100xf32, #tpu.memory_space<vmem>>, %arg6: memref<1x100xf32, #tpu.memory_space<vmem>>, %arg7: memref<100x10xf32, #tpu.memory_space<vmem>>, %arg8: memref<1x10xf32, #tpu.memory_space<vmem>>, %arg9: memref<2x10xf32, #tpu.memory_space<vmem>>) attributes {dimension_semantics = [], scalar_prefetch = 0 : i64, scratch_operands = 0 : i64, tpu.core_type = #tpu.core_type<tc>} {
    %c0 = arith.constant 0 : index
    %c0_0 = arith.constant 0 : index
    %0 = vector.load %arg0[%c0, %c0_0] : memref<1x1568xf32, #tpu.memory_space<vmem>>, vector<1x1568xf32>
    %1 = vector.extract_strided_slice %0 {offsets = [0, 0], sizes = [1, 1452], strides = [1, 1]} : vector<1x1568xf32> to vector<1x1452xf32>
    %2 = vector.extract_strided_slice %0 {offsets = [0, 1], sizes = [1, 1452], strides = [1, 1]} : vector<1x1568xf32> to vector<1x1452xf32>
    %3 = vector.extract_strided_slice %0 {offsets = [0, 2], sizes = [1, 1452], strides = [1, 1]} : vector<1x1568xf32> to vector<1x1452xf32>
    %4 = vector.extract_strided_slice %0 {offsets = [0, 3], sizes = [1, 1452], strides = [1, 1]} : vector<1x1568xf32> to vector<1x1452xf32>
    %5 = vector.extract_strided_slice %0 {offsets = [0, 4], sizes = [1, 1452], strides = [1, 1]} : vector<1x1568xf32> to vector<1x1452xf32>
    %6 = vector.extract_strided_slice %0 {offsets = [0, 28], sizes = [1, 1452], strides = [1, 1]} : vector<1x1568xf32> to vector<1x1452xf32>
    %7 = vector.extract_strided_slice %0 {offsets = [0, 29], sizes = [1, 1452], strides = [1, 1]} : vector<1x1568xf32> to vector<1x1452xf32>
    %8 = vector.extract_strided_slice %0 {offsets = [0, 30], sizes = [1, 1452], strides = [1, 1]} : vector<1x1568xf32> to vector<1x1452xf32>
    %9 = vector.extract_strided_slice %0 {offsets = [0, 31], sizes = [1, 1452], strides = [1, 1]} : vector<1x1568xf32> to vector<1x1452xf32>
    %10 = vector.extract_strided_slice %0 {offsets = [0, 32], sizes = [1, 1452], strides = [1, 1]} : vector<1x1568xf32> to vector<1x1452xf32>
    %11 = vector.extract_strided_slice %0 {offsets = [0, 56], sizes = [1, 1452], strides = [1, 1]} : vector<1x1568xf32> to vector<1x1452xf32>
    %12 = vector.extract_strided_slice %0 {offsets = [0, 57], sizes = [1, 1452], strides = [1, 1]} : vector<1x1568xf32> to vector<1x1452xf32>
    %13 = vector.extract_strided_slice %0 {offsets = [0, 58], sizes = [1, 1452], strides = [1, 1]} : vector<1x1568xf32> to vector<1x1452xf32>
    %14 = vector.extract_strided_slice %0 {offsets = [0, 59], sizes = [1, 1452], strides = [1, 1]} : vector<1x1568xf32> to vector<1x1452xf32>
    %15 = vector.extract_strided_slice %0 {offsets = [0, 60], sizes = [1, 1452], strides = [1, 1]} : vector<1x1568xf32> to vector<1x1452xf32>
    %16 = vector.extract_strided_slice %0 {offsets = [0, 84], sizes = [1, 1452], strides = [1, 1]} : vector<1x1568xf32> to vector<1x1452xf32>
    %17 = vector.extract_strided_slice %0 {offsets = [0, 85], sizes = [1, 1452], strides = [1, 1]} : vector<1x1568xf32> to vector<1x1452xf32>
    %18 = vector.extract_strided_slice %0 {offsets = [0, 86], sizes = [1, 1452], strides = [1, 1]} : vector<1x1568xf32> to vector<1x1452xf32>
    %19 = vector.extract_strided_slice %0 {offsets = [0, 87], sizes = [1, 1452], strides = [1, 1]} : vector<1x1568xf32> to vector<1x1452xf32>
    %20 = vector.extract_strided_slice %0 {offsets = [0, 88], sizes = [1, 1452], strides = [1, 1]} : vector<1x1568xf32> to vector<1x1452xf32>
    %21 = vector.extract_strided_slice %0 {offsets = [0, 112], sizes = [1, 1452], strides = [1, 1]} : vector<1x1568xf32> to vector<1x1452xf32>
    %22 = vector.extract_strided_slice %0 {offsets = [0, 113], sizes = [1, 1452], strides = [1, 1]} : vector<1x1568xf32> to vector<1x1452xf32>
    %23 = vector.extract_strided_slice %0 {offsets = [0, 114], sizes = [1, 1452], strides = [1, 1]} : vector<1x1568xf32> to vector<1x1452xf32>
    %24 = vector.extract_strided_slice %0 {offsets = [0, 115], sizes = [1, 1452], strides = [1, 1]} : vector<1x1568xf32> to vector<1x1452xf32>
    %25 = vector.extract_strided_slice %0 {offsets = [0, 116], sizes = [1, 1452], strides = [1, 1]} : vector<1x1568xf32> to vector<1x1452xf32>
    %26 = tpu.concatenate %1, %2, %3, %4, %5, %6, %7, %8, %9, %10, %11, %12, %13, %14, %15, %16 in 0 : vector<1x1452xf32>, vector<1x1452xf32>, vector<1x1452xf32>, vector<1x1452xf32>, vector<1x1452xf32>, vector<1x1452xf32>, vector<1x1452xf32>, vector<1x1452xf32>, vector<1x1452xf32>, vector<1x1452xf32>, vector<1x1452xf32>, vector<1x1452xf32>, vector<1x1452xf32>, vector<1x1452xf32>, vector<1x1452xf32>, vector<1x1452xf32> -> vector<16x1452xf32>
    %27 = tpu.concatenate %17, %18, %19, %20, %21, %22, %23, %24, %25 in 0 : vector<1x1452xf32>, vector<1x1452xf32>, vector<1x1452xf32>, vector<1x1452xf32>, vector<1x1452xf32>, vector<1x1452xf32>, vector<1x1452xf32>, vector<1x1452xf32>, vector<1x1452xf32> -> vector<9x1452xf32>
    %28 = tpu.concatenate %26, %27 in 0 : vector<16x1452xf32>, vector<9x1452xf32> -> vector<25x1452xf32>
    %c0_1 = arith.constant 0 : index
    %c0_2 = arith.constant 0 : index
    %29 = vector.load %arg1[%c0_1, %c0_2] : memref<3x25xf32, #tpu.memory_space<vmem>>, vector<3x25xf32>
    %cst = arith.constant dense<0.000000e+00> : vector<3x1452xf32>
    %30 = tpu.matmul %29, %28, %cst {dimension_numbers = #tpu.dot_dimension_numbers<[1], [0], [0], [1], [0, 0, 1, 1], [], []>} : vector<3x25xf32>, vector<25x1452xf32>, vector<3x1452xf32> -> vector<3x1452xf32>
    %c0_3 = arith.constant 0 : index
    %c0_4 = arith.constant 0 : index
    %31 = vector.load %arg2[%c0_3, %c0_4] : memref<3x1xf32, #tpu.memory_space<vmem>>, vector<3x1xf32>
    %32 = vector.broadcast %31 : vector<3x1xf32> to vector<3x1452xf32>
    %33 = arith.addf %30, %32 : vector<3x1452xf32>
    %cst_5 = arith.constant 0.000000e+00 : f32
    %34 = vector.broadcast %cst_5 : f32 to vector<3x1452xf32>
    %35 = arith.maximumf %33, %34 : vector<3x1452xf32>
    %36 = vector.extract_strided_slice %35 {offsets = [0, 0], sizes = [3, 1336], strides = [1, 1]} : vector<3x1452xf32> to vector<3x1336xf32>
    %37 = vector.extract_strided_slice %35 {offsets = [0, 1], sizes = [3, 1336], strides = [1, 1]} : vector<3x1452xf32> to vector<3x1336xf32>
    %38 = vector.extract_strided_slice %35 {offsets = [0, 2], sizes = [3, 1336], strides = [1, 1]} : vector<3x1452xf32> to vector<3x1336xf32>
    %39 = vector.extract_strided_slice %35 {offsets = [0, 3], sizes = [3, 1336], strides = [1, 1]} : vector<3x1452xf32> to vector<3x1336xf32>
    %40 = vector.extract_strided_slice %35 {offsets = [0, 4], sizes = [3, 1336], strides = [1, 1]} : vector<3x1452xf32> to vector<3x1336xf32>
    %41 = vector.extract_strided_slice %35 {offsets = [0, 28], sizes = [3, 1336], strides = [1, 1]} : vector<3x1452xf32> to vector<3x1336xf32>
    %42 = vector.extract_strided_slice %35 {offsets = [0, 29], sizes = [3, 1336], strides = [1, 1]} : vector<3x1452xf32> to vector<3x1336xf32>
    %43 = vector.extract_strided_slice %35 {offsets = [0, 30], sizes = [3, 1336], strides = [1, 1]} : vector<3x1452xf32> to vector<3x1336xf32>
    %44 = vector.extract_strided_slice %35 {offsets = [0, 31], sizes = [3, 1336], strides = [1, 1]} : vector<3x1452xf32> to vector<3x1336xf32>
    %45 = vector.extract_strided_slice %35 {offsets = [0, 32], sizes = [3, 1336], strides = [1, 1]} : vector<3x1452xf32> to vector<3x1336xf32>
    %46 = vector.extract_strided_slice %35 {offsets = [0, 56], sizes = [3, 1336], strides = [1, 1]} : vector<3x1452xf32> to vector<3x1336xf32>
    %47 = vector.extract_strided_slice %35 {offsets = [0, 57], sizes = [3, 1336], strides = [1, 1]} : vector<3x1452xf32> to vector<3x1336xf32>
    %48 = vector.extract_strided_slice %35 {offsets = [0, 58], sizes = [3, 1336], strides = [1, 1]} : vector<3x1452xf32> to vector<3x1336xf32>
    %49 = vector.extract_strided_slice %35 {offsets = [0, 59], sizes = [3, 1336], strides = [1, 1]} : vector<3x1452xf32> to vector<3x1336xf32>
    %50 = vector.extract_strided_slice %35 {offsets = [0, 60], sizes = [3, 1336], strides = [1, 1]} : vector<3x1452xf32> to vector<3x1336xf32>
    %51 = vector.extract_strided_slice %35 {offsets = [0, 84], sizes = [3, 1336], strides = [1, 1]} : vector<3x1452xf32> to vector<3x1336xf32>
    %52 = vector.extract_strided_slice %35 {offsets = [0, 85], sizes = [3, 1336], strides = [1, 1]} : vector<3x1452xf32> to vector<3x1336xf32>
    %53 = vector.extract_strided_slice %35 {offsets = [0, 86], sizes = [3, 1336], strides = [1, 1]} : vector<3x1452xf32> to vector<3x1336xf32>
    %54 = vector.extract_strided_slice %35 {offsets = [0, 87], sizes = [3, 1336], strides = [1, 1]} : vector<3x1452xf32> to vector<3x1336xf32>
    %55 = vector.extract_strided_slice %35 {offsets = [0, 88], sizes = [3, 1336], strides = [1, 1]} : vector<3x1452xf32> to vector<3x1336xf32>
    %56 = vector.extract_strided_slice %35 {offsets = [0, 112], sizes = [3, 1336], strides = [1, 1]} : vector<3x1452xf32> to vector<3x1336xf32>
    %57 = vector.extract_strided_slice %35 {offsets = [0, 113], sizes = [3, 1336], strides = [1, 1]} : vector<3x1452xf32> to vector<3x1336xf32>
    %58 = vector.extract_strided_slice %35 {offsets = [0, 114], sizes = [3, 1336], strides = [1, 1]} : vector<3x1452xf32> to vector<3x1336xf32>
    %59 = vector.extract_strided_slice %35 {offsets = [0, 115], sizes = [3, 1336], strides = [1, 1]} : vector<3x1452xf32> to vector<3x1336xf32>
    %60 = vector.extract_strided_slice %35 {offsets = [0, 116], sizes = [3, 1336], strides = [1, 1]} : vector<3x1452xf32> to vector<3x1336xf32>
    %61 = tpu.concatenate %36, %37, %38, %39, %40, %41, %42, %43, %44, %45, %46, %47, %48, %49, %50, %51 in 0 : vector<3x1336xf32>, vector<3x1336xf32>, vector<3x1336xf32>, vector<3x1336xf32>, vector<3x1336xf32>, vector<3x1336xf32>, vector<3x1336xf32>, vector<3x1336xf32>, vector<3x1336xf32>, vector<3x1336xf32>, vector<3x1336xf32>, vector<3x1336xf32>, vector<3x1336xf32>, vector<3x1336xf32>, vector<3x1336xf32>, vector<3x1336xf32> -> vector<48x1336xf32>
    %62 = tpu.concatenate %52, %53, %54, %55, %56, %57, %58, %59, %60 in 0 : vector<3x1336xf32>, vector<3x1336xf32>, vector<3x1336xf32>, vector<3x1336xf32>, vector<3x1336xf32>, vector<3x1336xf32>, vector<3x1336xf32>, vector<3x1336xf32>, vector<3x1336xf32> -> vector<27x1336xf32>
    %63 = tpu.concatenate %61, %62 in 0 : vector<48x1336xf32>, vector<27x1336xf32> -> vector<75x1336xf32>
    %c0_6 = arith.constant 0 : index
    %c0_7 = arith.constant 0 : index
    %64 = vector.load %arg3[%c0_6, %c0_7] : memref<5x75xf32, #tpu.memory_space<vmem>>, vector<5x75xf32>
    %cst_8 = arith.constant dense<0.000000e+00> : vector<5x1336xf32>
    %65 = tpu.matmul %64, %63, %cst_8 {dimension_numbers = #tpu.dot_dimension_numbers<[1], [0], [0], [1], [0, 0, 1, 1], [], []>} : vector<5x75xf32>, vector<75x1336xf32>, vector<5x1336xf32> -> vector<5x1336xf32>
    %c0_9 = arith.constant 0 : index
    %c0_10 = arith.constant 0 : index
    %66 = vector.load %arg4[%c0_9, %c0_10] : memref<5x1xf32, #tpu.memory_space<vmem>>, vector<5x1xf32>
    %67 = vector.broadcast %66 : vector<5x1xf32> to vector<5x1336xf32>
    %68 = arith.addf %65, %67 : vector<5x1336xf32>
    %cst_11 = arith.constant 0.000000e+00 : f32
    %69 = vector.broadcast %cst_11 : f32 to vector<5x1336xf32>
    %70 = arith.maximumf %68, %69 : vector<5x1336xf32>
    %71 = vector.extract_strided_slice %70 {offsets = [0, 0], sizes = [1, 552], strides = [1, 1]} : vector<5x1336xf32> to vector<1x552xf32>
    %72 = vector.extract_strided_slice %70 {offsets = [1, 0], sizes = [1, 552], strides = [1, 1]} : vector<5x1336xf32> to vector<1x552xf32>
    %73 = vector.extract_strided_slice %70 {offsets = [2, 0], sizes = [1, 552], strides = [1, 1]} : vector<5x1336xf32> to vector<1x552xf32>
    %74 = vector.extract_strided_slice %70 {offsets = [3, 0], sizes = [1, 552], strides = [1, 1]} : vector<5x1336xf32> to vector<1x552xf32>
    %75 = vector.extract_strided_slice %70 {offsets = [4, 0], sizes = [1, 552], strides = [1, 1]} : vector<5x1336xf32> to vector<1x552xf32>
    %76 = tpu.concatenate %71, %72, %73, %74, %75 in 1 : vector<1x552xf32>, vector<1x552xf32>, vector<1x552xf32>, vector<1x552xf32>, vector<1x552xf32> -> vector<1x2760xf32>
    %77 = vector.extract_strided_slice %70 {offsets = [0, 784], sizes = [1, 552], strides = [1, 1]} : vector<5x1336xf32> to vector<1x552xf32>
    %78 = vector.extract_strided_slice %70 {offsets = [1, 784], sizes = [1, 552], strides = [1, 1]} : vector<5x1336xf32> to vector<1x552xf32>
    %79 = vector.extract_strided_slice %70 {offsets = [2, 784], sizes = [1, 552], strides = [1, 1]} : vector<5x1336xf32> to vector<1x552xf32>
    %80 = vector.extract_strided_slice %70 {offsets = [3, 784], sizes = [1, 552], strides = [1, 1]} : vector<5x1336xf32> to vector<1x552xf32>
    %81 = vector.extract_strided_slice %70 {offsets = [4, 784], sizes = [1, 552], strides = [1, 1]} : vector<5x1336xf32> to vector<1x552xf32>
    %82 = tpu.concatenate %77, %78, %79, %80, %81 in 1 : vector<1x552xf32>, vector<1x552xf32>, vector<1x552xf32>, vector<1x552xf32>, vector<1x552xf32> -> vector<1x2760xf32>
    %83 = tpu.concatenate %76, %82 in 0 : vector<1x2760xf32>, vector<1x2760xf32> -> vector<2x2760xf32>
    %c0_12 = arith.constant 0 : index
    %c0_13 = arith.constant 0 : index
    %84 = vector.load %arg5[%c0_12, %c0_13] : memref<2760x100xf32, #tpu.memory_space<vmem>>, vector<2760x100xf32>
    %cst_14 = arith.constant dense<0.000000e+00> : vector<2x100xf32>
    %85 = tpu.matmul %83, %84, %cst_14 {dimension_numbers = #tpu.dot_dimension_numbers<[1], [0], [0], [1], [0, 0, 1, 1], [], []>} : vector<2x2760xf32>, vector<2760x100xf32>, vector<2x100xf32> -> vector<2x100xf32>
    %c0_15 = arith.constant 0 : index
    %c0_16 = arith.constant 0 : index
    %86 = vector.load %arg6[%c0_15, %c0_16] : memref<1x100xf32, #tpu.memory_space<vmem>>, vector<1x100xf32>
    %87 = vector.broadcast %86 : vector<1x100xf32> to vector<2x100xf32>
    %88 = arith.addf %85, %87 : vector<2x100xf32>
    %cst_17 = arith.constant 0.000000e+00 : f32
    %89 = vector.broadcast %cst_17 : f32 to vector<2x100xf32>
    %90 = arith.maximumf %88, %89 : vector<2x100xf32>
    %c0_18 = arith.constant 0 : index
    %c0_19 = arith.constant 0 : index
    %91 = vector.load %arg7[%c0_18, %c0_19] : memref<100x10xf32, #tpu.memory_space<vmem>>, vector<100x10xf32>
    %cst_20 = arith.constant dense<0.000000e+00> : vector<2x10xf32>
    %92 = tpu.matmul %90, %91, %cst_20 {dimension_numbers = #tpu.dot_dimension_numbers<[1], [0], [0], [1], [0, 0, 1, 1], [], []>} : vector<2x100xf32>, vector<100x10xf32>, vector<2x10xf32> -> vector<2x10xf32>
    %c0_21 = arith.constant 0 : index
    %c0_22 = arith.constant 0 : index
    %93 = vector.load %arg8[%c0_21, %c0_22] : memref<1x10xf32, #tpu.memory_space<vmem>>, vector<1x10xf32>
    %94 = vector.broadcast %93 : vector<1x10xf32> to vector<2x10xf32>
    %95 = arith.addf %92, %94 : vector<2x10xf32>
    %cst_23 = arith.constant dense<0xFF800000> : vector<2xf32>
    %96 = vector.multi_reduction <maximumf>, %95, %cst_23 [1] : vector<2x10xf32> to vector<2xf32>
    %97 = vector.shape_cast %96 : vector<2xf32> to vector<2x1xf32>
    %98 = vector.broadcast %97 : vector<2x1xf32> to vector<2x10xf32>
    %99 = arith.subf %95, %98 : vector<2x10xf32>
    %100 = math.exp %99 : vector<2x10xf32>
    %cst_24 = arith.constant dense<0.000000e+00> : vector<2xf32>
    %101 = vector.multi_reduction <add>, %100, %cst_24 [1] : vector<2x10xf32> to vector<2xf32>
    %102 = vector.shape_cast %101 : vector<2xf32> to vector<2x1xf32>
    %103 = math.log %102 : vector<2x1xf32>
    %104 = arith.addf %97, %103 : vector<2x1xf32>
    %105 = vector.broadcast %104 : vector<2x1xf32> to vector<2x10xf32>
    %106 = arith.subf %95, %105 : vector<2x10xf32>
    %c0_25 = arith.constant 0 : index
    %c0_26 = arith.constant 0 : index
    %107 = vector.load %arg9[%c0_25, %c0_26] : memref<2x10xf32, #tpu.memory_space<vmem>>, vector<2x10xf32>
    tpu.vector_store %arg9[%c0_25, %c0_26], %106 {strides = array<i32>} : memref<2x10xf32, #tpu.memory_space<vmem>>, vector<2x10xf32>,
    return
  }
}

</mosaic_0001>

<bundles_post_ra>
// kernel: forward.1
= control target key start
LH: loop header
LB: loop body
LE: loop exit
PB: predicated region body
PF: predicated region fallthrough
CT: control target
= control target key end

     0   :  { %v37_v0 = vlaneseq  ;;  %s12344_s0 = inlined_call_operand.vmem [shape: f32[1,1568], index: 0, kind: input, shape index: {}]   ;;  %s12345_s1 = inlined_call_operand.vmem [shape: f32[3,25], index: 1, kind: input, shape index: {}]   ;;  %s12346_s2 = inlined_call_operand.vmem [shape: f32[3,1], index: 2, kind: input, shape index: {}]   ;;  %s12347_s3 = inlined_call_operand.vmem [shape: f32[5,75], index: 3, kind: input, shape index: {}]   ;;  %s12348_s4 = inlined_call_operand.vmem [shape: f32[5,1], index: 4, kind: input, shape index: {}]   ;;  %s12349_s5 = inlined_call_operand.vmem [shape: f32[2760,100], index: 5, kind: input, shape index: {}]   ;;  %s12350_s6 = inlined_call_operand.vmem [shape: f32[1,100], index: 6, kind: input, shape index: {}]   ;;  %s12351_s7 = inlined_call_operand.vmem [shape: f32[100,10], index: 7, kind: input, shape index: {}]   ;;  %s12352_s8 = inlined_call_operand.vmem [shape: f32[1,10], index: 8, kind: input, shape index: {}]   ;;  %s12353_s9 = inlined_call_operand.hbm [shape: f32[2,10], index: 9, kind: output, shape index: {}]  }
   0x2   :  { %v7297_v1 = vshrl.u32 %v37_v0, 7 }
   0x3   :  { %14 = vsyncpa [#allocation3], 0  ;;  %v33_v2 = vld [vmem:[%s12344_s0] sm:$0xff]  ;;  %s7215_s11 = smov 126   ;;  %s7216_s12 = smov 127   ;;  %vm12401_vm0 = vcmask 1039360  }
   0x4   :  { %v43_v3 = vsub.s32 1, %v7297_v1  ;;  %v47_v4 = vsub.s32 2, %v7297_v1  ;;  %v39_v5 = vsub.s32 0, %v7297_v1  ;;  %v51_v6 = vsub.s32 3, %v7297_v1  ;;  %s7217_s13 = smov 125   ;;  %s7218_s14 = smov 101  }
   0x5   :  { %s7219_s15 = smov 100   ;;  %v55_v13 = vsub.s32 4, %v7297_v1  ;;  %s7220_s16 = smov 99   ;;  %v59_v14 = vsub.s32 5, %v7297_v1  ;;  %v34_v18 = vld [vmem:[%s12344_s0 + $0x8] sm:$0x1f] }
   0x6   :  { %v7306_v7 = vrot.slane %v33_v2, %v43_v3  ;;  %v7310_v8 = vrot.slane %v33_v2, %v47_v4  ;;  %v7312_v9 = vrot.slane %v33_v2, %v39_v5  ;;  %v7316_v10 = vrot.slane %v33_v2, %v51_v6  ;;  %s7221_s17 = smov 98   ;;  %s7222_s18 = smov 97  }
   0x7   :  { %v7344_v15 = vrot.slane %v33_v2, %v55_v13  ;;  %v7349_v16 = vrot.slane %v33_v2, %v59_v14  ;;  %v63_v19 = vsub.s32 6, %v7297_v1  ;;  %v67_v20 = vsub.s32 7, %v7297_v1  ;;  %s7223_s0 = smov 96   ;;  %s7224_s21 = smov 72  }
   0x8   :  { %v7320_v11 = vpack.i.bf16 %v7310_v8, %v7306_v7  ;;  %v6020_v12 = vpack.i.bf16 %v7312_v9, %v7316_v10  ;;  %v7371_v21 = vrot.slane %v34_v18, %v39_v5  ;;  %v7377_v22 = vrot.slane %v34_v18, %v43_v3  ;;  %s7225_s22 = smov 124   ;;  %s7226_s23 = smov 71  }
   0x9   :  { %v7356_v17 = vpack.i.bf16 %v7349_v16, %v7344_v15  ;;  %v7379_v23 = vrot.slane %v33_v2, %v63_v19  ;;  %v7381_v24 = vrot.slane %v33_v2, %v67_v20  ;;  %v7421_v27 = vrot.slane %v34_v18, %v51_v6  ;;  %s7227_s24 = smov 70   ;;  %s7228_s25 = smov 69  }
   0xa   :  { %6016 = vrot.lane.b32.xlu1 %v7320_v11, %s7215_s11  ;;  %6006 = vrot.lane.b32.xlu0 %v7320_v11, %s7216_s12  ;;  %v7389_v25 = vpack.i.bf16 %v7377_v22, %v7371_v21  ;;  %v7429_v28 = vrot.slane %v34_v18, %v47_v4  ;;  %v7443_v30 = vrot.slane %v34_v18, %v55_v13  ;;  %vm12399_vm1 = vcmask 1031168   ;;  %s7229_s26 = smov 68   ;;  %s7230_s27 = smov 44  }
   0xb   :  { %v7393_v26 = vpack.i.bf16 %v7381_v24, %v7379_v23  ;;  %v7475_v31 = vpack.i.bf16 %v7316_v10, %v7312_v9  ;;  %vm817_vm2 = vcmask 1040384   ;;  %vm12389_vm3 = vcmask 1022976   ;;  %s7231_s28 = smov 43  }
   0xc   :  { %v7437_v29 = vpack.i.bf16 %v7421_v27, %v7429_v28  ;;  %vm830_vm4 = vcmask 1041408   ;;  %vm843_vm5 = vcmask 1042432   ;;  %vm12381_vm6 = vcmask 826368  }
   0xd   :  { %vm12387_vm7 = vcmask 818176   ;;  %vm12383_vm8 = vcmask 809984   ;;  %vm856_vm9 = vcmask 1043456   ;;  %vm12382_vm10 = vcmask 801792  }
   0xe   :  { %6021 = vrot.lane.b32.xlu1 %v6020_v12, %s7215_s11  ;;  %6011 = vrot.lane.b32.xlu0 %v6020_v12, %s7216_s12  ;;  %vm869_vm11 = vcmask 1044480   ;;  %vm882_vm12 = vcmask 1045504   ;;  %vm12406_vm13 = vcmask 1046528   ;;  %vm12384_vm14 = vcmask 793600  }
   0xf   :  { %vm12402_vm15 = vcmask 785408  }
  0x12   :  { %6031 = vrot.lane.b32.xlu1 %v6020_v12, %s7217_s13  ;;  %6026 = vrot.lane.b32.xlu0 %v7320_v11, %s7217_s13 }
  0x16   :  { %6041 = vrot.lane.b32.xlu1 %v6020_v12, %s7218_s14  ;;  %6036 = vrot.lane.b32.xlu0 %v7320_v11, %s7218_s14 }
  0x1a   :  { %6051 = vrot.lane.b32.xlu1 %v6020_v12, %s7219_s15  ;;  %6046 = vrot.lane.b32.xlu0 %v7320_v11, %s7219_s15 }
  0x1e   :  { %6061 = vrot.lane.b32.xlu1 %v6020_v12, %s7220_s16  ;;  %6056 = vrot.lane.b32.xlu0 %v7320_v11, %s7220_s16 }
  0x22   :  { %6071 = vrot.lane.b32.xlu1 %v6020_v12, %s7221_s17  ;;  %6066 = vrot.lane.b32.xlu0 %v7320_v11, %s7221_s17 }
  0x26   :  { %6081 = vrot.lane.b32.xlu1 %v6020_v12, %s7222_s18  ;;  %6076 = vrot.lane.b32.xlu0 %v7320_v11, %s7222_s18 }
  0x2a   :  { %6091 = vrot.lane.b32.xlu1 %v7356_v17, %s7215_s11  ;;  %6086 = vrot.lane.b32.xlu0 %v7356_v17, %s7216_s12 }
  0x2e   :  { %6101 = vrot.lane.b32.xlu1 %v7356_v17, %s7218_s14  ;;  %6096 = vrot.lane.b32.xlu0 %v7356_v17, %s7217_s13 }
  0x32   :  { %6111 = vrot.lane.b32.xlu1 %v7356_v17, %s7220_s16  ;;  %6106 = vrot.lane.b32.xlu0 %v7356_v17, %s7219_s15 }
  0x36   :  { %6121 = vrot.lane.b32.xlu1 %v7356_v17, %s7222_s18  ;;  %6116 = vrot.lane.b32.xlu0 %v7356_v17, %s7221_s17 }
  0x3a   :  { %6131 = vrot.lane.b32.xlu1 %v7389_v25, %s7216_s12  ;;  %6126 = vrot.lane.b32.xlu0 %v7393_v26, %s7216_s12 }
  0x3e   :  { %6141 = vrot.lane.b32.xlu1 %v7389_v25, %s7215_s11  ;;  %6136 = vrot.lane.b32.xlu0 %v7393_v26, %s7215_s11 }
  0x42   :  { %6151 = vrot.lane.b32.xlu1 %v7389_v25, %s7217_s13  ;;  %6146 = vrot.lane.b32.xlu0 %v7393_v26, %s7217_s13 }
  0x46   :  { %6161 = vrot.lane.b32.xlu1 %v7393_v26, %s7219_s15  ;;  %6156 = vrot.lane.b32.xlu0 %v7393_v26, %s7218_s14 }
  0x4a   :  { %6171 = vrot.lane.b32.xlu1 %v7389_v25, %s7219_s15  ;;  %6166 = vrot.lane.b32.xlu0 %v7389_v25, %s7218_s14 }
  0x4e   :  { %6181 = vrot.lane.b32.xlu1 %v7389_v25, %s7220_s16  ;;  %6176 = vrot.lane.b32.xlu0 %v7393_v26, %s7220_s16 }
  0x52   :  { %6191 = vrot.lane.b32.xlu1 %v7389_v25, %s7221_s17  ;;  %6186 = vrot.lane.b32.xlu0 %v7393_v26, %s7221_s17 }
  0x56   :  { %6201 = vrot.lane.b32.xlu1 %v7389_v25, %s7222_s18  ;;  %6196 = vrot.lane.b32.xlu0 %v7393_v26, %s7222_s18 }
  0x5a   :  { %6211 = vrot.lane.b32.xlu1 %v7437_v29, %s7215_s11  ;;  %6206 = vrot.lane.b32.xlu0 %v7437_v29, %s7216_s12 }
  0x5e   :  { %6216 = vrot.lane.b32.xlu1 %v7437_v29, %s7217_s13  ;;  %997 = vrot.lane.b32.xlu0 %v7443_v30, %s7216_s12 }
  0x62   :  { %1007 = vrot.lane.b32.xlu1 %v7443_v30, %s7217_s13  ;;  %1002 = vrot.lane.b32.xlu0 %v7443_v30, %s7215_s11 }
  0x66   :  { %6226 = vrot.lane.b32.xlu1 %v7437_v29, %s7219_s15  ;;  %6221 = vrot.lane.b32.xlu0 %v7437_v29, %s7218_s14 }
  0x6a   :  { %6231 = vrot.lane.b32.xlu1 %v7437_v29, %s7220_s16  ;;  %1036 = vrot.lane.b32.xlu0 %v7443_v30, %s7218_s14 }
  0x6e   :  { %6236 = vrot.lane.b32.xlu1 %v7437_v29, %s7221_s17  ;;  %1064 = vrot.lane.b32.xlu0 %v7443_v30, %s7219_s15 }
  0x72   :  { %6241 = vrot.lane.b32.xlu1 %v7437_v29, %s7222_s18  ;;  %1069 = vrot.lane.b32.xlu0 %v7443_v30, %s7220_s16 }
  0x76   :  { %6246 = vrot.lane.b32.xlu1 %v7320_v11, %s7223_s0  ;;  %1074 = vrot.lane.b32.xlu0 %v7443_v30, %s7221_s17 }
  0x7a   :  { %6251 = vrot.lane.b32.xlu1 %v7475_v31, %s7223_s0  ;;  %1079 = vrot.lane.b32.xlu0 %v7443_v30, %s7222_s18 }
  0x7c   :  { %v6017_v32 = vpop.permute.xlu1 %6016  ;;  %v6007_v33 = vpop.permute.xlu0 %6006 }
  0x7d   :  { %v6009_v38 = vunpack.i.h.bf16 %v6007_v33  ;;  %v6008_v39 = vunpack.i.l.bf16 %v6007_v33  ;;  %v6019_v41 = vunpack.i.h.bf16 %v6017_v32  ;;  %v6018_v42 = vunpack.i.l.bf16 %v6017_v32 }
  0x7e   :  { %6261 = vrot.lane.b32.xlu1 %v7475_v31, %s7224_s21  ;;  %6256 = vrot.lane.b32.xlu0 %v7320_v11, %s7224_s21 }
  0x7f   :  { %v123_v45 = vsel %vm12401_vm0, %v6008_v39, %v6009_v38  ;;  %v171_v50 = vsel %vm12399_vm1, %v6018_v42, %v6019_v41 }
  0x80   :  { %v7485_v34 = vpop.permute.xlu1 %6021  ;;  %v7487_v35 = vpop.permute.xlu0 %6011  ;;  %v819_v51 = vsel %vm817_vm2, %v7306_v7, %v123_v45 }
  0x81   :  { %v6014_v40 = vunpack.i.h.bf16 %v7487_v35  ;;  %v6013_v46 = vunpack.i.l.bf16 %v7487_v35  ;;  %v6024_v47 = vunpack.i.h.bf16 %v7485_v34  ;;  %v6023_v48 = vunpack.i.l.bf16 %v7485_v34 }
  0x82   :  { %6271 = vrot.lane.b32.xlu1 %v7320_v11, %s7225_s22  ;;  %6266 = vrot.lane.b32.xlu0 %v7320_v11, %s7226_s23  ;;  %v832_v62 = vsel %vm830_vm4, %v819_v51, %v171_v50 }
  0x83   :  { %v122_v49 = vsel %vm12401_vm0, %v6014_v40, %v6008_v39  ;;  %v124_v54 = vsel %vm12401_vm0, %v6009_v38, %v6013_v46  ;;  %v170_v57 = vsel %vm12399_vm1, %v6024_v47, %v6018_v42  ;;  %v172_v59 = vsel %vm12399_vm1, %v6019_v41, %v6023_v48 }
  0x84   :  { %v7493_v36 = vpop.permute.xlu1 %6031  ;;  %v7495_v37 = vpop.permute.xlu0 %6026  ;;  %v818_v58 = vsel %vm817_vm2, %v7312_v9, %v122_v49  ;;  %v820_v63 = vsel %vm817_vm2, %v7310_v8, %v124_v54 }
  0x85   :  { %v6029_v55 = vunpack.i.h.bf16 %v7495_v37  ;;  %v6028_v56 = vunpack.i.l.bf16 %v7495_v37  ;;  %v6034_v60 = vunpack.i.h.bf16 %v7493_v36  ;;  %v6033_v61 = vunpack.i.l.bf16 %v7493_v36 }
  0x86   :  { %6281 = vrot.lane.b32.xlu1 %v7320_v11, %s7227_s24  ;;  %6276 = vrot.lane.b32.xlu0 %v7475_v31, %s7226_s23  ;;  %v831_v6 = vsel %vm830_vm4, %v818_v58, %v170_v57  ;;  %v833_v20 = vsel %vm830_vm4, %v820_v63, %v172_v59 }
  0x87   :  { %v219_v5 = vsel %vm12389_vm3, %v6028_v56, %v6029_v55  ;;  %v220_v18 = vsel %vm12389_vm3, %v6029_v55, %v6033_v61  ;;  %v218_v19 = vsel %vm12389_vm3, %v6034_v60, %v6028_v56 }
  0x88   :  { %v7502_v43 = vpop.permute.xlu1 %6041  ;;  %v7504_v44 = vpop.permute.xlu0 %6036  ;;  %v7564_v33 = vsel %vm843_vm5, %v832_v62, %v219_v5  ;;  %v7592_v54 = vsel %vm843_vm5, %v833_v20, %v220_v18  ;;  %v7605_v58 = vsel %vm843_vm5, %v831_v6, %v218_v19 }
  0x89   :  { %v6043_v0 = vunpack.i.l.bf16 %v7502_v43  ;;  %v6039_v1 = vunpack.i.h.bf16 %v7504_v44  ;;  %v6038_v2 = vunpack.i.l.bf16 %v7504_v44  ;;  %v6044_v12 = vunpack.i.h.bf16 %v7502_v43 }
  0x8a   :  { %6291 = vrot.lane.b32.xlu1 %v7475_v31, %s7227_s24  ;;  %6286 = vrot.lane.b32.xlu0 %v7475_v31, %s7225_s22 }
  0x8b   :  { %v1041_v37 = vsel %vm12381_vm6, %v6039_v1, %v6043_v0  ;;  %v1040_v38 = vsel %vm12381_vm6, %v6038_v2, %v6039_v1  ;;  %v1039_v49 = vsel %vm12381_vm6, %v6044_v12, %v6038_v2 }
  0x8c   :  { %v7518_v52 = vpop.permute.xlu1 %6051  ;;  %v7520_v53 = vpop.permute.xlu0 %6046  ;;  %v1089_v55 = vsel %vm856_vm9, %v7564_v33, %v1040_v38  ;;  %v1088_v63 = vsel %vm856_vm9, %v7605_v58, %v1039_v49 }
  0x8d   :  { %v6049_v7 = vunpack.i.h.bf16 %v7520_v53  ;;  %v6048_v9 = vunpack.i.l.bf16 %v7520_v53  ;;  %v6053_v8 = vunpack.i.l.bf16 %v7518_v52  ;;  %v6054_v39 = vunpack.i.h.bf16 %v7518_v52 }
  0x8e   :  { %6301 = vrot.lane.b32.xlu1 %v7475_v31, %s7228_s25  ;;  %6296 = vrot.lane.b32.xlu0 %v7320_v11, %s7228_s25 }
  0x8f   :  { %v7574_v42 = vsel %vm12387_vm7, %v6048_v9, %v6049_v7  ;;  %v7581_v50 = vsel %vm12387_vm7, %v6049_v7, %v6053_v8  ;;  %v7621_v1 = vsel %vm12387_vm7, %v6054_v39, %v6048_v9 }
  0x90   :  { %v7545_v3 = vpop.permute.xlu1 %6061  ;;  %v6057_v4 = vpop.permute.xlu0 %6056  ;;  %v1102_v62 = vsel %vm869_vm11, %v1089_v55, %v7574_v42 }
  0x91   :  { %v6059_v13 = vunpack.i.h.bf16 %v6057_v4  ;;  %v6058_v14 = vunpack.i.l.bf16 %v6057_v4  ;;  %v6063_v32 = vunpack.i.l.bf16 %v7545_v3  ;;  %v6064_v51 = vunpack.i.h.bf16 %v7545_v3 }
  0x92   :  { %6311 = vrot.lane.b32.xlu1 %v7475_v31, %s7229_s26  ;;  %6306 = vrot.lane.b32.xlu0 %v7320_v11, %s7229_s26 }
  0x93   :  { %v7585_v53 = vsel %vm12383_vm8, %v6058_v14, %v6059_v13  ;;  %v7599_v56 = vsel %vm12383_vm8, %v6059_v13, %v6063_v32  ;;  %v7628_v5 = vsel %vm12383_vm8, %v6064_v51, %v6058_v14 }
  0x94   :  { %v7571_v40 = vpop.permute.xlu1 %6071  ;;  %v6067_v41 = vpop.permute.xlu0 %6066  ;;  %v1115_v4 = vsel %vm882_vm12, %v1102_v62, %v7585_v53 }
  0x95   :  { %v6073_v44 = vunpack.i.l.bf16 %v7571_v40  ;;  %v6069_v45 = vunpack.i.h.bf16 %v6067_v41  ;;  %v6068_v47 = vunpack.i.l.bf16 %v6067_v41  ;;  %v6074_v6 = vunpack.i.h.bf16 %v7571_v40 }
  0x96   :  { %6321 = vrot.lane.b32.xlu1 %v7475_v31, %s7230_s27  ;;  %6316 = vrot.lane.b32.xlu0 %v7320_v11, %s7230_s27  ;;  %v1090_v11 = vsel %vm856_vm9, %v7592_v54, %v1041_v37  ;;  %v1101_v37 = vsel %vm869_vm11, %v1088_v63, %v7621_v1 }
  0x97   :  { %v7602_v57 = vsel %vm12382_vm10, %v6068_v47, %v6069_v45  ;;  %v7614_v60 = vsel %vm12382_vm10, %v6069_v45, %v6073_v44  ;;  %v1103_v2 = vsel %vm869_vm11, %v1090_v11, %v7581_v50  ;;  %v7658_v55 = vsel %vm12382_vm10, %v6074_v6, %v6068_v47 }
  0x98   :  { %v7609_v31 = vpop.permute.xlu1 %6081  ;;  %v6077_v59 = vpop.permute.xlu0 %6076  ;;  %12502 = vst [vmem:[#allocation5_spill] sm:$0xff] %v7614_v60  ;;  %v1116_v7 = vsel %vm882_vm12, %v1103_v2, %v7599_v56  ;;  %v1128_v9 = vsel %vm12406_vm13, %v1115_v4, %v7602_v57  ;;  %v1114_v11 = vsel %vm882_vm12, %v1101_v37, %v7628_v5 }
  0x99   :  { %v6083_v12 = vunpack.i.l.bf16 %v7609_v31  ;;  %v6079_v13 = vunpack.i.h.bf16 %v6077_v59  ;;  %v6078_v18 = vunpack.i.l.bf16 %v6077_v59  ;;  %v1129_v14 = vsel %vm12406_vm13, %v1116_v7, %v7614_v60 }
  0x9a   :  { %6331 = vrot.lane.b32.xlu1 %v7356_v17, %s7224_s21  ;;  %6326 = vrot.lane.b32.xlu0 %v7356_v17, %s7223_s0  ;;  %v6084_v49 = vunpack.i.h.bf16 %v7609_v31  ;;  %v6350_v51 = vpack.i.bf16 %v1129_v14, %v1128_v9  ;;  %v1127_v14 = vsel %vm12406_vm13, %v1114_v11, %v7658_v55 }
  0x9b   :  { %v7669_v63 = vsel %vm12384_vm14, %v6078_v18, %v6079_v13  ;;  %v7674_v2 = vsel %vm12384_vm14, %v6079_v13, %v6083_v12 }
  0x9c   :  { %v7642_v19 = vpop.permute.xlu1 %6091  ;;  %v7644_v20 = vpop.permute.xlu0 %6086 }
  0x9d   :  { %v12362_v38 = vunpack.i.h.bf16 %v7642_v19  ;;  %v6093_v39 = vunpack.i.l.bf16 %v7642_v19  ;;  %v6089_v41 = vunpack.i.h.bf16 %v7644_v20  ;;  %v6088_v45 = vunpack.i.l.bf16 %v7644_v20 }
  0x9e   :  { %6341 = vrot.lane.b32.xlu1 %v7356_v17, %s7225_s22  ;;  %6336 = vrot.lane.b32.xlu0 %v7356_v17, %s7226_s23 }
  0x9f   :  { %v125_v59 = vsel %vm12401_vm0, %v6013_v46, %v6088_v45  ;;  %v126_v62 = vsel %vm12401_vm0, %v6088_v45, %v6089_v41  ;;  %v173_v47 = vsel %vm12399_vm1, %v6023_v48, %v6093_v39  ;;  %v174_v35 = vsel %vm12399_vm1, %v6093_v39, %v12362_v38 }
  0xa0   :  { %v821_v46 = vsel %vm817_vm2, %v7316_v10, %v125_v59  ;;  %v822_v4 = vsel %vm817_vm2, %v7344_v15, %v126_v62  ;;  %v7686_v6 = vpop.permute.xlu1 %6101  ;;  %v7688_v7 = vpop.permute.xlu0 %6096  ;;  %v6355_v10 = vpack.i.bf16 %v7674_v2, %v7669_v63  ;;  %v7700_v15 = vsel %vm12384_vm14, %v6084_v49, %v6078_v18 }
  0xa1   :  { %v12360_v9 = vunpack.i.h.bf16 %v7686_v6  ;;  %v6103_v34 = vunpack.i.l.bf16 %v7686_v6  ;;  %v12361_v48 = vunpack.i.h.bf16 %v7688_v7  ;;  %v6098_v13 = vunpack.i.l.bf16 %v7688_v7 }
  0xa2   :  { %6346 = vrot.lane.b32.xlu0 %v7356_v17, %s7227_s24  ;;  %6351 = vrot.lane.b32.xlu1 %v6350_v51, %s7231_s28  ;;  %v834_v45 = vsel %vm830_vm4, %v821_v46, %v173_v47  ;;  %v835_v51 = vsel %vm830_vm4, %v822_v4, %v174_v35  ;;  %v6365_v35 = vpack.i.bf16 %v7700_v15, %v1127_v14 }
  0xa3   :  { %v221_v37 = vsel %vm12389_vm3, %v6033_v61, %v6098_v13  ;;  %v222_v39 = vsel %vm12389_vm3, %v6098_v13, %v12361_v48  ;;  %v1042_v18 = vsel %vm12381_vm6, %v6043_v0, %v6103_v34  ;;  %v1043_v49 = vsel %vm12381_vm6, %v6103_v34, %v12360_v9 }
  0xa4   :  { %v7719_v36 = vsel %vm843_vm5, %v834_v45, %v221_v37  ;;  %v7722_v61 = vsel %vm843_vm5, %v835_v51, %v222_v39  ;;  %v7724_v11 = vpop.permute.xlu1 %6111  ;;  %v7726_v59 = vpop.permute.xlu0 %6106 }
  0xa5   :  { %12503 = vst [vmem:[#allocation6_spill] sm:$0xff] %v7722_v61  ;;  %v12358_v62 = vunpack.i.h.bf16 %v7724_v11  ;;  %v6113_v43 = vunpack.i.l.bf16 %v7724_v11  ;;  %v12359_v0 = vunpack.i.h.bf16 %v7726_v59  ;;  %v6108_v47 = vunpack.i.l.bf16 %v7726_v59 }
  0xa6   :  { %6356 = vrot.lane.b32.xlu0 %v6355_v10, %s7231_s28  ;;  %6361 = vrot.lane.b32.xlu1 %v7356_v17, %s7228_s25  ;;  %v1091_v34 = vsel %vm856_vm9, %v7719_v36, %v1042_v18  ;;  %v1092_v13 = vsel %vm856_vm9, %v7722_v61, %v1043_v49 }
  0xa7   :  { %v7739_v46 = vsel %vm12387_vm7, %v6053_v8, %v6108_v47  ;;  %v7744_v4 = vsel %vm12387_vm7, %v6108_v47, %v12359_v0  ;;  %v7753_v10 = vsel %vm12383_vm8, %v6063_v32, %v6113_v43  ;;  %v7758_v52 = vsel %vm12383_vm8, %v6113_v43, %v12358_v62 }
  0xa8   :  { %12504 = vst [vmem:[#allocation7_spill] sm:$0xff] %v7744_v4  ;;  %12505 = vst [vmem:[#allocation8_spill] sm:$0xff] %v7758_v52  ;;  %v7760_v8 = vpop.permute.xlu1 %6121  ;;  %v7762_v14 = vpop.permute.xlu0 %6116  ;;  %v1104_v37 = vsel %vm869_vm11, %v1091_v34, %v7739_v46  ;;  %v1105_v39 = vsel %vm869_vm11, %v1092_v13, %v7744_v4 }
  0xa9   :  { %v12356_v3 = vunpack.i.h.bf16 %v7760_v8  ;;  %v6123_v32 = vunpack.i.l.bf16 %v7760_v8  ;;  %v12357_v45 = vunpack.i.h.bf16 %v7762_v14  ;;  %v6118_v51 = vunpack.i.l.bf16 %v7762_v14 }
  0xaa   :  { %6366 = vrot.lane.b32.xlu0 %v6365_v35, %s7231_s28  ;;  %6371 = vrot.lane.b32.xlu1 %v7356_v17, %s7229_s26  ;;  %v1117_v43 = vsel %vm882_vm12, %v1104_v37, %v7753_v10  ;;  %v1118_v47 = vsel %vm882_vm12, %v1105_v39, %v7758_v52  ;;  %v12354_v35 = vmov 0.0  }
  0xab   :  { %v7778_v18 = vsel %vm12382_vm10, %v6073_v44, %v6118_v51  ;;  %v7783_v49 = vsel %vm12382_vm10, %v6118_v51, %v12357_v45  ;;  %1341 = vmatprep.mubr.f32.mxu1 %v12354_v35  ;;  %1483 = vmatprep.mubr.f32.mxu0 %v12354_v35  ;;  %v7800_v37 = vsel %vm12384_vm14, %v6083_v12, %v6123_v32 }
  0xac   :  { %12506 = vst [vmem:[#allocation9_spill] sm:$0xff] %v7778_v18  ;;  %12507 = vst [vmem:[#allocation10_spill] sm:$0xff] %v7783_v49  ;;  %v7790_v34 = vpop.permute.xlu1 %6131  ;;  %v6127_v40 = vpop.permute.xlu0 %6126  ;;  %v1130_v44 = vsel %vm12406_vm13, %v1117_v43, %v7778_v18  ;;  %v1131_v13 = vsel %vm12406_vm13, %v1118_v47, %v7783_v49  ;;  %v7805_v39 = vsel %vm12384_vm14, %v6123_v32, %v12356_v3 }
  0xad   :  { %12508 = vst [vmem:[#allocation11_spill] sm:$0xff] %v7805_v39  ;;  %v6380_v51 = vpack.i.bf16 %v1131_v13, %v1130_v44  ;;  %v6385_v31 = vpack.i.bf16 %v7805_v39, %v7800_v37  ;;  %v12363_v35 = vunpack.i.h.bf16 %v7790_v34  ;;  %v6129_v44 = vunpack.i.h.bf16 %v6127_v40 }
  0xae   :  { %6376 = vrot.lane.b32.xlu0 %v7356_v17, %s7230_s27  ;;  %v6133_v17 = vunpack.i.l.bf16 %v7790_v34  ;;  %v6128_v13 = vunpack.i.l.bf16 %v6127_v40 }
  0xaf   :  { %6381 = vrot.lane.b32.xlu1 %v6380_v51, %s7231_s28 }
  0xb0   :  { %v7810_v43 = vpop.permute.xlu1 %6141  ;;  %v6137_v47 = vpop.permute.xlu0 %6136  ;;  %v130_v3 = vsel %vm12401_vm0, %v6133_v17, %v12363_v35  ;;  %v129_v40 = vsel %vm12401_vm0, %v6129_v44, %v6133_v17  ;;  %v127_v0 = vsel %vm12401_vm0, %v6089_v41, %v6128_v13  ;;  %v128_v49 = vsel %vm12401_vm0, %v6128_v13, %v6129_v44 }
  0xb1   :  { %v6143_v62 = vunpack.i.l.bf16 %v7810_v43  ;;  %v6139_v9 = vunpack.i.h.bf16 %v6137_v47  ;;  %v6138_v48 = vunpack.i.l.bf16 %v6137_v47  ;;  %v826_v45 = vsel %vm817_vm2, %v7371_v21, %v130_v3 }
  0xb2   :  { %6386 = vrot.lane.b32.xlu0 %v6385_v31, %s7231_s28  ;;  %v12509_v17 = vunpack.i.h.bf16 %v7810_v43  ;;  %v825_v4 = vsel %vm817_vm2, %v7381_v24, %v129_v40  ;;  %v823_v21 = vsel %vm817_vm2, %v7349_v16, %v127_v0  ;;  %v824_v13 = vsel %vm817_vm2, %v7379_v23, %v128_v49 }
  0xb3   :  { %6391 = vrot.lane.b32.xlu1 %v7393_v26, %s7223_s0  ;;  %v12510_v41 = vunpack.i.h.bf16 %v7642_v19 }
  0xb4   :  { %v7817_v12 = vpop.permute.xlu1 %6151  ;;  %v6147_v32 = vpop.permute.xlu0 %6146  ;;  %v178_v20 = vsel %vm12399_vm1, %v6143_v62, %v12509_v17  ;;  %v177_v17 = vsel %vm12399_vm1, %v6139_v9, %v6143_v62 }
  0xb5   :  { %v6153_v47 = vunpack.i.l.bf16 %v7817_v12  ;;  %v6148_v52 = vunpack.i.l.bf16 %v6147_v32  ;;  %v6149_v3 = vunpack.i.h.bf16 %v6147_v32  ;;  %v175_v61 = vsel %vm12399_vm1, %v12510_v41, %v6138_v48 }
  0xb6   :  { %6396 = vrot.lane.b32.xlu0 %v7389_v25, %s7223_s0  ;;  %v839_v0 = vsel %vm830_vm4, %v826_v45, %v178_v20  ;;  %v176_v32 = vsel %vm12399_vm1, %v6138_v48, %v6139_v9  ;;  %v12511_v19 = vunpack.i.h.bf16 %v7817_v12  ;;  %v12513_v48 = vunpack.i.h.bf16 %v7686_v6 }
  0xb7   :  { %6401 = vrot.lane.b32.xlu1 %v7393_v26, %s7224_s21  ;;  %v224_v9 = vsel %vm12389_vm3, %v6148_v52, %v6149_v3  ;;  %v838_v23 = vsel %vm830_vm4, %v825_v4, %v177_v17  ;;  %v225_v20 = vsel %vm12389_vm3, %v6149_v3, %v6153_v47 }
  0xb8   :  { %v7825_v51 = vpop.permute.xlu1 %6161  ;;  %v7827_v31 = vpop.permute.xlu0 %6156  ;;  %v226_v49 = vsel %vm12389_vm3, %v6153_v47, %v12511_v19 }
  0xb9   :  { %v6158_v44 = vunpack.i.l.bf16 %v7827_v31  ;;  %v6159_v39 = vunpack.i.h.bf16 %v7827_v31  ;;  %v12512_v31 = vunpack.i.h.bf16 %v7688_v7  ;;  %v6164_v41 = vunpack.i.h.bf16 %v7825_v51 }
  0xba   :  { %6406 = vrot.lane.b32.xlu0 %v7389_v25, %s7224_s21  ;;  %v6163_v18 = vunpack.i.l.bf16 %v7825_v51  ;;  %v836_v7 = vsel %vm830_vm4, %v823_v21, %v175_v61 }
  0xbb   :  { %6411 = vrot.lane.b32.xlu1 %v7393_v26, %s7226_s23  ;;  %v223_v40 = vsel %vm12389_vm3, %v12512_v31, %v6148_v52  ;;  %v1044_v45 = vsel %vm12381_vm6, %v12513_v48, %v6158_v44  ;;  %v837_v31 = vsel %vm830_vm4, %v824_v13, %v176_v32  ;;  %v1045_v51 = vsel %vm12381_vm6, %v6158_v44, %v6159_v39 }
  0xbc   :  { %v7842_v38 = vpop.permute.xlu1 %6171  ;;  %v7844_v35 = vpop.permute.xlu0 %6166  ;;  %v7903_v48 = vsel %vm843_vm5, %v839_v0, %v226_v49  ;;  %v7907_v60 = vsel %vm843_vm5, %v836_v7, %v223_v40  ;;  %v7913_v21 = vsel %vm843_vm5, %v837_v31, %v224_v9  ;;  %v12516_v44 = vunpack.i.h.bf16 %v7726_v59 }
  0xbd   :  { %v6168_v62 = vunpack.i.l.bf16 %v7844_v35  ;;  %v6173_v19 = vunpack.i.l.bf16 %v7842_v38  ;;  %12514 = vst [vmem:[#allocation12_spill] sm:$0xff] %v7903_v48  ;;  %v12515_v61 = vunpack.i.h.bf16 %v7844_v35  ;;  %v7921_v17 = vsel %vm12387_vm7, %v6163_v18, %v6164_v41 }
  0xbe   :  { %6416 = vrot.lane.b32.xlu0 %v7393_v26, %s7225_s22  ;;  %v7918_v13 = vsel %vm12387_vm7, %v12516_v44, %v6163_v18  ;;  %v1093_v47 = vsel %vm856_vm9, %v7907_v60, %v1044_v45  ;;  %v1094_v3 = vsel %vm856_vm9, %v7913_v21, %v1045_v51  ;;  %v12517_v0 = vunpack.i.h.bf16 %v7842_v38 }
  0xbf   :  { %6421 = vrot.lane.b32.xlu1 %v7389_v25, %s7226_s23  ;;  %v1047_v4 = vsel %vm12381_vm6, %v6168_v62, %v12515_v61  ;;  %v1046_v18 = vsel %vm12381_vm6, %v6159_v39, %v6168_v62  ;;  %v7944_v51 = vsel %vm843_vm5, %v838_v23, %v225_v20  ;;  %v1106_v61 = vsel %vm869_vm11, %v1093_v47, %v7918_v13 }
  0xc0   :  { %v7870_v24 = vpop.permute.xlu1 %6181  ;;  %v7872_v16 = vpop.permute.xlu0 %6176  ;;  %v7932_v32 = vsel %vm12387_vm7, %v6173_v19, %v12517_v0  ;;  %v1096_v40 = vsel %vm856_vm9, %v7903_v48, %v1047_v4  ;;  %12519 = vst [vmem:[#allocation14_spill] sm:$0xff] %v7944_v51  ;;  %v1095_v23 = vsel %vm856_vm9, %v7944_v51, %v1046_v18  ;;  %v12521_v4 = vunpack.i.h.bf16 %v7724_v11 }
  0xc1   :  { %12518 = vst [vmem:[#allocation13_spill] sm:$0xff] %v7932_v32  ;;  %v6179_v59 = vunpack.i.h.bf16 %v7872_v16  ;;  %v6178_v49 = vunpack.i.l.bf16 %v7872_v16  ;;  %v7949_v16 = vsel %vm12387_vm7, %v6164_v41, %v6173_v19  ;;  %v6183_v62 = vunpack.i.l.bf16 %v7870_v24 }
  0xc2   :  { %6426 = vrot.lane.b32.xlu0 %v7393_v26, %s7227_s24  ;;  %12520 = vst [vmem:[#allocation15_spill] sm:$0xff] %v7949_v16  ;;  %v1109_v20 = vsel %vm869_vm11, %v1096_v40, %v7932_v32  ;;  %v12526_v32 = vunpack.i.h.bf16 %v7870_v24 }
  0xc3   :  { %6431 = vrot.lane.b32.xlu1 %v7389_v25, %s7225_s22  ;;  %v7964_v41 = vsel %vm12383_vm8, %v12521_v4, %v6178_v49  ;;  %v7967_v19 = vsel %vm12383_vm8, %v6178_v49, %v6179_v59 }
  0xc4   :  { %v7900_v52 = vpop.permute.xlu1 %6191  ;;  %v6187_v6 = vpop.permute.xlu0 %6186  ;;  %12522 = vst [vmem:[#allocation16_spill] sm:$0xff] %v7967_v19 }
  0xc5   :  { %v6189_v9 = vunpack.i.h.bf16 %v6187_v6  ;;  %v6188_v45 = vunpack.i.l.bf16 %v6187_v6  ;;  %v1107_v6 = vsel %vm869_vm11, %v1094_v3, %v7921_v17  ;;  %v6193_v47 = vunpack.i.l.bf16 %v7900_v52 }
  0xc6   :  { %6436 = vrot.lane.b32.xlu0 %v7389_v25, %s7227_s24  ;;  %v12523_v3 = vunpack.i.h.bf16 %v7762_v14  ;;  %v7986_v14 = vsel %vm12383_vm8, %v6183_v62, %v12526_v32  ;;  %v1120_v48 = vsel %vm882_vm12, %v1107_v6, %v7967_v19 }
  0xc7   :  { %6441 = vrot.lane.b32.xlu1 %v7393_v26, %s7228_s25  ;;  %v7977_v18 = vsel %vm12382_vm10, %v6188_v45, %v6189_v9  ;;  %12527 = vst [vmem:[#allocation19_spill] sm:$0xff] %v7986_v14  ;;  %v8011_v6 = vsel %vm12382_vm10, %v6189_v9, %v6193_v47 }
  0xc8   :  { %v7941_v7 = vpop.permute.xlu1 %6201  ;;  %v6197_v31 = vpop.permute.xlu0 %6196  ;;  %v7974_v0 = vsel %vm12382_vm10, %v12523_v3, %v6188_v45  ;;  %12525 = vst [vmem:[#allocation18_spill] sm:$0xff] %v7977_v18  ;;  %v1108_v3 = vsel %vm869_vm11, %v1095_v23, %v7949_v16  ;;  %v1119_v45 = vsel %vm882_vm12, %v1106_v61, %v7964_v41  ;;  %v1133_v23 = vsel %vm12406_vm13, %v1120_v48, %v7977_v18 }
  0xc9   :  { %12524 = vst [vmem:[#allocation17_spill] sm:$0xff] %v7974_v0  ;;  %v6199_v4 = vunpack.i.h.bf16 %v6197_v31  ;;  %v6198_v49 = vunpack.i.l.bf16 %v6197_v31  ;;  %v7997_v31 = vsel %vm12383_vm8, %v6179_v59, %v6183_v62  ;;  %v1132_v32 = vsel %vm12406_vm13, %v1119_v45, %v7974_v0  ;;  %12530 = vst [vmem:[#allocation21_spill] sm:$0xff] %v8011_v6 }
  0xca   :  { %6446 = vrot.lane.b32.xlu0 %v7389_v25, %s7228_s25  ;;  %v12528_v61 = vunpack.i.h.bf16 %v7900_v52  ;;  %v6203_v48 = vunpack.i.l.bf16 %v7941_v7  ;;  %v12531_v18 = vunpack.i.h.bf16 %v7760_v8  ;;  %v1121_v59 = vsel %vm882_vm12, %v1108_v3, %v7997_v31 }
  0xcb   :  { %6451 = vrot.lane.b32.xlu1 %v7393_v26, %s7229_s26  ;;  %v8025_v9 = vsel %vm12384_vm14, %v6198_v49, %v6199_v4 }
  0xcc   :  { %v6212_v11 = vpop.permute.xlu1 %6211  ;;  %v6207_v40 = vpop.permute.xlu0 %6206  ;;  %v8008_v16 = vsel %vm12382_vm10, %v6193_v47, %v12528_v61  ;;  %v8022_v61 = vsel %vm12384_vm14, %v12531_v18, %v6198_v49  ;;  %v1134_v18 = vsel %vm12406_vm13, %v1121_v59, %v8011_v6 }
  0xcd   :  { %v7981_v39 = vunpack.i.h.bf16 %v6212_v11  ;;  %v6209_v44 = vunpack.i.h.bf16 %v6207_v40  ;;  %12529 = vst [vmem:[#allocation20_spill] sm:$0xff] %v8008_v16  ;;  %v6208_v19 = vunpack.i.l.bf16 %v6207_v40  ;;  %v6475_v3 = vpack.i.bf16 %v8025_v9, %v8022_v61 }
  0xce   :  { %6456 = vrot.lane.b32.xlu0 %v7389_v25, %s7229_s26 }
  0xcf   :  { %v829_v51 = vsel %vm817_vm2, %v7421_v27, %v6209_v44  ;;  %6461 = vrot.lane.b32.xlu1 %v7393_v26, %s7230_s27  ;;  %v1122_v26 = vsel %vm882_vm12, %v1109_v20, %v7986_v14 }
  0xd0   :  { %v6217_v62 = vpop.permute.xlu1 %6216  ;;  %v842_v45 = vsel %vm830_vm4, %v829_v51, %v7981_v39  ;;  %v998_v0 = vpop.permute.xlu0 %997  ;;  %v6470_v51 = vpack.i.bf16 %v1133_v23, %v1132_v32  ;;  %v1135_v49 = vsel %vm12406_vm13, %v1122_v26, %v8008_v16  ;;  %v8052_v32 = vsel %vm12384_vm14, %v6199_v4, %v6203_v48 }
  0xd1   :  { %v8027_v47 = vunpack.i.h.bf16 %v6217_v62  ;;  %v6213_v23 = vunpack.i.l.bf16 %v6212_v11  ;;  %v6480_v59 = vpack.i.bf16 %v1135_v49, %v1134_v18  ;;  %v6218_v6 = vunpack.i.l.bf16 %v6217_v62 }
  0xd2   :  { %6466 = vrot.lane.b32.xlu0 %v7389_v25, %s7230_s27  ;;  %v12533_v25 = vunpack.i.h.bf16 %v7941_v7  ;;  %v12535_v4 = vunpack.i.h.bf16 %v7810_v43 }
  0xd3   :  { %v8037_v8 = vsel %vm843_vm5, %v842_v45, %v8027_v47  ;;  %6471 = vrot.lane.b32.xlu1 %v6470_v51, %s7231_s28  ;;  %v12534_v45 = vunpack.i.h.bf16 %v7790_v34  ;;  %v132_v51 = vsel %vm12401_vm0, %v6208_v19, %v6209_v44 }
  0xd4   :  { %12532 = vst [vmem:[#allocation22_spill] sm:$0xff] %v8037_v8  ;;  %v1008_v20 = vpop.permute.xlu1 %1007  ;;  %v1003_v14 = vpop.permute.xlu0 %1002  ;;  %v8049_v40 = vsel %vm12384_vm14, %v6203_v48, %v12533_v25  ;;  %v179_v11 = vsel %vm12399_vm1, %v12535_v4, %v6213_v23  ;;  %v828_v18 = vsel %vm817_vm2, %v7429_v28, %v132_v51  ;;  %v999_v28 = vsel %vm12401_vm0, %v6209_v44, %v998_v0 }
  0xd5   :  { %v131_v26 = vsel %vm12401_vm0, %v12534_v45, %v6208_v19  ;;  %v6485_v25 = vpack.i.bf16 %v8049_v40, %v8052_v32  ;;  %v180_v19 = vsel %vm12399_vm1, %v6213_v23, %v7981_v39  ;;  %v12538_v51 = vunpack.i.h.bf16 %v7844_v35 }
  0xd6   :  { %6476 = vrot.lane.b32.xlu0 %v6475_v3, %s7231_s28  ;;  %v827_v48 = vsel %vm817_vm2, %v7377_v22, %v131_v26  ;;  %v12536_v3 = vunpack.i.h.bf16 %v7817_v12  ;;  %v228_v22 = vsel %vm12389_vm3, %v6218_v6, %v8027_v47  ;;  %v841_v23 = vsel %vm830_vm4, %v828_v18, %v180_v19 }
  0xd7   :  { %6481 = vrot.lane.b32.xlu1 %v6480_v59, %s7231_s28  ;;  %v840_v45 = vsel %vm830_vm4, %v827_v48, %v179_v11  ;;  %v1083_v12 = vsel %vm817_vm2, %v7443_v30, %v998_v0  ;;  %v8098_v44 = vsel %vm843_vm5, %v841_v23, %v228_v22  ;;  %v1004_v35 = vsel %vm12399_vm1, %v7981_v39, %v1003_v14 }
  0xd8   :  { %v6227_v8 = vpop.permute.xlu1 %6226  ;;  %v6222_v16 = vpop.permute.xlu0 %6221  ;;  %v227_v59 = vsel %vm12389_vm3, %v12536_v3, %v6218_v6  ;;  %12541 = vst [vmem:[#allocation26_spill] sm:$0xff] %v8098_v44  ;;  %v1082_v39 = vsel %vm817_vm2, %v7421_v27, %v999_v28  ;;  %vm12409_vm1 = vcmask 359424   ;;  %vm12408_vm0 = vcmask 351232  }
  0xd9   :  { %v6223_v34 = vunpack.i.l.bf16 %v6222_v16  ;;  %v6224_v49 = vunpack.i.h.bf16 %v6222_v16  ;;  %v6228_v26 = vunpack.i.l.bf16 %v6227_v8  ;;  %v8082_v16 = vunpack.i.h.bf16 %v6227_v8 }
  0xda   :  { %6486 = vrot.lane.b32.xlu0 %v6485_v25, %s7231_s28  ;;  %v8095_v48 = vsel %vm843_vm5, %v840_v45, %v227_v59  ;;  %v1085_v8 = vsel %vm830_vm4, %v1083_v12, %v1003_v14  ;;  %v1084_v22 = vsel %vm830_vm4, %v1082_v39, %v1004_v35  ;;  %v12546_v45 = vunpack.i.h.bf16 %v7870_v24 }
  0xdb   :  { %6491 = vrot.lane.b32.xlu1 %v7437_v29, %s7223_s0  ;;  %12537 = vst [vmem:[#allocation23_spill] sm:$0xff] %v8082_v16  ;;  %v1048_v25 = vsel %vm12381_vm6, %v12538_v51, %v6223_v34  ;;  %v1049_v6 = vsel %vm12381_vm6, %v6223_v34, %v6224_v49  ;;  %12540 = vst [vmem:[#allocation25_spill] sm:$0xff] %v8095_v48  ;;  %v12542_v34 = vunpack.i.h.bf16 %v7842_v38  ;;  %v12549_v51 = vunpack.i.h.bf16 %v7900_v52 }
  0xdc   :  { %v6232_v62 = vpop.permute.xlu1 %6231  ;;  %v1037_v43 = vpop.permute.xlu0 %1036  ;;  %v1097_v18 = vsel %vm856_vm9, %v8095_v48, %v1048_v25  ;;  %v8118_v14 = vsel %vm12387_vm7, %v6228_v26, %v8082_v16  ;;  %v1098_v59 = vsel %vm856_vm9, %v8098_v44, %v1049_v6  ;;  %v1009_v38 = vsel %vm12389_vm3, %v8027_v47, %v1008_v20 }
  0xdd   :  { %v8092_v4 = vunpack.i.h.bf16 %v6232_v62  ;;  %v6233_v11 = vunpack.i.l.bf16 %v6232_v62  ;;  %v8108_v19 = vsel %vm12387_vm7, %v12542_v34, %v6228_v26  ;;  %12545 = vst [vmem:[#allocation29_spill] sm:$0xff] %v8118_v14  ;;  %v1087_v28 = vsel %vm843_vm5, %v1085_v8, %v1008_v20 }
  0xde   :  { %6496 = vrot.lane.b32.xlu0 %v7437_v29, %s7224_s21  ;;  %12543 = vst [vmem:[#allocation27_spill] sm:$0xff] %v8108_v19  ;;  %v1110_v26 = vsel %vm869_vm11, %v1097_v18, %v8108_v19  ;;  %v1111_v6 = vsel %vm869_vm11, %v1098_v59, %v8118_v14  ;;  %v1100_v18 = vsel %vm856_vm9, %v1087_v28, %v1037_v43  ;;  %vm12410_vm3 = vcmask 556032  }
  0xdf   :  { %12539 = vst [vmem:[#allocation24_spill] sm:$0xff] %v8092_v4  ;;  %6501 = vrot.lane.b32.xlu1 %v7437_v29, %s7226_s23  ;;  %v8130_v23 = vsel %vm12383_vm8, %v12546_v45, %v6233_v11  ;;  %v8134_v27 = vsel %vm12383_vm8, %v6233_v11, %v8092_v4  ;;  %v1050_v11 = vsel %vm12381_vm6, %v6224_v49, %v1037_v43  ;;  %vm12404_vm6 = vcmask 588800  }
  0xe0   :  { %v6237_v30 = vpop.permute.xlu1 %6236  ;;  %v1065_v0 = vpop.permute.xlu0 %1064  ;;  %12547 = vst [vmem:[#allocation30_spill] sm:$0xff] %v8130_v23  ;;  %12548 = vst [vmem:[#allocation31_spill] sm:$0xff] %v8134_v27  ;;  %v1123_v35 = vsel %vm882_vm12, %v1110_v26, %v8130_v23  ;;  %v1124_v8 = vsel %vm882_vm12, %v1111_v6, %v8134_v27  ;;  %v12552_v26 = vunpack.i.h.bf16 %v7941_v7 }
  0xe1   :  { %v8112_v62 = vunpack.i.h.bf16 %v6237_v30  ;;  %v6238_v3 = vunpack.i.l.bf16 %v6237_v30  ;;  %v1086_v30 = vsel %vm843_vm5, %v1084_v22, %v1009_v38  ;;  %v1066_v34 = vsel %vm12387_vm7, %v8082_v16, %v1065_v0 }
  0xe2   :  { %6506 = vrot.lane.b32.xlu0 %v7437_v29, %s7225_s22  ;;  %v1099_v59 = vsel %vm856_vm9, %v1086_v30, %v1050_v11  ;;  %v1113_v38 = vsel %vm869_vm11, %v1100_v18, %v1065_v0  ;;  %vm697_vm7 = vcmask 564224  }
  0xe3   :  { %12544 = vst [vmem:[#allocation28_spill] sm:$0xff] %v8112_v62  ;;  %v8142_v47 = vsel %vm12382_vm10, %v12549_v51, %v6238_v3  ;;  %v8146_v24 = vsel %vm12382_vm10, %v6238_v3, %v8112_v62  ;;  %6511 = vrot.lane.b32.xlu1 %v7437_v29, %s7227_s24  ;;  %v1112_v43 = vsel %vm869_vm11, %v1099_v59, %v1066_v34 }
  0xe4   :  { %12550 = vst [vmem:[#allocation32_spill] sm:$0xff] %v8142_v47  ;;  %12551 = vst [vmem:[#allocation33_spill] sm:$0xff] %v8146_v24  ;;  %v6242_v25 = vpop.permute.xlu1 %6241  ;;  %v1070_v12 = vpop.permute.xlu0 %1069  ;;  %v1136_v3 = vsel %vm12406_vm13, %v1123_v35, %v8142_v47  ;;  %v1137_v39 = vsel %vm12406_vm13, %v1124_v8, %v8146_v24 }
  0xe5   :  { %v8153_v20 = vunpack.i.h.bf16 %v6242_v25  ;;  %v6243_v52 = vunpack.i.l.bf16 %v6242_v25  ;;  %v1071_v49 = vsel %vm12383_vm8, %v8092_v4, %v1070_v12  ;;  %v1126_v6 = vsel %vm882_vm12, %v1113_v38, %v1070_v12 }
  0xe6   :  { %6516 = vrot.lane.b32.xlu0 %v7437_v29, %s7228_s25  ;;  %v1125_v25 = vsel %vm882_vm12, %v1112_v43, %v1071_v49  ;;  %v6530_v11 = vpack.i.bf16 %v1137_v39, %v1136_v3  ;;  %v7233_v3 = vmov 0   ;;  %v1243_v39 = vld [vmem:[%s12346_s2] sm:$0x7]  ;;  %vm601_vm8 = vcmask 580608  }
  0xe7   :  { %6521 = vrot.lane.b32.xlu1 %v7437_v29, %s7229_s26  ;;  %v8181_v28 = vsel %vm12384_vm14, %v12552_v26, %v6243_v52  ;;  %v8185_v51 = vsel %vm12384_vm14, %v6243_v52, %v8153_v20  ;;  %7186 = vset.pattern.permute.xlu0 %v7233_v3 }
  0xe8   :  { %v8175_v22 = vpop.permute.xlu1 %6246  ;;  %v1075_v45 = vpop.permute.xlu0 %1074  ;;  %12553 = vst [vmem:[#allocation34_spill] sm:$0xff] %v8185_v51  ;;  %v6535_v30 = vpack.i.bf16 %v8185_v51, %v8181_v28  ;;  %6550 = vset.pattern.permute.xlu1 %v7233_v3 }
  0xe9   :  { %v1076_v0 = vsel %vm12382_vm10, %v8112_v62, %v1075_v45  ;;  %v1139_v35 = vsel %vm12406_vm13, %v1126_v6, %v1075_v45  ;;  %v12391_v26 = vunpack.i.h.bf16 %v8175_v22  ;;  %vm12403_vm10 = vcmask 1014784  }
  0xea   :  { %6526 = vrot.lane.b32.xlu0 %v7437_v29, %s7230_s27  ;;  %v1138_v7 = vsel %vm12406_vm13, %v1125_v25, %v1076_v0  ;;  %v6248_v0 = vunpack.i.l.bf16 %v8175_v22 }
  0xeb   :  { %6531 = vrot.lane.b32.xlu1 %v6530_v11, %s7231_s28  ;;  %v6540_v12 = vpack.i.bf16 %v1139_v35, %v1138_v7 }
  0xec   :  { %v8196_v8 = vpop.permute.xlu1 %6251  ;;  %v1080_v52 = vpop.permute.xlu0 %1079 }
  0xed   :  { %v1081_v34 = vsel %vm12384_vm14, %v8153_v20, %v1080_v52  ;;  %v6253_v25 = vunpack.i.l.bf16 %v8196_v8  ;;  %vm649_vm14 = vcmask 572416  }
  0xee   :  { %6536 = vrot.lane.b32.xlu0 %v6535_v30, %s7231_s28  ;;  %v6545_v29 = vpack.i.bf16 %v1080_v52, %v1081_v34 }
  0xef   :  { %6541 = vrot.lane.b32.xlu1 %v6540_v12, %s7231_s28  ;;  %v506_v3 = vsel %vm12402_vm15, %v6253_v25, %v6248_v0 }
  0xf0   :  { %v8204_v18 = vpop.permute.xlu1 %6261  ;;  %v8206_v49 = vpop.permute.xlu0 %6256  ;;  %v908_v4 = vsel %vm817_vm2, %v7700_v15, %v506_v3 }
  0xf1   :  { %v6258_v35 = vunpack.i.l.bf16 %v8206_v49  ;;  %v6263_v12 = vunpack.i.l.bf16 %v8204_v18  ;;  %v12554_v27 = vunpack.i.h.bf16 %v8206_v49 }
  0xf2   :  { %6546 = vrot.lane.b32.xlu0 %v6545_v29, %s7231_s28  ;;  %v507_v29 = vsel %vm12402_vm15, %v6248_v0, %v12391_v26 }
  0xf3   :  { %1246 = vperm.xlu1 %6550, %v1243_v39   ;;  %v555_v26 = vsel %vm12404_vm6, %v6258_v35, %v12554_v27  ;;  %v909_v23 = vsel %vm817_vm2, %v7669_v63, %v507_v29  ;;  %v554_v19 = vsel %vm12404_vm6, %v6263_v12, %v6258_v35 }
  0xf4   :  { %v8212_v59 = vpop.permute.xlu1 %6271  ;;  %v8214_v38 = vpop.permute.xlu0 %6266 }
  0xf5   :  { %v6273_v30 = vunpack.i.l.bf16 %v8212_v59  ;;  %v6268_v6 = vunpack.i.l.bf16 %v8214_v38  ;;  %v12555_v0 = vunpack.i.h.bf16 %v8212_v59  ;;  %v12556_v27 = vunpack.i.h.bf16 %v8214_v38 }
  0xf7   :  { %v267_v25 = vsel %vm12403_vm10, %v6273_v30, %v12555_v0  ;;  %v603_v16 = vsel %vm601_vm8, %v6268_v6, %v12556_v27 }
  0xf8   :  { %v8216_v45 = vpop.permute.xlu1 %6281  ;;  %v8218_v43 = vpop.permute.xlu0 %6276  ;;  %v858_v12 = vsel %vm856_vm9, %v7564_v33, %v267_v25 }
  0xf9   :  { %v6283_v24 = vunpack.i.l.bf16 %v8216_v45  ;;  %v6278_v39 = vunpack.i.l.bf16 %v8218_v43  ;;  %v12557_v63 = vunpack.i.h.bf16 %v8216_v45 }
  0xfb   :  { %v651_v15 = vsel %vm649_vm14, %v6283_v24, %v12557_v63  ;;  %v602_v27 = vsel %vm601_vm8, %v6278_v39, %v6268_v6  ;;  %v920_v63 = vsel %vm830_vm4, %v908_v4, %v554_v19  ;;  %v871_v6 = vsel %vm869_vm11, %v858_v12, %v7574_v42 }
  0xfc   :  { %v8224_v11 = vpop.permute.xlu1 %6291  ;;  %v8226_v7 = vpop.permute.xlu0 %6286  ;;  %v932_v39 = vsel %vm843_vm5, %v920_v63, %v602_v27 }
  0xfd   :  { %v6288_v34 = vunpack.i.l.bf16 %v8226_v7  ;;  %v6293_v14 = vunpack.i.l.bf16 %v8224_v11 }
  0xff   :  { %v266_v52 = vsel %vm12403_vm10, %v6288_v34, %v6273_v30  ;;  %v921_v34 = vsel %vm830_vm4, %v909_v23, %v555_v26  ;;  %v650_v44 = vsel %vm649_vm14, %v6293_v14, %v6283_v24 }
 0x100   :  { %v8241_v47 = vpop.permute.xlu1 %6301  ;;  %v8243_v62 = vpop.permute.xlu0 %6296  ;;  %v857_v3 = vsel %vm856_vm9, %v7605_v58, %v266_v52  ;;  %v933_v51 = vsel %vm843_vm5, %v921_v34, %v603_v16  ;;  %v884_v34 = vsel %vm882_vm12, %v871_v6, %v7585_v53 }
 0x101   :  { %v6303_v0 = vunpack.i.l.bf16 %v8241_v47  ;;  %v6298_v30 = vunpack.i.l.bf16 %v8243_v62  ;;  %v12558_v25 = vunpack.i.h.bf16 %v8243_v62  ;;  %v870_v52 = vsel %vm869_vm11, %v857_v3, %v7621_v1 }
 0x102   :  { %v945_v14 = vsel %vm856_vm9, %v933_v51, %v651_v15  ;;  %v883_v3 = vsel %vm882_vm12, %v870_v52, %v7628_v5 }
 0x103   :  { %v698_v33 = vsel %vm697_vm7, %v6303_v0, %v6298_v30  ;;  %v699_v58 = vsel %vm697_vm7, %v6298_v30, %v12558_v25  ;;  %v944_v30 = vsel %vm856_vm9, %v932_v39, %v650_v44  ;;  %v896_v25 = vsel %vm12406_vm13, %v883_v3, %v7658_v55 }
 0x104   :  { %v8269_v29 = vpop.permute.xlu1 %6311  ;;  %v8271_v35 = vpop.permute.xlu0 %6306  ;;  %v957_v12 = vsel %vm869_vm11, %v945_v14, %v699_v58  ;;  %v956_v51 = vsel %vm869_vm11, %v944_v30, %v698_v33  ;;  %v897_v33 = vsel %vm12406_vm13, %v884_v34, %v7602_v57  ;;  %v6254_v58 = vunpack.i.h.bf16 %v8196_v8 }
 0x105   :  { %v6313_v48 = vunpack.i.l.bf16 %v8269_v29  ;;  %v6309_v23 = vunpack.i.h.bf16 %v8271_v35  ;;  %v6308_v26 = vunpack.i.l.bf16 %v8271_v35  ;;  %v6264_v39 = vunpack.i.h.bf16 %v8204_v18 }
 0x106   :  { %v6289_v57 = vunpack.i.h.bf16 %v8226_v7  ;;  %v12559_v55 = vunpack.i.h.bf16 %v8175_v22  ;;  %v6304_v34 = vunpack.i.h.bf16 %v8241_v47  ;;  %v12562_v3 = vunpack.i.h.bf16 %v8216_v45 }
 0x107   :  { %v747_v16 = vsel %vm12410_vm3, %v6308_v26, %v6309_v23  ;;  %v746_v24 = vsel %vm12410_vm3, %v6313_v48, %v6308_v26 }
 0x108   :  { %v8293_v4 = vpop.permute.xlu1 %6321  ;;  %v8295_v19 = vpop.permute.xlu0 %6316  ;;  %v969_v15 = vsel %vm882_vm12, %v957_v12, %v747_v16  ;;  %v968_v44 = vsel %vm882_vm12, %v956_v51, %v746_v24  ;;  %v6279_v16 = vunpack.i.h.bf16 %v8218_v43  ;;  %v508_v8 = vsel %vm12402_vm15, %v12559_v55, %v6254_v58 }
 0x109   :  { %v6323_v0 = vunpack.i.l.bf16 %v8293_v4  ;;  %v6319_v42 = vunpack.i.h.bf16 %v8295_v19  ;;  %v6318_v1 = vunpack.i.l.bf16 %v8295_v19  ;;  %v12561_v43 = vunpack.i.h.bf16 %v8214_v38 }
 0x10a   :  { %v910_v22 = vsel %vm817_vm2, %v7674_v2, %v508_v8  ;;  %v12563_v51 = vunpack.i.h.bf16 %v8212_v59 }
 0x10b   :  { %v795_v48 = vsel %vm12409_vm1, %v6318_v1, %v6319_v42  ;;  %v794_v27 = vsel %vm12409_vm1, %v6323_v0, %v6318_v1  ;;  %v6294_v0 = vunpack.i.h.bf16 %v8224_v11  ;;  %v12560_v1 = vunpack.i.h.bf16 %v8206_v49 }
 0x10c   :  { %v8318_v26 = vpop.permute.xlu1 %6331  ;;  %v8320_v53 = vpop.permute.xlu0 %6326  ;;  %v981_v63 = vsel %vm12406_vm13, %v969_v15, %v795_v48  ;;  %v980_v5 = vsel %vm12406_vm13, %v968_v44, %v794_v27  ;;  %v604_v30 = vsel %vm601_vm8, %v12561_v43, %v6279_v16  ;;  %v268_v38 = vsel %vm12403_vm10, %v12563_v51, %v6289_v57 }
 0x10d   :  { %v5413_v6 = vpack.c.bf16 %v981_v63, %v897_v33  ;;  %v5415_v52 = vpack.c.bf16 %v980_v5, %v896_v25  ;;  %v556_v18 = vsel %vm12404_vm6, %v12560_v1, %v6264_v39  ;;  %v6328_v12 = vunpack.i.l.bf16 %v8320_v53 }
 0x10e   :  { %v652_v49 = vsel %vm649_vm14, %v12562_v3, %v6294_v0  ;;  %v922_v47 = vsel %vm830_vm4, %v910_v22, %v556_v18  ;;  %v6314_v15 = vunpack.i.h.bf16 %v8269_v29  ;;  %v6333_v27 = vunpack.i.l.bf16 %v8318_v26 }
 0x10f   :  { %5414 = vmatprep.subr.bf16.mxu1 %v5413_v6  ;;  %v934_v44 = vsel %vm843_vm5, %v922_v47, %v604_v30  ;;  %v859_v59 = vsel %vm856_vm9, %v7592_v54, %v268_v38  ;;  %v12564_v5 = vunpack.i.h.bf16 %v8243_v62  ;;  %v509_v29 = vsel %vm12402_vm15, %v6254_v58, %v6328_v12 }
 0x110   :  { %v8331_v14 = vpop.permute.xlu1 %6341  ;;  %v8333_v24 = vpop.permute.xlu0 %6336  ;;  %5416 = vmatpush1.bf16.msra.mxu1 %v5415_v52  ;;  %v946_v63 = vsel %vm856_vm9, %v934_v44, %v652_v49  ;;  %v748_v8 = vsel %vm12410_vm3, %v6309_v23, %v6314_v15  ;;  %v6324_v58 = vunpack.i.h.bf16 %v8293_v4  ;;  %v557_v1 = vsel %vm12404_vm6, %v6264_v39, %v6333_v27 }
 0x111   :  { %v6343_v48 = vunpack.i.l.bf16 %v8331_v14  ;;  %v700_v33 = vsel %vm697_vm7, %v12564_v5, %v6304_v34  ;;  %v6338_v55 = vunpack.i.l.bf16 %v8333_v24  ;;  %vm12407_vm15 = vcmask 203776  }
 0x112   :  { %v958_v39 = vsel %vm869_vm11, %v946_v63, %v700_v33 }
 0x113   :  { %v269_v52 = vsel %vm12403_vm10, %v6289_v57, %v6343_v48  ;;  %v911_v57 = vsel %vm817_vm2, %v7800_v37, %v509_v29  ;;  %vm12405_vm10 = vmmov 1   ;;  %v872_v37 = vsel %vm869_vm11, %v859_v59, %v7581_v50 }
 0x114   :  { %v8348_v11 = vpop.permute.xlu0 %6346  ;;  %v8350_v7 = vpop.permute.xlu1 %6351  ;;  %vm8405_vm6 = vmpackc.low %vm817_vm2, %vm12405_vm10  ;;  %v860_v30 = vsel %vm856_vm9, %v7719_v36, %v269_v52  ;;  %v605_v51 = vsel %vm601_vm8, %v6279_v16, %v6338_v55  ;;  %v970_v5 = vsel %vm882_vm12, %v958_v39, %v748_v8  ;;  %v796_v50 = vsel %vm12409_vm1, %v6319_v42, %v6324_v58 }
 0x115   :  { %v6354_v2 = vunpack.i.h.bf16 %v8350_v7  ;;  %v6353_v45 = vunpack.i.l.bf16 %v8350_v7  ;;  %v6348_v18 = vunpack.i.l.bf16 %v8348_v11  ;;  %v923_v36 = vsel %vm830_vm4, %v911_v57, %v557_v1 }
 0x116   :  { %v873_v19 = vsel %vm869_vm11, %v860_v30, %v7739_v46  ;;  %v6329_v42 = vunpack.i.h.bf16 %v8320_v53  ;;  %v935_v29 = vsel %vm843_vm5, %v923_v36, %v605_v51  ;;  %v982_v46 = vsel %vm12406_vm13, %v970_v5, %v796_v50  ;;  %v12569_v36 = vld [vmem:[#allocation9_spill] sm:$0xff] }
 0x117   :  { %v1207_v43 = vsel %vm12408_vm0, %v6353_v45, %v6354_v2  ;;  %v653_v63 = vsel %vm649_vm14, %v6294_v0, %v6348_v18  ;;  %v6334_v1 = vunpack.i.h.bf16 %v8318_v26  ;;  %v6344_v57 = vunpack.i.h.bf16 %v8331_v14 }
 0x118   :  { %v8376_v25 = vpop.permute.xlu0 %6356  ;;  %v8378_v6 = vpop.permute.xlu1 %6361  ;;  %vm12567_vm10 = vcmask 785408   ;;  %v6339_v5 = vunpack.i.h.bf16 %v8333_v24 }
 0x119   :  { %v6359_v54 = vunpack.i.h.bf16 %v8376_v25  ;;  %v6358_v62 = vunpack.i.l.bf16 %v8376_v25  ;;  %v6363_v23 = vunpack.i.l.bf16 %v8378_v6 }
 0x11b   :  { %v1219_v35 = vsel %vm12408_vm0, %v6358_v62, %v6359_v54  ;;  %v701_v16 = vsel %vm697_vm7, %v6304_v34, %v6363_v23  ;;  %v947_v34 = vsel %vm856_vm9, %v935_v29, %v653_v63  ;;  %v12571_v29 = vmov 0.0  }
 0x11c   :  { %v6367_v22 = vpop.permute.xlu0 %6366  ;;  %v8414_v3 = vpop.permute.xlu1 %6371  ;;  %v5417_v49 = vpack.c.bf16 %v1219_v35, %v1207_v43  ;;  %v959_v35 = vsel %vm869_vm11, %v947_v34, %v701_v16  ;;  %v6349_v16 = vunpack.i.h.bf16 %v8348_v11 }
 0x11d   :  { %v6369_v38 = vunpack.i.h.bf16 %v6367_v22  ;;  %v6368_v47 = vunpack.i.l.bf16 %v6367_v22  ;;  %v6373_v44 = vunpack.i.l.bf16 %v8414_v3 }
 0x11e   :  { %5419 = vmatprep.subr.msk.bf16.mxu1 %vm8405_vm6, %v5417_v49  ;;  %v654_v25 = vsel %vm649_vm14, %v6348_v18, %v6349_v16 }
 0x11f   :  { %v1218_v59 = vsel %vm12408_vm0, %v6369_v38, %v6358_v62  ;;  %v1206_v33 = vsel %vm12408_vm0, %v6368_v47, %v6353_v45  ;;  %v749_v0 = vsel %vm12410_vm3, %v6314_v15, %v6373_v44  ;;  %v885_v45 = vsel %vm882_vm12, %v872_v37, %v7599_v56  ;;  %v8461_v56 = vld [vmem:[%s12345_s1] sm:$0x7] }
 0x120   :  { %v8442_v52 = vpop.permute.xlu0 %6376  ;;  %v5420_v8 = vpack.c.bf16 %v1218_v59, %v1206_v33  ;;  %v886_v15 = vsel %vm882_vm12, %v873_v19, %v7753_v10  ;;  %v971_v22 = vsel %vm882_vm12, %v959_v35, %v749_v0  ;;  %v510_v10 = vsel %vm12567_vm10, %v6328_v12, %v6329_v42  ;;  %v12568_v38 = vld [vmem:[#allocation5_spill] sm:$0xff] }
 0x121   :  { %v6378_v62 = vunpack.i.l.bf16 %v8442_v52  ;;  %v8451_v43 = vpop.permute.xlu1 %6381  ;;  %v898_v47 = vsel %vm12406_vm13, %v885_v45, %v12568_v38  ;;  %v899_v63 = vsel %vm12406_vm13, %v886_v15, %v12569_v36  ;;  %vm12570_vm10 = vcmask 588800   ;;  %v12573_v45 = vld [vmem:[#allocation11_spill] sm:$0xff]  ;;  %v12574_v38 = vld [vmem:[#allocation6_spill] sm:$0xff] }
 0x122   :  { %5422 = vmatpush1.bf16.msk.msra.mxu1 %vm8405_vm6, %v5420_v8  ;;  %v6384_v37 = vunpack.i.h.bf16 %v8451_v43  ;;  %v6383_v39 = vunpack.i.l.bf16 %v8451_v43  ;;  %v558_v12 = vsel %vm12570_vm10, %v6333_v27, %v6334_v1  ;;  %v5425_v19 = vpack.c.bf16 %v982_v46, %v898_v47 }
 0x123   :  { %v797_v30 = vsel %vm12409_vm1, %v6324_v58, %v6378_v62  ;;  %v6364_v8 = vunpack.i.h.bf16 %v8378_v6  ;;  %v912_v46 = vsel %vm817_vm2, %v12573_v45, %v510_v10  ;;  %v6374_v15 = vunpack.i.h.bf16 %v8414_v3 }
 0x124   :  { %v8472_v49 = vpop.permute.xlu0 %6386  ;;  %v983_v51 = vsel %vm12406_vm13, %v971_v22, %v797_v30  ;;  %vm12572_vm13 = vcmask 1014784   ;;  %v1209_v34 = vsel %vm12408_vm0, %v6383_v39, %v6384_v37  ;;  %v606_v22 = vsel %vm601_vm8, %v6338_v55, %v6339_v5 }
 0x125   :  { %v6389_v50 = vunpack.i.h.bf16 %v8472_v49  ;;  %v6388_v58 = vunpack.i.l.bf16 %v8472_v49  ;;  %4948 = vmatmul.mubr.msk.f32.vlgmr.msra.gmra.mrb[0].mxu1 %vm12407_vm15, %v8461_v56  ;;  %v6392_v59 = vpop.permute.xlu1 %6391  ;;  %v5423_v33 = vpack.c.bf16 %v983_v51, %v899_v63  ;;  %v270_v0 = vsel %vm12572_vm13, %v6343_v48, %v6344_v57  ;;  %v12575_v63 = vld [vmem:[#allocation7_spill] sm:$0xff] }
 0x126   :  { %1412 = vmatprep.mubr.f32.mxu1 %v12571_v29  ;;  %v6379_v51 = vunpack.i.h.bf16 %v8442_v52  ;;  %v861_v55 = vsel %vm856_vm9, %v12574_v38, %v270_v0  ;;  %v924_v47 = vsel %vm830_vm4, %v912_v46, %v558_v12  ;;  %v6393_v0 = vunpack.i.l.bf16 %v6392_v59 }
 0x127   :  { %v1221_v27 = vsel %vm12408_vm0, %v6388_v58, %v6389_v50  ;;  %v1220_v35 = vsel %vm12408_vm0, %v6359_v54, %v6388_v58  ;;  %5424 = vmatprep.subr.bf16.mxu1 %v5423_v33  ;;  %v1208_v54 = vsel %vm12408_vm0, %v6354_v2, %v6383_v39  ;;  %v702_v58 = vsel %vm697_vm7, %v6363_v23, %v6364_v8 }
 0x128   :  { %v8509_v48 = vpop.permute.xlu0 %6396  ;;  %v5427_v30 = vpack.c.bf16 %v1221_v27, %v1209_v34  ;;  %5426 = vmatpush1.bf16.msra.mxu1 %v5425_v19  ;;  %v5430_v18 = vpack.c.bf16 %v1220_v35, %v1208_v54  ;;  %v936_v7 = vsel %vm843_vm5, %v924_v47, %v606_v22  ;;  %v750_v2 = vsel %vm12410_vm3, %v6373_v44, %v6374_v15  ;;  %v12576_v44 = vld [vmem:[#allocation8_spill] sm:$0xff]  ;;  %v12579_v47 = vld [vmem:[#allocation10_spill] sm:$0xff] }
 0x129   :  { %v6402_v10 = vpop.permute.xlu1 %6401  ;;  %v798_v39 = vsel %vm12409_vm1, %v6378_v62, %v6379_v51  ;;  %v874_v23 = vsel %vm869_vm11, %v861_v55, %v12575_v63  ;;  %v948_v12 = vsel %vm856_vm9, %v936_v7, %v654_v25  ;;  %vm12577_vm13 = vcmask 1046528  }
 0x12a   :  { %5429 = vmatprep.subr.msk.bf16.mxu1 %vm8405_vm6, %v5427_v30  ;;  %v960_v19 = vsel %vm869_vm11, %v948_v12, %v702_v58  ;;  %v887_v45 = vsel %vm882_vm12, %v874_v23, %v12576_v44  ;;  %v6394_v62 = vunpack.i.h.bf16 %v6392_v59  ;;  %v6398_v35 = vunpack.i.l.bf16 %v8509_v48 }
 0x12b   :  { %v972_v34 = vsel %vm882_vm12, %v960_v19, %v750_v2  ;;  %v6399_v25 = vunpack.i.h.bf16 %v8509_v48  ;;  %v6403_v54 = vunpack.i.l.bf16 %v6402_v10  ;;  %vm12578_vm10 = vcmask 785408   ;;  %v12620_v48 = vld [vmem:[#allocation19_spill] sm:$0xff] }
 0x12c   :  { %v8536_v36 = vpop.permute.xlu0 %6406  ;;  %5432 = vmatpush1.bf16.msk.msra.mxu1 %vm8405_vm6, %v5430_v18  ;;  %v8556_v46 = vsel %vm12577_vm13, %v972_v34, %v798_v39  ;;  %v511_v55 = vsel %vm12578_vm10, %v6329_v42, %v6393_v0  ;;  %v8570_v58 = vsel %vm12577_vm13, %v887_v45, %v12579_v47  ;;  %vm12582_vm1 = vmmov %vm12578_vm10  ;;  %v6404_v42 = vunpack.i.h.bf16 %v6402_v10 }
 0x12d   :  { %v6412_v33 = vpop.permute.xlu1 %6411  ;;  %v5435_v2 = vpack.c.bf16 %v8556_v46, %v8570_v58  ;;  %v512_v39 = vsel %vm12582_vm1, %v6393_v0, %v6394_v62  ;;  %vm12583_vm3 = vmmov %vm12582_vm1  ;;  %v6408_v63 = vunpack.i.l.bf16 %v8536_v36  ;;  %v913_v23 = vsel %vm817_vm2, %v8022_v61, %v511_v55 }
 0x12e   :  { %v513_v53 = vsel %vm12583_vm3, %v6394_v62, %v6398_v35  ;;  %v6413_v12 = vunpack.i.l.bf16 %v6412_v33  ;;  %v6414_v0 = vunpack.i.h.bf16 %v6412_v33  ;;  %vm12588_vm10 = vcmask 1014784  }
 0x12f   :  { %4951 = vmatmul.mubr.msk.f32.vlgmr.msra.gmra.mrb[2].mxu1 %vm12407_vm15, %v8461_v56  ;;  %vm12580_vm15 = vcmask 1014784   ;;  %v915_v26 = vsel %vm817_vm2, %v8052_v32, %v513_v53 }
 0x130   :  { %v6417_v27 = vpop.permute.xlu0 %6416  ;;  %1554 = vmatprep.mubr.f32.mxu1 %v12571_v29  ;;  %vm12581_vm0 = vmmov %vm12580_vm15  ;;  %v608_v55 = vsel %vm601_vm8, %v6413_v12, %v6414_v0 }
 0x131   :  { %v6419_v30 = vunpack.i.h.bf16 %v6417_v27  ;;  %v6418_v22 = vunpack.i.l.bf16 %v6417_v27  ;;  %v8563_v38 = vpop.permute.xlu1 %6421  ;;  %v914_v27 = vsel %vm817_vm2, %v8025_v9, %v512_v39  ;;  %v607_v9 = vsel %vm601_vm8, %v6339_v5, %v6413_v12 }
 0x132   :  { %v6423_v44 = vunpack.i.l.bf16 %v8563_v38 }
 0x133   :  { %v271_v59 = vsel %vm12580_vm15, %v6344_v57, %v6418_v22  ;;  %v272_v18 = vsel %vm12581_vm0, %v6418_v22, %v6419_v30  ;;  %vm12584_vm15 = vmmov %vm12582_vm1  ;;  %vm12585_vm0 = vcmask 588800  }
 0x134   :  { %v8576_v7 = vpop.permute.xlu0 %6426  ;;  %v514_v14 = vsel %vm12584_vm15, %v6398_v35, %v6399_v25  ;;  %v559_v57 = vsel %vm12585_vm0, %v6334_v1, %v6403_v54  ;;  %v863_v10 = vsel %vm856_vm9, %v7913_v21, %v272_v18  ;;  %v862_v61 = vsel %vm856_vm9, %v7907_v60, %v271_v59  ;;  %vm12586_vm1 = vmmov %vm12585_vm0 }
 0x135   :  { %v8591_v19 = vpop.permute.xlu1 %6431  ;;  %v6409_v1 = vunpack.i.h.bf16 %v8536_v36  ;;  %v8608_v21 = vsel %vm817_vm2, %v8049_v40, %v514_v14  ;;  %v560_v33 = vsel %vm12586_vm1, %v6403_v54, %v6404_v42  ;;  %v925_v60 = vsel %vm830_vm4, %v913_v23, %v559_v57  ;;  %vm12587_vm3 = vmmov %vm12585_vm0  ;;  %v12591_v14 = vld [vmem:[#allocation14_spill] sm:$0xff] }
 0x136   :  { %v6433_v34 = vunpack.i.l.bf16 %v8591_v19  ;;  %v561_v62 = vsel %vm12587_vm3, %v6404_v42, %v6408_v63  ;;  %v876_v32 = vsel %vm869_vm11, %v863_v10, %v7921_v17  ;;  %v6424_v35 = vunpack.i.h.bf16 %v8563_v38  ;;  %vm12589_vm13 = vmmov %vm12585_vm0  ;;  %v12627_v38 = vld [vmem:[#allocation20_spill] sm:$0xff] }
 0x137   :  { %v875_v40 = vsel %vm869_vm11, %v862_v61, %v7918_v13  ;;  %v6429_v54 = vunpack.i.h.bf16 %v8576_v7  ;;  %v6428_v47 = vunpack.i.l.bf16 %v8576_v7  ;;  %v926_v24 = vsel %vm830_vm4, %v914_v27, %v560_v33  ;;  %vm12596_vm1 = vmmov %vm12588_vm10 }
 0x138   :  { %v8604_v45 = vpop.permute.xlu0 %6436  ;;  %v273_v59 = vsel %vm12588_vm10, %v6419_v30, %v6433_v34  ;;  %v8629_v17 = vsel %vm12589_vm13, %v6408_v63, %v6409_v1  ;;  %v927_v5 = vsel %vm830_vm4, %v915_v26, %v561_v62  ;;  %v609_v18 = vsel %vm601_vm8, %v6414_v0, %v6423_v44  ;;  %v12590_v30 = vld [vmem:[#allocation16_spill] sm:$0xff]  ;;  %v12592_v62 = vld [vmem:[#allocation17_spill] sm:$0xff] }
 0x139   :  { %v6442_v22 = vpop.permute.xlu1 %6441  ;;  %v6434_v39 = vunpack.i.h.bf16 %v8591_v19  ;;  %v888_v7 = vsel %vm882_vm12, %v875_v40, %v7964_v41  ;;  %v889_v42 = vsel %vm882_vm12, %v876_v32, %v12590_v30  ;;  %v938_v23 = vsel %vm843_vm5, %v926_v24, %v608_v55  ;;  %v12594_v40 = vld [vmem:[#allocation18_spill] sm:$0xff]  ;;  %v12599_v30 = vld [vmem:[#allocation12_spill] sm:$0xff] }
 0x13a   :  { %v6443_v53 = vunpack.i.l.bf16 %v6442_v22  ;;  %v8644_v63 = vsel %vm601_vm8, %v6423_v44, %v6424_v35  ;;  %v864_v57 = vsel %vm856_vm9, %v12591_v14, %v273_v59  ;;  %v937_v0 = vsel %vm843_vm5, %v925_v60, %v607_v9 }
 0x13b   :  { %v939_v10 = vsel %vm843_vm5, %v927_v5, %v609_v18  ;;  %v656_v41 = vsel %vm649_vm14, %v6428_v47, %v6429_v54  ;;  %v6438_v61 = vunpack.i.l.bf16 %v8604_v45  ;;  %v655_v26 = vsel %vm649_vm14, %v6349_v16, %v6428_v47  ;;  %v12597_v16 = vld [vmem:[#allocation15_spill] sm:$0xff] }
 0x13c   :  { %v8633_v13 = vpop.permute.xlu0 %6446  ;;  %v6444_v33 = vunpack.i.h.bf16 %v6442_v22  ;;  %vm12593_vm15 = vcmask 1046528   ;;  %v274_v9 = vsel %vm12596_vm1, %v6433_v34, %v6434_v39  ;;  %v703_v11 = vsel %vm697_vm7, %v6364_v8, %v6443_v53 }
 0x13d   :  { %v6452_v12 = vpop.permute.xlu1 %6451  ;;  %v901_v32 = vsel %vm12593_vm15, %v888_v7, %v12592_v62  ;;  %vm12595_vm0 = vmmov %vm12593_vm15  ;;  %v6448_v55 = vunpack.i.l.bf16 %v8633_v13  ;;  %v877_v22 = vsel %vm869_vm11, %v864_v57, %v12597_v16  ;;  %v950_v47 = vsel %vm856_vm9, %v938_v23, %v656_v41 }
 0x13e   :  { %v6453_v27 = vunpack.i.l.bf16 %v6452_v12  ;;  %v8661_v60 = vsel %vm12595_vm0, %v889_v42, %v12594_v40  ;;  %v6454_v59 = vunpack.i.h.bf16 %v6452_v12  ;;  %vm12598_vm3 = vcmask 556032  }
 0x13f   :  { %v657_v34 = vsel %vm649_vm14, %v6429_v54, %v6438_v61  ;;  %v949_v8 = vsel %vm856_vm9, %v937_v0, %v655_v26  ;;  %v865_v42 = vsel %vm856_vm9, %v12599_v30, %v274_v9  ;;  %v704_v23 = vsel %vm697_vm7, %v6443_v53, %v6444_v33  ;;  %vm12601_vm13 = vmmov %vm12598_vm3 }
 0x140   :  { %v8655_v44 = vpop.permute.xlu0 %6456  ;;  %v751_v18 = vsel %vm12598_vm3, %v6374_v15, %v6453_v27  ;;  %v961_v57 = vsel %vm869_vm11, %v949_v8, %v703_v11  ;;  %v890_v3 = vsel %vm882_vm12, %v877_v22, %v7997_v31  ;;  %v705_v15 = vsel %vm697_vm7, %v6444_v33, %v6448_v55  ;;  %vm12602_vm15 = vmmov %vm12598_vm3 }
 0x141   :  { %v6458_v24 = vunpack.i.l.bf16 %v8655_v44  ;;  %v6462_v5 = vpop.permute.xlu1 %6461  ;;  %vm12600_vm10 = vcmask 359424   ;;  %v973_v0 = vsel %vm882_vm12, %v961_v57, %v751_v18  ;;  %v951_v53 = vsel %vm856_vm9, %v939_v10, %v657_v34 }
 0x142   :  { %v6464_v6 = vunpack.i.h.bf16 %v6462_v5  ;;  %v6463_v7 = vunpack.i.l.bf16 %v6462_v5  ;;  %v752_v41 = vsel %vm12601_vm13, %v6453_v27, %v6454_v59  ;;  %vm12603_vm1 = vmmov %vm12600_vm10  ;;  %v12605_v27 = vld [vmem:[#allocation21_spill] sm:$0xff]  ;;  %v963_v22 = vsel %vm869_vm11, %v951_v53, %v705_v15 }
 0x143   :  { %v753_v31 = vsel %vm12602_vm15, %v6454_v59, %v6458_v24  ;;  %vm12604_vm3 = vmmov %vm12603_vm1  ;;  %vm12607_vm13 = vcmask 351232   ;;  %v6439_v57 = vunpack.i.h.bf16 %v8604_v45 }
 0x144   :  { %v8684_v14 = vpop.permute.xlu0 %6466  ;;  %v799_v12 = vsel %vm12600_vm10, %v6379_v51, %v6463_v7  ;;  %v800_v33 = vsel %vm12603_vm1, %v6463_v7, %v6464_v6  ;;  %v962_v51 = vsel %vm869_vm11, %v950_v47, %v704_v23  ;;  %vm12606_vm10 = vmmov %vm12595_vm0  ;;  %v975_v34 = vsel %vm882_vm12, %v963_v22, %v753_v31 }
 0x145   :  { %v6468_v54 = vunpack.i.l.bf16 %v8684_v14  ;;  %v6472_v26 = vpop.permute.xlu1 %6471  ;;  %v985_v62 = vsel %vm12595_vm0, %v973_v0, %v799_v12  ;;  %v903_v16 = vsel %vm12606_vm10, %v890_v3, %v12605_v27  ;;  %v974_v59 = vsel %vm882_vm12, %v962_v51, %v752_v41  ;;  %vm12608_vm15 = vmmov %vm12607_vm13  ;;  %v12612_v0 = vld [vmem:[#allocation13_spill] sm:$0xff] }
 0x146   :  { %v6474_v40 = vunpack.i.h.bf16 %v6472_v26  ;;  %v6473_v9 = vunpack.i.l.bf16 %v6472_v26  ;;  %v5433_v52 = vpack.c.bf16 %v985_v62, %v901_v32  ;;  %vm12609_vm1 = vmmov %vm12595_vm0  ;;  %v878_v53 = vsel %vm869_vm11, %v865_v42, %v12612_v0 }
 0x147   :  { %v801_v10 = vsel %vm12604_vm3, %v6464_v6, %v6468_v54  ;;  %v986_v8 = vsel %vm12609_vm1, %v974_v59, %v800_v33  ;;  %vm12610_vm3 = vmmov %vm12607_vm13 }
 0x148   :  { %v6477_v11 = vpop.permute.xlu0 %6476  ;;  %5434 = vmatprep.subr.bf16.mxu0 %v5433_v52  ;;  %v1210_v32 = vsel %vm12607_vm13, %v6384_v37, %v6473_v9  ;;  %v1211_v47 = vsel %vm12608_vm15, %v6473_v9, %v6474_v40  ;;  %v987_v6 = vsel %vm12595_vm0, %v975_v34, %v801_v10  ;;  %vm12611_vm10 = vmmov %vm12610_vm3  ;;  %v6459_v9 = vunpack.i.h.bf16 %v8655_v44 }
 0x149   :  { %v6479_v5 = vunpack.i.h.bf16 %v6477_v11  ;;  %v6478_v18 = vunpack.i.l.bf16 %v6477_v11  ;;  %v8717_v7 = vpop.permute.xlu1 %6481  ;;  %5436 = vmatpush1.bf16.msra.mxu0 %v5435_v2  ;;  %v5443_v3 = vpack.c.bf16 %v987_v6, %v903_v16  ;;  %v6449_v2 = vunpack.i.h.bf16 %v8633_v13  ;;  %vm12613_vm13 = vmmov %vm12610_vm3 }
 0x14a   :  { %v6484_v37 = vunpack.i.h.bf16 %v8717_v7  ;;  %v6483_v23 = vunpack.i.l.bf16 %v8717_v7  ;;  %vm12614_vm15 = vmmov %vm12610_vm3  ;;  %v928_v10 = vsel %vm830_vm4, %v8608_v21, %v8629_v17  ;;  %v6469_v16 = vunpack.i.h.bf16 %v8684_v14  ;;  %v12647_v14 = vld [vmem:[#allocation28_spill] sm:$0xff] }
 0x14b   :  { %v1222_v30 = vsel %vm12610_vm3, %v6389_v50, %v6478_v18  ;;  %v1223_v43 = vsel %vm12611_vm10, %v6478_v18, %v6479_v5  ;;  %v5445_v50 = vpack.c.bf16 %v986_v8, %v8661_v60  ;;  %5444 = vmatprep.subr.bf16.mxu1 %v5443_v3  ;;  %vm12615_vm0 = vmmov %vm12610_vm3  ;;  %v706_v27 = vsel %vm697_vm7, %v6448_v55, %v6449_v2 }
 0x14c   :  { %v8731_v15 = vpop.permute.xlu0 %6486  ;;  %v5437_v46 = vpack.c.bf16 %v1223_v43, %v1211_v47  ;;  %v5440_v58 = vpack.c.bf16 %v1222_v30, %v1210_v32  ;;  %v1212_v41 = vsel %vm12613_vm13, %v6474_v40, %v6483_v23  ;;  %v1213_v31 = vsel %vm12614_vm15, %v6483_v23, %v6484_v37  ;;  %vm12616_vm1 = vmmov %vm12615_vm0 }
 0x14d   :  { %v6489_v12 = vunpack.i.h.bf16 %v8731_v15  ;;  %v6488_v49 = vunpack.i.l.bf16 %v8731_v15  ;;  %v6492_v26 = vpop.permute.xlu1 %6491  ;;  %5446 = vmatpush1.bf16.msra.mxu1 %v5445_v50  ;;  %v658_v40 = vsel %vm649_vm14, %v6438_v61, %v6439_v57  ;;  %v940_v61 = vsel %vm843_vm5, %v928_v10, %v8644_v63 }
 0x14e   :  { %5439 = vmatprep.subr.msk.bf16.mxu0 %vm8405_vm6, %v5437_v46  ;;  %v6494_v33 = vunpack.i.h.bf16 %v6492_v26  ;;  %v6493_v42 = vunpack.i.l.bf16 %v6492_v26  ;;  %vm12617_vm3 = vcmask 785408   ;;  %vm12619_vm13 = vcmask 203776  }
 0x14f   :  { %v1224_v62 = vsel %vm12615_vm0, %v6479_v5, %v6488_v49  ;;  %v1225_v60 = vsel %vm12616_vm1, %v6488_v49, %v6489_v12  ;;  %5442 = vmatpush1.bf16.msk.msra.mxu0 %vm8405_vm6, %v5440_v58  ;;  %vm12618_vm10 = vmmov %vm12617_vm3  ;;  %v952_v17 = vsel %vm856_vm9, %v940_v61, %v658_v40  ;;  %vm12621_vm15 = vcmask 556032   ;;  %v12632_v40 = vld [vmem:[#allocation22_spill] sm:$0xff] }
 0x150   :  { %v5450_v52 = vpack.c.bf16 %v1224_v62, %v1212_v41  ;;  %v6497_v51 = vpop.permute.xlu0 %6496  ;;  %v5447_v11 = vpack.c.bf16 %v1225_v60, %v1213_v31  ;;  %v515_v59 = vsel %vm12617_vm3, %v6399_v25, %v6493_v42  ;;  %v516_v5 = vsel %vm12618_vm10, %v6493_v42, %v6494_v33  ;;  %vm12626_vm10 = vmmov %vm12619_vm13 }
 0x151   :  { %v6499_v22 = vunpack.i.h.bf16 %v6497_v51  ;;  %v6498_v18 = vunpack.i.l.bf16 %v6497_v51  ;;  %v6502_v21 = vpop.permute.xlu1 %6501  ;;  %v891_v25 = vsel %vm882_vm12, %v878_v53, %v12620_v48  ;;  %v964_v63 = vsel %vm869_vm11, %v952_v17, %v706_v27  ;;  %v12634_v27 = vld [vmem:[#allocation25_spill] sm:$0xff] }
 0x152   :  { %4954 = vmatmul.mubr.msk.f32.vlgmr.msra.gmra.mrb[0].mxu0 %vm12619_vm13, %v8461_v56  ;;  %5449 = vmatprep.subr.msk.bf16.mxu1 %vm8405_vm6, %v5447_v11  ;;  %v6504_v55 = vunpack.i.h.bf16 %v6502_v21  ;;  %v6503_v34 = vunpack.i.l.bf16 %v6502_v21  ;;  %v754_v32 = vsel %vm12621_vm15, %v6458_v24, %v6459_v9  ;;  %vm12622_vm0 = vcmask 588800   ;;  %v12625_v24 = vld [vmem:[#allocation34_spill] sm:$0xff] }
 0x153   :  { %5452 = vmatpush1.bf16.msk.msra.mxu1 %vm8405_vm6, %v5450_v52  ;;  %1625 = vmatprep.mubr.f32.mxu0 %v12571_v29  ;;  %v563_v47 = vsel %vm12622_vm0, %v6409_v1, %v6498_v18  ;;  %vm12623_vm1 = vmmov %vm12622_vm0  ;;  %vm12624_vm3 = vcmask 359424   ;;  %v919_v43 = vsel %vm817_vm2, %v8153_v20, %v6494_v33  ;;  %v917_v23 = vsel %vm817_vm2, %v8181_v28, %v515_v59  ;;  %v12633_v11 = vld [vmem:[#allocation26_spill] sm:$0xff] }
 0x154   :  { %v564_v6 = vsel %vm12623_vm1, %v6498_v18, %v6499_v22  ;;  %v6507_v8 = vpop.permute.xlu0 %6506  ;;  %v802_v30 = vsel %vm12624_vm3, %v6468_v54, %v6469_v16  ;;  %v918_v36 = vsel %vm817_vm2, %v12625_v24, %v516_v5  ;;  %v929_v1 = vsel %vm830_vm4, %v917_v23, %v563_v47  ;;  %v12638_v24 = vld [vmem:[#allocation27_spill] sm:$0xff] }
 0x155   :  { %v930_v3 = vsel %vm830_vm4, %v918_v36, %v564_v6  ;;  %v611_v46 = vsel %vm601_vm8, %v6424_v35, %v6503_v34  ;;  %v6509_v58 = vunpack.i.h.bf16 %v6507_v8  ;;  %v6512_v49 = vpop.permute.xlu1 %6511  ;;  %v612_v20 = vsel %vm601_vm8, %v6503_v34, %v6504_v55 }
 0x156   :  { %4957 = vmatmul.mubr.msk.f32.vlgmr.msra.gmra.mrb[4].mxu1 %vm12626_vm10, %v8461_v56  ;;  %v6508_v54 = vunpack.i.l.bf16 %v6507_v8  ;;  %v6514_v28 = vunpack.i.h.bf16 %v6512_v49  ;;  %v6513_v50 = vunpack.i.l.bf16 %v6512_v49  ;;  %v976_v0 = vsel %vm882_vm12, %v964_v63, %v754_v32  ;;  %v12640_v49 = vld [vmem:[#allocation24_spill] sm:$0xff] }
 0x157   :  { %1696 = vmatprep.mubr.f32.mxu1 %v12571_v29  ;;  %v931_v53 = vsel %vm830_vm4, %v919_v43, %v6499_v22  ;;  %vm12628_vm13 = vcmask 1046528   ;;  %vm12629_vm15 = vcmask 1014784   ;;  %v941_v33 = vsel %vm843_vm5, %v929_v1, %v611_v46 }
 0x158   :  { %v6517_v41 = vpop.permute.xlu0 %6516  ;;  %v8816_v35 = vsel %vm12628_vm13, %v891_v25, %v12627_v38  ;;  %v275_v31 = vsel %vm12629_vm15, %v6434_v39, %v6508_v54  ;;  %vm12630_vm0 = vmmov %vm12629_vm15  ;;  %v659_v62 = vsel %vm649_vm14, %v6439_v57, %v6513_v50  ;;  %v942_v42 = vsel %vm843_vm5, %v930_v3, %v612_v20  ;;  %v12636_v25 = vld [vmem:[#allocation29_spill] sm:$0xff] }
 0x159   :  { %v276_v26 = vsel %vm12630_vm0, %v6508_v54, %v6509_v58  ;;  %vm12631_vm1 = vmmov %vm12628_vm13  ;;  %v868_v52 = vsel %vm856_vm9, %v12632_v40, %v6509_v58  ;;  %v660_v19 = vsel %vm649_vm14, %v6513_v50, %v6514_v28  ;;  %v6522_v51 = vpop.permute.xlu1 %6521  ;;  %v943_v39 = vsel %vm843_vm5, %v931_v53, %v6504_v55  ;;  %v12635_v55 = vld [vmem:[#allocation23_spill] sm:$0xff]  ;;  %v12643_v50 = vld [vmem:[#allocation30_spill] sm:$0xff] }
 0x15a   :  { %v8826_v60 = vsel %vm12631_vm1, %v976_v0, %v802_v30  ;;  %v867_v45 = vsel %vm856_vm9, %v12633_v11, %v276_v26  ;;  %v6519_v10 = vunpack.i.h.bf16 %v6517_v41  ;;  %v6518_v57 = vunpack.i.l.bf16 %v6517_v41  ;;  %vm12642_vm15 = vmmov %vm12631_vm1  ;;  %v12644_v41 = vld [vmem:[#allocation31_spill] sm:$0xff] }
 0x15b   :  { %v866_v22 = vsel %vm856_vm9, %v12634_v27, %v275_v31  ;;  %v953_v61 = vsel %vm856_vm9, %v941_v33, %v659_v62  ;;  %v6524_v59 = vunpack.i.h.bf16 %v6522_v51  ;;  %v6523_v5 = vunpack.i.l.bf16 %v6522_v51 }
 0x15c   :  { %v6527_v18 = vpop.permute.xlu0 %6526  ;;  %v954_v21 = vsel %vm856_vm9, %v942_v42, %v660_v19  ;;  %v955_v17 = vsel %vm856_vm9, %v943_v39, %v6514_v28  ;;  %v708_v34 = vsel %vm697_vm7, %v6518_v57, %v6519_v10  ;;  %v881_v48 = vsel %vm869_vm11, %v868_v52, %v12635_v55  ;;  %v12650_v39 = vld [vmem:[#allocation32_spill] sm:$0xff] }
 0x15d   :  { %v880_v63 = vsel %vm869_vm11, %v867_v45, %v12636_v25  ;;  %v967_v32 = vsel %vm869_vm11, %v955_v17, %v6519_v10  ;;  %v6529_v47 = vunpack.i.h.bf16 %v6527_v18  ;;  %v6528_v6 = vunpack.i.l.bf16 %v6527_v18  ;;  %v6532_v8 = vpop.permute.xlu1 %6531  ;;  %v12653_v10 = vld [vmem:[#allocation33_spill] sm:$0xff] }
 0x15e   :  { %v707_v30 = vsel %vm697_vm7, %v6449_v2, %v6518_v57  ;;  %v966_v43 = vsel %vm869_vm11, %v954_v21, %v708_v34  ;;  %vm12637_vm3 = vcmask 556032   ;;  %v879_v36 = vsel %vm869_vm11, %v866_v22, %v12638_v24 }
 0x15f   :  { %v755_v23 = vsel %vm12637_vm3, %v6459_v9, %v6523_v5  ;;  %vm12639_vm10 = vmmov %vm12637_vm3  ;;  %v6534_v3 = vunpack.i.h.bf16 %v6532_v8  ;;  %v6533_v46 = vunpack.i.l.bf16 %v6532_v8  ;;  %v894_v20 = vsel %vm882_vm12, %v881_v48, %v12640_v49 }
 0x160   :  { %v756_v1 = vsel %vm12639_vm10, %v6523_v5, %v6524_v59  ;;  %v6537_v58 = vpop.permute.xlu0 %6536  ;;  %v979_v2 = vsel %vm882_vm12, %v967_v32, %v6524_v59  ;;  %vm12641_vm13 = vcmask 359424   ;;  %v892_v0 = vsel %vm882_vm12, %v879_v36, %v12643_v50  ;;  %vm12648_vm3 = vmmov %vm12642_vm15 }
 0x161   :  { %v6539_v13 = vunpack.i.h.bf16 %v6537_v58  ;;  %v6538_v54 = vunpack.i.l.bf16 %v6537_v58  ;;  %v803_v44 = vsel %vm12641_vm13, %v6469_v16, %v6528_v6  ;;  %v6542_v9 = vpop.permute.xlu1 %6541  ;;  %v991_v28 = vsel %vm12642_vm15, %v979_v2, %v6529_v47  ;;  %vm12645_vm0 = vmmov %vm12641_vm13 }
 0x162   :  { %v965_v53 = vsel %vm869_vm11, %v953_v61, %v707_v30  ;;  %v893_v38 = vsel %vm882_vm12, %v880_v63, %v12644_v41  ;;  %v978_v31 = vsel %vm882_vm12, %v966_v43, %v756_v1  ;;  %v804_v26 = vsel %vm12645_vm0, %v6528_v6, %v6529_v47  ;;  %vm12651_vm13 = vmmov %vm12648_vm3 }
 0x163   :  { %vm12646_vm1 = vcmask 351232   ;;  %v907_v16 = vsel %vm12648_vm3, %v894_v20, %v12647_v14  ;;  %v6544_v33 = vunpack.i.h.bf16 %v6542_v9  ;;  %v6543_v42 = vunpack.i.l.bf16 %v6542_v9  ;;  %vm12652_vm15 = vmmov %vm12648_vm3 }
 0x164   :  { %v1227_v62 = vsel %vm12646_vm1, %v6538_v54, %v6539_v13  ;;  %v5463_v40 = vpack.c.bf16 %v991_v28, %v907_v16  ;;  %v977_v52 = vsel %vm882_vm12, %v965_v53, %v755_v23  ;;  %v6547_v19 = vpop.permute.xlu0 %6546  ;;  %vm12649_vm10 = vmmov %vm12646_vm1  ;;  %v905_v11 = vsel %vm12651_vm13, %v892_v0, %v12650_v39 }
 0x165   :  { %v1215_v51 = vsel %vm12649_vm10, %v6533_v46, %v6534_v3  ;;  %v989_v45 = vsel %vm12652_vm15, %v977_v52, %v803_v44  ;;  %vm12654_vm0 = vmmov %vm12648_vm3  ;;  %v6549_v61 = vunpack.i.h.bf16 %v6547_v19  ;;  %v6548_v59 = vunpack.i.l.bf16 %v6547_v19 }
 0x166   :  { %v906_v57 = vsel %vm12654_vm0, %v893_v38, %v12653_v10  ;;  %5464 = vmatprep.subr.bf16.mxu1 %v5463_v40  ;;  %v5453_v27 = vpack.c.bf16 %v989_v45, %v905_v11  ;;  %vm12655_vm1 = vmmov %vm12654_vm0  ;;  %v5455_v21 = vpack.c.bf16 %v8826_v60, %v8816_v35  ;;  %v5457_v17 = vpack.c.bf16 %v1227_v62, %v1215_v51 }
 0x167   :  { %v990_v22 = vsel %vm12655_vm1, %v978_v31, %v804_v26  ;;  %vm12656_vm3 = vmmov %vm12649_vm10 }
 0x168   :  { %v1226_v5 = vsel %vm12656_vm3, %v6489_v12, %v6538_v54  ;;  %v5465_v18 = vpack.c.bf16 %v990_v22, %v906_v57  ;;  %vm12657_vm10 = vmmov %vm12656_vm3  ;;  %5454 = vmatprep.subr.bf16.mxu0 %v5453_v27 }
 0x169   :  { %v1216_v34 = vsel %vm12657_vm10, %v6534_v3, %v6543_v42  ;;  %vm12658_vm13 = vmmov %vm12656_vm3  ;;  %5456 = vmatpush1.bf16.msra.mxu0 %v5455_v21 }
 0x16a   :  { %v1217_v55 = vsel %vm12658_vm13, %v6543_v42, %v6544_v33  ;;  %vm12659_vm15 = vmmov %vm12656_vm3  ;;  %5466 = vmatpush1.bf16.msra.mxu1 %v5465_v18  ;;  %5459 = vmatprep.subr.msk.bf16.mxu0 %vm8405_vm6, %v5457_v17  ;;  %vm12677_vm13 = vcmask 1031168  }
 0x16b   :  { %v1228_v48 = vsel %vm12659_vm15, %v6539_v13, %v6548_v59  ;;  %vm12660_vm0 = vmmov %vm12656_vm3  ;;  %vm12662_vm3 = vcmask 203776   ;;  %vm12679_vm15 = vcmask 1022976  }
 0x16c   :  { %v1229_v25 = vsel %vm12660_vm0, %v6548_v59, %v6549_v61  ;;  %v5470_v63 = vpack.c.bf16 %v1228_v48, %v1216_v34  ;;  %vm12661_vm1 = vmmov %vm12660_vm0  ;;  %vm12681_vm0 = vcmask 1014784  }
 0x16d   :  { %v5467_v15 = vpack.c.bf16 %v1229_v25, %v1217_v55  ;;  %v1214_v12 = vsel %vm12661_vm1, %v6484_v37, %v6533_v46  ;;  %vm12663_vm10 = vmmov %vm12662_vm3  ;;  %vm12682_vm1 = vcmask 818176  }
 0x16e   :  { %v5460_v35 = vpack.c.bf16 %v1226_v5, %v1214_v12 }
 0x16f   :  { %5469 = vmatprep.subr.msk.bf16.mxu1 %vm8405_vm6, %v5467_v15 }
 0x170   :  { %5462 = vmatpush1.bf16.msk.msra.mxu0 %vm8405_vm6, %v5460_v35  ;;  %5472 = vmatpush1.bf16.msk.msra.mxu1 %vm8405_vm6, %v5470_v63  ;;  %vm12676_vm6 = vcmask 1039360  }
 0x172   :  { %v8908_v32 = vpop.permute.xlu1 %1246 }
 0x173   :  { %4960 = vmatmul.mubr.msk.f32.vlgmr.msra.gmra.mrb[2].mxu0 %vm12662_vm3, %v8461_v56  ;;  %4963 = vmatmul.mubr.msk.f32.vlgmr.msra.gmra.mrb[6].mxu1 %vm12663_vm10, %v8461_v56  ;;  %vm12685_vm3 = vcmask 1046528   ;;  %vm12687_vm10 = vcmask 793600  }
 0x174   :  { %3033 = vmatprep.mubr.f32.mxu0 %v12571_v29  ;;  %3104 = vmatprep.mubr.f32.mxu1 %v12571_v29 }
 0x1f8   :  { %v1343_v7 = vpop.f32.mrb[0].mxu1 }
 0x1f9   :  { %v1345_v37 = vpop.f32.mrb[1].mxu1  ;;  %v1344_v4 = vadd.f32 %v1343_v7, %v8908_v32 }
 0x1fa   :  { %v1346_v51 = vadd.f32 %v1345_v37, %v8908_v32 }
 0x1fb   :  { %v8914_v30 = vmax.f32 %v1344_v4, 0.0 }
 0x1fc   :  { %v8960_v45 = vmax.f32 %v1346_v51, 0.0 }
 0x1fd   :  { %v1942_v56 = vrot.slane %v8914_v30, 1  ;;  %v1780_v55 = vrot.slane %v8914_v30, 2  ;;  %v1834_v15 = vrot.slane %v8914_v30, 7 }
 0x1fe   :  { %v1943_v27 = vrot.slane %v8960_v45, 1  ;;  %v1835_v51 = vrot.slane %v8960_v45, 7 }
 0x202   :  { %v1414_v60 = vpop.f32.mrb[2].mxu1 }
 0x203   :  { %v1416_v47 = vpop.f32.mrb[3].mxu1  ;;  %v1415_v39 = vadd.f32 %v1414_v60, %v8908_v32  ;;  %v1726_v60 = vrot.slane %v8914_v30, 5 }
 0x204   :  { %v1417_v6 = vadd.f32 %v1416_v47, %v8908_v32 }
 0x205   :  { %v8962_v10 = vmax.f32 %v1415_v39, 0.0 }
 0x206   :  { %v8912_v8 = vmax.f32 %v1417_v6, 0.0 }
 0x207   :  { %v1944_v22 = vrot.slane %v8962_v10, 1  ;;  %v1836_v39 = vrot.slane %v8962_v10, 7 }
 0x208   :  { %v1945_v43 = vrot.slane %v8912_v8, 1  ;;  %v6636_v57 = vpack.i.bf16 %v8914_v30, %v8912_v8  ;;  %v1783_v48 = vrot.slane %v8912_v8, 2  ;;  %v1837_v35 = vrot.slane %v8912_v8, 7 }
 0x209   :  { %v8979_v34 = vpack.i.bf16 %v1944_v22, %v1943_v27  ;;  %v1729_v47 = vrot.slane %v8912_v8, 5  ;;  %v1727_v27 = vrot.slane %v8960_v45, 5  ;;  %v1728_v22 = vrot.slane %v8962_v10, 5 }
 0x20a   :  { %v8922_v23 = vpack.i.bf16 %v1945_v43, %v1942_v56  ;;  %v6721_v12 = vpack.i.bf16 %v1780_v55, %v1783_v48  ;;  %v6726_v6 = vpack.i.bf16 %v1834_v15, %v1837_v35 }
 0x225   :  { %v1485_v24 = vpop.f32.mrb[0].mxu0 }
 0x226   :  { %v1486_v36 = vadd.f32 %v1485_v24, %v8908_v32  ;;  %v1487_v1 = vpop.f32.mrb[1].mxu0 }
 0x227   :  { %v1488_v3 = vadd.f32 %v1487_v1, %v8908_v32 }
 0x228   :  { %v8926_v46 = vmax.f32 %v1486_v36, 0.0 }
 0x229   :  { %v8928_v58 = vmax.f32 %v1488_v3, 0.0  ;;  %v8930_v49 = vpop.f32.mrb[4].mxu1 }
 0x22a   :  { %v8932_v20 = vpop.f32.mrb[5].mxu1  ;;  %v1838_v13 = vrot.slane %v8926_v46, 7  ;;  %v1784_v44 = vrot.slane %v8926_v46, 2  ;;  %v1892_v50 = vrot.slane %v8926_v46, 4  ;;  %v1730_v41 = vrot.slane %v8926_v46, 5 }
 0x22b   :  { %12664 = vst [vmem:[#allocation5_spill] sm:$0xff] %v8928_v58  ;;  %v6551_v54 = vpack.i.bf16 %v8928_v58, %v8926_v46  ;;  %v1839_v2 = vrot.slane %v8928_v58, 7  ;;  %v1785_v9 = vrot.slane %v8928_v58, 2  ;;  %v1893_v0 = vrot.slane %v8928_v58, 4 }
 0x22c   :  { %v1731_v38 = vrot.slane %v8928_v58, 5  ;;  %v1946_v26 = vrot.slane %v8926_v46, 1  ;;  %v1947_v62 = vrot.slane %v8928_v58, 1  ;;  %v2000_v16 = vrot.slane %v8926_v46, 6 }
 0x22d   :  { %6552 = vrot.lane.b32.xlu0 %v6551_v54, %s7222_s18  ;;  %v6561_v28 = vpack.i.bf16 %v1839_v2, %v1838_v13  ;;  %v6556_v53 = vpack.i.bf16 %v1785_v9, %v1784_v44  ;;  %v6571_v31 = vpack.i.bf16 %v1893_v0, %v1892_v50  ;;  %v2001_v33 = vrot.slane %v8928_v58, 6 }
 0x22e   :  { %v6566_v14 = vpack.i.bf16 %v1731_v38, %v1730_v41  ;;  %v6576_v42 = vpack.i.bf16 %v1947_v62, %v1946_v26  ;;  %v2054_v52 = vrot.slane %v8926_v46, 3  ;;  %v2055_v19 = vrot.slane %v8928_v58, 3 }
 0x22f   :  { %6562 = vrot.lane.b32.xlu1 %v6561_v28, %s7217_s13  ;;  %v6581_v40 = vpack.i.bf16 %v2001_v33, %v2000_v16  ;;  %v6731_v9 = vpack.i.bf16 %v1726_v60, %v1729_v47  ;;  %v1891_v50 = vrot.slane %v8912_v8, 4  ;;  %v6631_v26 = vpack.i.bf16 %v8962_v10, %v8960_v45 }
 0x230   :  { %v6586_v11 = vpack.i.bf16 %v2055_v19, %v2054_v52  ;;  %v6741_v62 = vpack.i.bf16 %v1942_v56, %v1945_v43  ;;  %v1999_v16 = vrot.slane %v8912_v8, 6  ;;  %v2050_v19 = vrot.slane %v8914_v30, 3 }
 0x231   :  { %6557 = vrot.lane.b32.xlu0 %v6556_v53, %s7215_s11  ;;  %v2053_v56 = vrot.slane %v8912_v8, 3 }
 0x233   :  { %6572 = vrot.lane.b32.xlu1 %v6571_v31, %s7218_s14 }
 0x235   :  { %6567 = vrot.lane.b32.xlu0 %v6566_v14, %s7216_s12 }
 0x237   :  { %6577 = vrot.lane.b32.xlu1 %v6576_v42, %s7219_s15 }
 0x239   :  { %6582 = vrot.lane.b32.xlu0 %v6581_v40, %s7220_s16 }
 0x23b   :  { %6592 = vrot.lane.b32.xlu1 %v6571_v31, %s7225_s22 }
 0x23d   :  { %6587 = vrot.lane.b32.xlu0 %v6586_v11, %s7221_s17 }
 0x23f   :  { %6617 = vrot.lane.b32.xlu1 %v6576_v42, %s7228_s25  ;;  %v1781_v42 = vrot.slane %v8960_v45, 2 }
 0x241   :  { %6597 = vrot.lane.b32.xlu0 %v6566_v14, %s7223_s0  ;;  %v1996_v14 = vrot.slane %v8914_v30, 6 }
 0x243   :  { %6637 = vrot.lane.b32.xlu1 %v6636_v57, %s7222_s18  ;;  %v6746_v52 = vpack.i.bf16 %v1996_v14, %v1999_v16  ;;  %v6651_v57 = vpack.i.bf16 %v1836_v39, %v1835_v51 }
 0x245   :  { %6602 = vrot.lane.b32.xlu0 %v6556_v53, %s7224_s21 }
 0x246   :  { %v1627_v61 = vpop.f32.mrb[2].mxu0  ;;  %v8971_v59 = vpop.f32.mrb[6].mxu1 }
 0x247   :  { %v1628_v5 = vadd.f32 %v1627_v61, %v8908_v32  ;;  %v1629_v18 = vpop.f32.mrb[3].mxu0  ;;  %v8975_v21 = vpop.f32.mrb[7].mxu1  ;;  %6707 = vrot.lane.b32.xlu1 %v8979_v34, %s7228_s25  ;;  %v6656_v61 = vpack.i.bf16 %v1728_v22, %v1727_v27 }
 0x248   :  { %v1630_v17 = vadd.f32 %v1629_v18, %v8908_v32  ;;  %v1890_v18 = vrot.slane %v8962_v10, 4 }
 0x249   :  { %v8983_v25 = vmax.f32 %v1628_v5, 0.0  ;;  %6607 = vrot.lane.b32.xlu0 %v6561_v28, %s7226_s23  ;;  %v1888_v28 = vrot.slane %v8914_v30, 4  ;;  %v1889_v5 = vrot.slane %v8960_v45, 4 }
 0x24a   :  { %v8985_v63 = vmax.f32 %v1630_v17, 0.0 }
 0x24b   :  { %12665 = vst [vmem:[#allocation9_spill] sm:$0xff] %v8983_v25  ;;  %v1896_v7 = vrot.slane %v8983_v25, 4  ;;  %6722 = vrot.lane.b32.xlu1 %v6721_v12, %s7215_s11  ;;  %v1842_v4 = vrot.slane %v8983_v25, 7  ;;  %v1950_v1 = vrot.slane %v8983_v25, 1  ;;  %v2004_v13 = vrot.slane %v8983_v25, 6 }
 0x24c   :  { %12666 = vst [vmem:[#allocation11_spill] sm:$0xff] %v8985_v63  ;;  %v1897_v37 = vrot.slane %v8985_v63, 4  ;;  %v1843_v24 = vrot.slane %v8985_v63, 7  ;;  %v1951_v3 = vrot.slane %v8985_v63, 1  ;;  %v2005_v54 = vrot.slane %v8985_v63, 6 }
 0x24d   :  { %6612 = vrot.lane.b32.xlu0 %v6571_v31, %s7227_s24  ;;  %v2058_v2 = vrot.slane %v8983_v25, 3  ;;  %v2059_v44 = vrot.slane %v8985_v63, 3  ;;  %v6736_v31 = vpack.i.bf16 %v1888_v28, %v1891_v50  ;;  %v6641_v33 = vpack.i.bf16 %v8985_v63, %v8983_v25 }
 0x24e   :  { %v9008_v36 = vpack.i.bf16 %v1897_v37, %v1896_v7  ;;  %v9024_v0 = vpack.i.bf16 %v1843_v24, %v1842_v4  ;;  %v9027_v53 = vpack.i.bf16 %v1951_v3, %v1950_v1  ;;  %v9029_v41 = vpack.i.bf16 %v2005_v54, %v2004_v13 }
 0x24f   :  { %6727 = vrot.lane.b32.xlu1 %v6726_v6, %s7217_s13  ;;  %v9031_v38 = vpack.i.bf16 %v2059_v44, %v2058_v2  ;;  %v6661_v17 = vpack.i.bf16 %v1890_v18, %v1889_v5  ;;  %v1997_v12 = vrot.slane %v8960_v45, 6  ;;  %v1998_v7 = vrot.slane %v8962_v10, 6 }
 0x250   :  { %12667 = vst [vmem:[#allocation6_spill] sm:$0xff] %v9029_v41  ;;  %v6791_v37 = vpack.i.bf16 %v1891_v50, %v1888_v28  ;;  %v2051_v4 = vrot.slane %v8960_v45, 3  ;;  %v2052_v24 = vrot.slane %v8962_v10, 3  ;;  %v6796_v1 = vpack.i.bf16 %v1729_v47, %v1726_v60 }
 0x251   :  { %6622 = vrot.lane.b32.xlu0 %v6581_v40, %s7229_s26  ;;  %12668 = vst [vmem:[#allocation7_spill] sm:$0xff] %v9031_v38  ;;  %v1782_v40 = vrot.slane %v8962_v10, 2  ;;  %v6671_v6 = vpack.i.bf16 %v1998_v7, %v1997_v12  ;;  %v6806_v13 = vpack.i.bf16 %v1837_v35, %v1834_v15  ;;  %v1557_v60 = vadd.f32 %v8930_v49, %v8908_v32 }
 0x252   :  { %v6676_v3 = vpack.i.bf16 %v2052_v24, %v2051_v4  ;;  %v6826_v35 = vpack.i.bf16 %v2053_v56, %v2050_v19  ;;  %v1788_v28 = vrot.slane %v8983_v25, 2  ;;  %v1789_v50 = vrot.slane %v8985_v63, 2 }
 0x253   :  { %6732 = vrot.lane.b32.xlu1 %v6731_v9, %s7216_s12  ;;  %v6646_v43 = vpack.i.bf16 %v1782_v40, %v1781_v42  ;;  %v9103_v47 = vmax.f32 %v1557_v60, 0.0 }
 0x255   :  { %6627 = vrot.lane.b32.xlu0 %v6586_v11, %s7230_s27  ;;  %v6751_v11 = vpack.i.bf16 %v2050_v19, %v2053_v56  ;;  %12669 = vst [vmem:[#allocation8_spill] sm:$0xff] %v9103_v47  ;;  %v1948_v44 = vrot.slane %v9103_v47, 1  ;;  %v2056_v40 = vrot.slane %v9103_v47, 3  ;;  %v1732_v27 = vrot.slane %v9103_v47, 5 }
 0x256   :  { %v1840_v24 = vrot.slane %v9103_v47, 7 }
 0x257   :  { %6737 = vrot.lane.b32.xlu1 %v6736_v31, %s7218_s14 }
 0x259   :  { %6632 = vrot.lane.b32.xlu0 %v6631_v26, %s7222_s18  ;;  %v2002_v26 = vrot.slane %v9103_v47, 6 }
 0x25b   :  { %6742 = vrot.lane.b32.xlu1 %v6741_v62, %s7219_s15 }
 0x25d   :  { %6642 = vrot.lane.b32.xlu0 %v6641_v33, %s7222_s18  ;;  %v1735_v33 = vrot.slane %v8985_v63, 5 }
 0x25f   :  { %6747 = vrot.lane.b32.xlu1 %v6746_v52, %s7220_s16 }
 0x261   :  { %6647 = vrot.lane.b32.xlu0 %v6646_v43, %s7215_s11 }
 0x263   :  { %6752 = vrot.lane.b32.xlu1 %v6751_v11, %s7221_s17 }
 0x265   :  { %6652 = vrot.lane.b32.xlu0 %v6651_v57, %s7217_s13 }
 0x267   :  { %6762 = vrot.lane.b32.xlu1 %v9024_v0, %s7217_s13 }
 0x269   :  { %6657 = vrot.lane.b32.xlu0 %v6656_v61, %s7216_s12 }
 0x26b   :  { %6772 = vrot.lane.b32.xlu1 %v9008_v36, %s7218_s14 }
 0x26d   :  { %6662 = vrot.lane.b32.xlu0 %v6661_v17, %s7218_s14 }
 0x26f   :  { %6777 = vrot.lane.b32.xlu1 %v9027_v53, %s7219_s15 }
 0x271   :  { %6667 = vrot.lane.b32.xlu0 %v8979_v34, %s7219_s15  ;;  %v6801_v34 = vpack.i.bf16 %v1783_v48, %v1780_v55  ;;  %v1559_v55 = vadd.f32 %v8932_v20, %v8908_v32  ;;  %v6821_v48 = vpack.i.bf16 %v1999_v16, %v1996_v14  ;;  %v1786_v20 = vrot.slane %v9103_v47, 2 }
 0x272   :  { %v9128_v14 = vpack.i.bf16 %v1789_v50, %v1788_v28  ;;  %v1734_v16 = vrot.slane %v8983_v25, 5 }
 0x273   :  { %6792 = vrot.lane.b32.xlu1 %v6791_v37, %s7225_s22  ;;  %v9105_v15 = vmax.f32 %v1559_v55, 0.0 }
 0x274   :  { %v6766_v19 = vpack.i.bf16 %v1735_v33, %v1734_v16 }
 0x275   :  { %6672 = vrot.lane.b32.xlu0 %v6671_v6, %s7220_s16  ;;  %12670 = vst [vmem:[#allocation10_spill] sm:$0xff] %v9105_v15  ;;  %v6841_v49 = vpack.i.bf16 %v9105_v15, %v9103_v47  ;;  %v1787_v54 = vrot.slane %v9105_v15, 2  ;;  %v1949_v9 = vrot.slane %v9105_v15, 1  ;;  %v2003_v62 = vrot.slane %v9105_v15, 6 }
 0x276   :  { %v2057_v52 = vrot.slane %v9105_v15, 3  ;;  %v1895_v51 = vrot.slane %v9105_v15, 4  ;;  %v1733_v22 = vrot.slane %v9105_v15, 5 }
 0x277   :  { %6797 = vrot.lane.b32.xlu1 %v6796_v1, %s7223_s0  ;;  %v6846_v2 = vpack.i.bf16 %v1787_v54, %v1786_v20  ;;  %v9122_v31 = vpack.i.bf16 %v1949_v9, %v1948_v44  ;;  %v9134_v42 = vpack.i.bf16 %v2003_v62, %v2002_v26  ;;  %v1841_v1 = vrot.slane %v9105_v15, 7 }
 0x278   :  { %v9141_v56 = vpack.i.bf16 %v2057_v52, %v2056_v40  ;;  %v6891_v18 = vpack.i.bf16 %v1733_v22, %v1732_v27 }
 0x279   :  { %6677 = vrot.lane.b32.xlu0 %v6676_v3, %s7221_s17 }
 0x27b   :  { %6802 = vrot.lane.b32.xlu1 %v6801_v34, %s7224_s21 }
 0x27d   :  { %6682 = vrot.lane.b32.xlu0 %v6661_v17, %s7225_s22 }
 0x27f   :  { %6807 = vrot.lane.b32.xlu1 %v6806_v13, %s7226_s23 }
 0x281   :  { %6687 = vrot.lane.b32.xlu0 %v6656_v61, %s7223_s0 }
 0x283   :  { %6812 = vrot.lane.b32.xlu1 %v6791_v37, %s7227_s24 }
 0x285   :  { %6692 = vrot.lane.b32.xlu0 %v6646_v43, %s7224_s21  ;;  %v1894_v43 = vrot.slane %v9103_v47, 4 }
 0x287   :  { %6822 = vrot.lane.b32.xlu1 %v6821_v48, %s7229_s26 }
 0x289   :  { %6697 = vrot.lane.b32.xlu0 %v6651_v57, %s7226_s23  ;;  %v9153_v57 = vpack.i.bf16 %v1895_v51, %v1894_v43 }
 0x28b   :  { %6827 = vrot.lane.b32.xlu1 %v6826_v35, %s7230_s27 }
 0x28d   :  { %6702 = vrot.lane.b32.xlu0 %v6661_v17, %s7227_s24 }
 0x28f   :  { %6842 = vrot.lane.b32.xlu1 %v6841_v49, %s7222_s18  ;;  %v6901_v49 = vpack.i.bf16 %v1841_v1, %v1840_v24 }
 0x291   :  { %6712 = vrot.lane.b32.xlu0 %v6671_v6, %s7229_s26 }
 0x293   :  { %6847 = vrot.lane.b32.xlu1 %v6846_v2, %s7215_s11 }
 0x295   :  { %6717 = vrot.lane.b32.xlu0 %v6676_v3, %s7230_s27 }
 0x297   :  { %6872 = vrot.lane.b32.xlu1 %v9122_v31, %s7219_s15 }
 0x299   :  { %6757 = vrot.lane.b32.xlu0 %v9128_v14, %s7215_s11 }
 0x29b   :  { %6877 = vrot.lane.b32.xlu1 %v9134_v42, %s7220_s16 }
 0x29d   :  { %6767 = vrot.lane.b32.xlu0 %v6766_v19, %s7216_s12 }
 0x29f   :  { %v9145_v39 = vpop.permute.xlu0 %6552  ;;  %6882 = vrot.lane.b32.xlu1 %v9141_v56, %s7221_s17 }
 0x2a0   :  { %v12422_v16 = vunpack.i.h.bf16 %v9145_v39  ;;  %v12439_v33 = vunpack.i.l.bf16 %v9145_v39 }
 0x2a1   :  { %v9149_v11 = vpop.permute.xlu1 %6562  ;;  %6782 = vrot.lane.b32.xlu0 %v9029_v41, %s7220_s16 }
 0x2a2   :  { %12671 = vst [vmem:[#allocation16_spill] sm:$0xff] %v9149_v11  ;;  %v12413_v3 = vunpack.i.h.bf16 %v9149_v11  ;;  %v12435_v34 = vunpack.i.l.bf16 %v9149_v11 }
 0x2a3   :  { %v9157_v61 = vpop.permute.xlu0 %6557  ;;  %6887 = vrot.lane.b32.xlu1 %v9153_v57, %s7225_s22 }
 0x2a4   :  { %12672 = vst [vmem:[#allocation14_spill] sm:$0xff] %v9157_v61  ;;  %v12419_v37 = vunpack.i.h.bf16 %v9157_v61  ;;  %v12434_v6 = vunpack.i.l.bf16 %v9157_v61  ;;  %v12717_v47 = vunpack.i.l.bf16 %v9157_v61 }
 0x2a5   :  { %v9161_v5 = vpop.permute.xlu1 %6572  ;;  %6787 = vrot.lane.b32.xlu0 %v9031_v38, %s7221_s17 }
 0x2a7   :  { %v9165_v17 = vpop.permute.xlu0 %6567  ;;  %6892 = vrot.lane.b32.xlu1 %v6891_v18, %s7223_s0 }
 0x2a8   :  { %12673 = vst [vmem:[#allocation17_spill] sm:$0xff] %v9165_v17  ;;  %v12411_v12 = vunpack.i.h.bf16 %v9165_v17  ;;  %v12438_v7 = vunpack.i.l.bf16 %v9165_v17 }
 0x2a9   :  { %v9172_v4 = vpop.permute.xlu1 %6577  ;;  %6817 = vrot.lane.b32.xlu0 %v8922_v23, %s7228_s25  ;;  %v1817_v23 = vsel %vm12677_vm13, %v12434_v6, %v12419_v37  ;;  %vm12689_vm13 = vcmask 809984  }
 0x2aa   :  { %12674 = vst [vmem:[#allocation18_spill] sm:$0xff] %v9172_v4  ;;  %v1763_v60 = vsel %vm12676_vm6, %v12438_v7, %v12411_v12  ;;  %v12416_v55 = vunpack.i.h.bf16 %v9172_v4  ;;  %v12429_v48 = vunpack.i.l.bf16 %v9172_v4  ;;  %vm12688_vm6 = vcmask 785408  }
 0x2ab   :  { %v9180_v13 = vpop.permute.xlu0 %6582  ;;  %6897 = vrot.lane.b32.xlu1 %v6846_v2, %s7224_s21  ;;  %v1871_v2 = vsel %vm12679_vm15, %v12435_v34, %v12413_v3  ;;  %v2457_v9 = vsel %vm843_vm5, %v8926_v46, %v1763_v60  ;;  %vm12690_vm15 = vcmask 801792  }
 0x2ac   :  { %12675 = vst [vmem:[#allocation15_spill] sm:$0xff] %v9180_v13  ;;  %v9212_v28 = vsel %vm817_vm2, %v1817_v23, %v1871_v2  ;;  %v9224_v26 = vsel %vm12682_vm1, %v12429_v48, %v12416_v55  ;;  %v9234_v40 = vsel %vm882_vm12, %v2457_v9, %v1817_v23  ;;  %v12418_v43 = vunpack.i.h.bf16 %v9180_v13 }
 0x2ad   :  { %v9195_v35 = vpop.permute.xlu1 %6592  ;;  %6832 = vrot.lane.b32.xlu0 %v9008_v36, %s7225_s22  ;;  %12684 = vst [vmem:[#allocation19_spill] sm:$0xff] %v9234_v40  ;;  %v12430_v51 = vunpack.i.l.bf16 %v9180_v13  ;;  %v1699_v23 = vadd.f32 %v8971_v59, %v8908_v32  ;;  %v1701_v2 = vadd.f32 %v8975_v21, %v8908_v32  ;;  %vm12698_vm1 = vcmask 556032  }
 0x2ae   :  { %12678 = vst [vmem:[#allocation12_spill] sm:$0xff] %v9195_v35  ;;  %v12412_v20 = vunpack.i.h.bf16 %v9195_v35  ;;  %v12427_v54 = vunpack.i.l.bf16 %v9195_v35 }
 0x2af   :  { %v9206_v44 = vpop.permute.xlu0 %6587  ;;  %6902 = vrot.lane.b32.xlu1 %v6901_v49, %s7226_s23  ;;  %v2033_v32 = vsel %vm12689_vm13, %v12430_v51, %v12418_v43  ;;  %v9291_v3 = vmax.f32 %v1701_v2, 0.0  ;;  %vm12709_vm13 = vcmask 1039360  }
 0x2b0   :  { %12680 = vst [vmem:[#allocation21_spill] sm:$0xff] %v9206_v44  ;;  %v1925_v50 = vsel %vm12681_vm0, %v12427_v54, %v12412_v20  ;;  %v12415_v22 = vunpack.i.h.bf16 %v9206_v44  ;;  %v12428_v24 = vunpack.i.l.bf16 %v9206_v44  ;;  %v9289_v20 = vmax.f32 %v1699_v23, 0.0 }
 0x2b1   :  { %v2490_v62 = vsel %vm856_vm9, %v9212_v28, %v1925_v50  ;;  %v9228_v46 = vpop.permute.xlu1 %6617  ;;  %6837 = vrot.lane.b32.xlu0 %v6766_v19, %s7223_s0  ;;  %v9264_v50 = vsel %vm12687_vm10, %v12439_v33, %v12422_v16  ;;  %12692 = vst [vmem:[#allocation22_spill] sm:$0xff] %v9291_v3  ;;  %vm12693_vm0 = vcmask 588800   ;;  %vm12701_vm10 = vcmask 1046528  }
 0x2b2   :  { %12683 = vst [vmem:[#allocation13_spill] sm:$0xff] %v9228_v46  ;;  %v9238_v52 = vsel %vm12685_vm3, %v2490_v62, %v9224_v26  ;;  %v2087_v62 = vsel %vm12690_vm15, %v12428_v24, %v12415_v22  ;;  %12691 = vst [vmem:[#allocation20_spill] sm:$0xff] %v9289_v20  ;;  %v9339_v37 = vrot.slane %v9289_v20, 4  ;;  %v2607_v24 = vrot.slane %v9291_v3, 5 }
 0x2b3   :  { %12686 = vst [vmem:[#allocation34_spill] sm:$0xff] %v9238_v52  ;;  %v9242_v27 = vpop.permute.xlu0 %6597  ;;  %6907 = vrot.lane.b32.xlu1 %v9153_v57, %s7227_s24  ;;  %vm12700_vm3 = vcmask 359424   ;;  %vm12712_vm15 = vcmask 826368  }
 0x2b4   :  { %v12414_v1 = vunpack.i.h.bf16 %v9242_v27  ;;  %v12424_v60 = vunpack.i.l.bf16 %v9242_v27 }
 0x2b5   :  { %v9256_v9 = vpop.permute.xlu1 %6637  ;;  %6852 = vrot.lane.b32.xlu0 %v6901_v49, %s7217_s13 }
 0x2b6   :  { %v2173_v59 = vsel %vm12688_vm6, %v12424_v60, %v12414_v1  ;;  %v2512_v1 = vsel %vm830_vm4, %v9224_v26, %v2033_v32  ;;  %v12437_v60 = vunpack.i.l.bf16 %v9228_v46  ;;  %vm12706_vm6 = vcmask 793600  }
 0x2b7   :  { %v2534_v21 = vsel %vm843_vm5, %v9264_v50, %v2173_v59  ;;  %v9278_v49 = vpop.permute.xlu0 %6602  ;;  %6917 = vrot.lane.b32.xlu1 %v9134_v42, %s7229_s26  ;;  %v9308_v23 = vsel %vm869_vm11, %v2512_v1, %v2087_v62  ;;  %v6640_v63 = vunpack.i.h.bf16 %v9256_v9 }
 0x2b8   :  { %v12417_v19 = vunpack.i.h.bf16 %v9278_v49  ;;  %v12423_v12 = vunpack.i.l.bf16 %v9278_v49  ;;  %12694 = vst [vmem:[#allocation26_spill] sm:$0xff] %v9308_v23 }
 0x2b9   :  { %v9293_v59 = vpop.permute.xlu1 %6707  ;;  %6857 = vrot.lane.b32.xlu0 %v6891_v18, %s7216_s12 }
 0x2ba   :  { %v2216_v42 = vsel %vm12693_vm0, %v12423_v12, %v12417_v19  ;;  %v12436_v12 = vunpack.i.h.bf16 %v9228_v46  ;;  %vm12714_vm0 = vcmask 1022976  }
 0x2bb   :  { %v9303_v22 = vpop.permute.xlu0 %6607  ;;  %6922 = vrot.lane.b32.xlu1 %v9141_v56, %s7230_s27  ;;  %v9311_v2 = vsel %vm882_vm12, %v2534_v21, %v2216_v42  ;;  %v6926_v56 = vpack.i.bf16 %v9291_v3, %v9289_v20 }
 0x2bc   :  { %12695 = vst [vmem:[#allocation25_spill] sm:$0xff] %v9311_v2  ;;  %v12420_v18 = vunpack.i.h.bf16 %v9303_v22  ;;  %v12421_v55 = vunpack.i.l.bf16 %v9303_v22  ;;  %v2345_v51 = vsel %vm697_vm7, %v12437_v60, %v12436_v12  ;;  %v2625_v60 = vrot.slane %v9291_v3, 4 }
 0x2bd   :  { %v9317_v43 = vpop.permute.xlu1 %6722  ;;  %6862 = vrot.lane.b32.xlu0 %v9153_v57, %s7218_s14 }
 0x2be   :  { %v2259_v1 = vsel %vm601_vm8, %v12421_v55, %v12420_v18  ;;  %v12433_v18 = vrot.slane %v9289_v20, 7  ;;  %v6725_v38 = vunpack.i.h.bf16 %v9317_v43 }
 0x2bf   :  { %v2556_v32 = vsel %vm817_vm2, %v2216_v42, %v2259_v1  ;;  %v9329_v21 = vpop.permute.xlu0 %6612  ;;  %6927 = vrot.lane.b32.xlu1 %v6926_v56, %s7222_s18 }
 0x2c0   :  { %12696 = vst [vmem:[#allocation23_spill] sm:$0xff] %v9329_v21  ;;  %v12425_v62 = vunpack.i.h.bf16 %v9329_v21  ;;  %v12426_v19 = vunpack.i.l.bf16 %v9329_v21 }
 0x2c1   :  { %v9334_v57 = vpop.permute.xlu1 %6727  ;;  %6867 = vrot.lane.b32.xlu0 %v9128_v14, %s7224_s21  ;;  %v2619_v14 = vrot.slane %v9291_v3, 7 }
 0x2c2   :  { %v2302_v42 = vsel %vm649_vm14, %v12426_v19, %v12425_v62 }
 0x2c3   :  { %v2567_v56 = vsel %vm856_vm9, %v2556_v32, %v2302_v42  ;;  %v9347_v1 = vpop.permute.xlu0 %6622  ;;  %1919 = vrot.lane.b32.xlu1 %v9339_v37, %s7225_s22  ;;  %v1736_v32 = vrot.slane %v9289_v20, 5  ;;  %v6936_v54 = vpack.i.bf16 %v2619_v14, %v12433_v18  ;;  %v2613_v14 = vrot.slane %v9291_v3, 2  ;;  %s7240_s22 = smov 64  }
 0x2c4   :  { %12697 = vst [vmem:[#allocation29_spill] sm:$0xff] %v9347_v1  ;;  %v12431_v55 = vunpack.i.h.bf16 %v9347_v1  ;;  %v12432_v16 = vunpack.i.l.bf16 %v9347_v1 }
 0x2c5   :  { %v9357_v62 = vpop.permute.xlu1 %6732  ;;  %6912 = vrot.lane.b32.xlu0 %v9122_v31, %s7228_s25  ;;  %v6941_v12 = vpack.i.bf16 %v2607_v24, %v1736_v32  ;;  %v2673_v24 = vrot.slane %v9291_v3, 1 }
 0x2c6   :  { %v2388_v42 = vsel %vm12698_vm1, %v12432_v16, %v12431_v55  ;;  %v1790_v16 = vrot.slane %v9289_v20, 2  ;;  %vm12718_vm1 = vcmask 1031168  }
 0x2c7   :  { %v9367_v19 = vpop.permute.xlu0 %6627  ;;  %2167 = vrot.lane.b32.xlu1 %v1736_v32, %s7223_s0  ;;  %v2589_v18 = vsel %vm830_vm4, %v2345_v51, %v2388_v42  ;;  %v6724_v42 = vunpack.i.l.bf16 %v9317_v43  ;;  %v6730_v43 = vunpack.i.h.bf16 %v9334_v57  ;;  %s7239_s0 = smov 40  }
 0x2c8   :  { %12699 = vst [vmem:[#allocation27_spill] sm:$0xff] %v9367_v19  ;;  %v12440_v48 = vunpack.i.h.bf16 %v9367_v19  ;;  %v12441_v31 = vunpack.i.l.bf16 %v9367_v19 }
 0x2c9   :  { %v9380_v55 = vpop.permute.xlu1 %6737  ;;  %6937 = vrot.lane.b32.xlu0 %v6936_v54, %s7217_s13  ;;  %v9396_v54 = vsel %vm12701_vm10, %v2567_v56, %v2345_v51  ;;  %v6946_v51 = vpack.i.bf16 %v2625_v60, %v9339_v37  ;;  %v6639_v56 = vunpack.i.l.bf16 %v9256_v9  ;;  %vm12722_vm10 = vmmov %vm12706_vm6 }
 0x2ca   :  { %v2435_v6 = vsel %vm12700_vm3, %v12441_v31, %v12440_v48  ;;  %12702 = vst [vmem:[#allocation24_spill] sm:$0xff] %v9396_v54  ;;  %v6931_v48 = vpack.i.bf16 %v2613_v14, %v1790_v16  ;;  %v12442_v31 = vrot.slane %v9289_v20, 1  ;;  %vm12721_vm3 = vcmask 809984  }
 0x2cb   :  { %v9391_v34 = vpop.permute.xlu0 %6632  ;;  %2210 = vrot.lane.b32.xlu1 %v1790_v16, %s7224_s21  ;;  %v9399_v7 = vsel %vm869_vm11, %v2589_v18, %v2435_v6  ;;  %v2679_v16 = vrot.slane %v9291_v3, 6  ;;  %s7237_s21 = smov 112  }
 0x2cc   :  { %12703 = vst [vmem:[#allocation30_spill] sm:$0xff] %v9399_v7  ;;  %v6956_v18 = vpack.i.bf16 %v2673_v24, %v12442_v31  ;;  %v6729_v31 = vunpack.i.l.bf16 %v9334_v57  ;;  %v12708_v7 = vunpack.i.l.bf16 %v9357_v62  ;;  %v6634_v15 = vunpack.i.l.bf16 %v9391_v34 }
 0x2cd   :  { %v9403_v33 = vpop.permute.xlu1 %6742  ;;  %6942 = vrot.lane.b32.xlu0 %v6941_v12, %s7216_s12 }
 0x2cf   :  { %v9408_v32 = vpop.permute.xlu0 %6642  ;;  %6932 = vrot.lane.b32.xlu1 %v6931_v48, %s7215_s11  ;;  %v12705_v48 = vunpack.i.l.bf16 %v9145_v39 }
 0x2d1   :  { %v9412_v6 = vpop.permute.xlu1 %6747  ;;  %6947 = vrot.lane.b32.xlu0 %v6946_v51, %s7218_s14  ;;  %v9438_v60 = vsel %vm12706_vm6, %v6639_v56, %v12705_v48  ;;  %v12707_v51 = vunpack.i.l.bf16 %v9165_v17  ;;  %v12713_v48 = vunpack.i.l.bf16 %v9149_v11 }
 0x2d3   :  { %6957 = vrot.lane.b32.xlu1 %v6956_v18, %s7219_s15  ;;  %v9421_v14 = vpop.permute.xlu0 %6647  ;;  %v12704_v18 = vrot.slane %v9289_v20, 6  ;;  %v1762_v2 = vsel %vm12709_vm13, %v12708_v7, %v12707_v51  ;;  %v1870_v29 = vsel %vm12714_vm0, %v6729_v31, %v12713_v48  ;;  %v12716_v7 = vrot.slane %v9291_v3, 3  ;;  %vm12724_vm13 = vmmov %vm12706_vm6 }
 0x2d4   :  { %v6635_v48 = vunpack.i.h.bf16 %v9391_v34  ;;  %v2456_v9 = vsel %vm843_vm5, %v8912_v8, %v1762_v2  ;;  %v6740_v34 = vunpack.i.h.bf16 %v9380_v55  ;;  %v6650_v3 = vunpack.i.h.bf16 %v9421_v14  ;;  %vm12727_vm0 = vmmov %vm12718_vm1 }
 0x2d5   :  { %v9429_v12 = vpop.permute.xlu1 %6752  ;;  %6952 = vrot.lane.b32.xlu0 %v9024_v0, %s7226_s23  ;;  %v6961_v54 = vpack.i.bf16 %v2679_v16, %v12704_v18  ;;  %v12710_v0 = vunpack.i.h.bf16 %v9161_v5  ;;  %v12711_v16 = vunpack.i.l.bf16 %v9161_v5  ;;  %v12719_v8 = vunpack.i.l.bf16 %v9180_v13 }
 0x2d6   :  { %v12720_v2 = vunpack.i.l.bf16 %v9412_v6  ;;  %v9499_v46 = vsel %vm12722_vm10, %v6635_v48, %v6639_v56  ;;  %v12723_v13 = vrot.slane %v9289_v20, 7  ;;  %v12725_v56 = vunpack.i.l.bf16 %v9172_v4 }
 0x2d7   :  { %6962 = vrot.lane.b32.xlu1 %v6961_v54, %s7220_s16  ;;  %v6653_v24 = vpop.permute.xlu0 %6652  ;;  %v9452_v18 = vsel %vm12712_vm15, %v12711_v16, %v12710_v0  ;;  %v12715_v54 = vrot.slane %v9289_v20, 3  ;;  %v6991_v16 = vpack.i.bf16 %v9264_v50, %v9438_v60  ;;  %v6744_v50 = vunpack.i.l.bf16 %v9403_v33  ;;  %s7238_s16 = smov 24  }
 0x2d8   :  { %v2032_v57 = vsel %vm12721_vm3, %v12720_v2, %v12719_v8  ;;  %v6655_v17 = vunpack.i.h.bf16 %v6653_v24  ;;  %v6654_v11 = vunpack.i.l.bf16 %v6653_v24  ;;  %v9508_v8 = vsel %vm12724_vm13, %v6634_v15, %v6635_v48  ;;  %vm12732_vm13 = vmmov %vm12727_vm0 }
 0x2d9   :  { %v9457_v52 = vpop.permute.xlu1 %6762  ;;  %6972 = vrot.lane.b32.xlu0 %v9008_v36, %s7227_s24  ;;  %v6966_v51 = vpack.i.bf16 %v12716_v7, %v12715_v54  ;;  %v1816_v54 = vsel %vm12718_vm1, %v6724_v42, %v12717_v47  ;;  %v6735_v7 = vunpack.i.h.bf16 %v9357_v62  ;;  %v6649_v47 = vunpack.i.l.bf16 %v9421_v14  ;;  %vm12728_vm1 = vmmov %vm12727_vm0 }
 0x2da   :  { %v9482_v0 = vsel %vm817_vm2, %v1816_v54, %v1870_v29  ;;  %v9496_v29 = vsel %vm882_vm12, %v2456_v9, %v1816_v54  ;;  %v6745_v24 = vunpack.i.h.bf16 %v9403_v33  ;;  %v6750_v54 = vunpack.i.h.bf16 %v9412_v6 }
 0x2db   :  { %6967 = vrot.lane.b32.xlu1 %v6966_v51, %s7221_s17  ;;  %v6658_v36 = vpop.permute.xlu0 %6657  ;;  %v9502_v51 = vsel %vm12706_vm6, %v6640_v63, %v6634_v15  ;;  %vm12726_vm15 = vcmask 818176   ;;  %v9518_v63 = vsel %vm12727_vm0, %v6650_v3, %v6724_v42  ;;  %vm12729_vm3 = vcmask 1022976  }
 0x2dc   :  { %v6660_v14 = vunpack.i.h.bf16 %v6658_v36  ;;  %v6659_v25 = vunpack.i.l.bf16 %v6658_v36  ;;  %v9515_v9 = vsel %vm12726_vm15, %v6744_v50, %v12725_v56  ;;  %v1813_v36 = vsel %vm12728_vm1, %v6725_v38, %v6649_v47  ;;  %vm12730_vm10 = vmmov %vm12729_vm3 }
 0x2dd   :  { %v9488_v58 = vpop.permute.xlu1 %6772  ;;  %v9526_v15 = vsel %vm830_vm4, %v9515_v9, %v2032_v57  ;;  %v1869_v33 = vsel %vm12729_vm3, %v6655_v17, %v6729_v31  ;;  %v1867_v48 = vsel %vm12730_vm10, %v6730_v43, %v6654_v11  ;;  %vm12731_vm6 = vmmov %vm12729_vm3  ;;  %v9532_v42 = vsel %vm12732_vm13, %v6649_v47, %v6650_v3 }
 0x2de   :  { %v1868_v56 = vsel %vm12731_vm6, %v6654_v11, %v6655_v17  ;;  %vm12733_vm15 = vcmask 1039360   ;;  %v6755_v57 = vunpack.i.h.bf16 %v9429_v12  ;;  %v12735_v31 = vunpack.i.l.bf16 %v9357_v62 }
 0x2df   :  { %2253 = vrot.lane.b32.xlu1 %v12723_v13, %s7226_s23  ;;  %v6663_v61 = vpop.permute.xlu0 %6662  ;;  %v6754_v13 = vunpack.i.l.bf16 %v9429_v12  ;;  %v1759_v38 = vsel %vm12733_vm15, %v6735_v7, %v6659_v25  ;;  %vm12734_vm0 = vmmov %vm12733_vm15  ;;  %v9542_v17 = vsel %vm817_vm2, %v1813_v36, %v1867_v48  ;;  %v9546_v3 = vsel %vm817_vm2, %v9532_v42, %v1868_v56  ;;  %s7242_s23 = smov 104  }
 0x2e0   :  { %v6665_v4 = vunpack.i.h.bf16 %v6663_v61  ;;  %v1760_v19 = vsel %vm12734_vm0, %v6659_v25, %v6660_v14  ;;  %v6664_v20 = vunpack.i.l.bf16 %v6663_v61  ;;  %vm12736_vm1 = vmmov %vm12734_vm0  ;;  %v9550_v25 = vsel %vm817_vm2, %v9518_v63, %v1869_v33 }
 0x2e1   :  { %v9522_v2 = vpop.permute.xlu1 %6777  ;;  %v1761_v43 = vsel %vm12736_vm1, %v6660_v14, %v12735_v31  ;;  %v12737_v12 = vunpack.i.l.bf16 %v9206_v44  ;;  %vm12738_vm3 = vcmask 801792   ;;  %vm12740_vm10 = vcmask 826368  }
 0x2e2   :  { %v2454_v14 = vsel %vm843_vm5, %v8960_v45, %v1760_v19  ;;  %vm12741_vm6 = vmmov %vm12740_vm10  ;;  %vm12743_vm15 = vcmask 818176   ;;  %vm12746_vm1 = vcmask 1014784  }
 0x2e3   :  { %6992 = vrot.lane.b32.xlu1 %v6991_v16, %s7231_s28  ;;  %v6668_v1 = vpop.permute.xlu0 %6667  ;;  %v9555_v62 = vsel %vm12738_vm3, %v6754_v13, %v12737_v12  ;;  %v12739_v16 = vunpack.i.l.bf16 %v9380_v55  ;;  %v2650_v33 = vsel %vm12741_vm6, %v6740_v34, %v6664_v20  ;;  %vm12742_vm13 = vmmov %vm12741_vm6  ;;  %v9571_v12 = vsel %vm843_vm5, %v8962_v10, %v1761_v43 }
 0x2e4   :  { %v6670_v41 = vunpack.i.h.bf16 %v6668_v1  ;;  %v6669_v11 = vunpack.i.l.bf16 %v6668_v1  ;;  %v2453_v1 = vsel %vm843_vm5, %v8914_v30, %v1759_v38  ;;  %v2651_v48 = vsel %vm12742_vm13, %v6664_v20, %v6665_v4  ;;  %vm12744_vm0 = vmmov %vm12743_vm15 }
 0x2e5   :  { %v6793_v61 = vpop.permute.xlu1 %6792  ;;  %v2652_v7 = vsel %vm12740_vm10, %v6665_v4, %v12739_v16  ;;  %v12745_v38 = vunpack.i.l.bf16 %v9195_v35  ;;  %vm12747_vm3 = vmmov %vm12744_vm0  ;;  %v9585_v10 = vsel %vm882_vm12, %v2453_v1, %v1813_v36  ;;  %v2700_v34 = vsel %vm856_vm9, %v9546_v3, %v2651_v48 }
 0x2e6   :  { %v6795_v47 = vunpack.i.h.bf16 %v6793_v61  ;;  %v9567_v56 = vsel %vm12743_vm15, %v6670_v41, %v6744_v50  ;;  %v1976_v30 = vsel %vm12744_vm0, %v6669_v11, %v6670_v41  ;;  %v2701_v19 = vsel %vm856_vm9, %v9550_v25, %v2652_v7 }
 0x2e7   :  { %v6673_v31 = vpop.permute.xlu0 %6672  ;;  %v1975_v4 = vsel %vm12747_vm3, %v6745_v24, %v6669_v11  ;;  %v2699_v41 = vsel %vm856_vm9, %v9542_v17, %v2650_v33  ;;  %vm12748_vm10 = vcmask 809984   ;;  %v12750_v24 = vunpack.i.l.bf16 %v9412_v6 }
 0x2e8   :  { %v1924_v16 = vsel %vm12746_vm1, %v6795_v47, %v12745_v38  ;;  %v6675_v44 = vunpack.i.h.bf16 %v6673_v31  ;;  %v6674_v45 = vunpack.i.l.bf16 %v6673_v31  ;;  %vm12749_vm6 = vmmov %vm12748_vm10  ;;  %v6794_v31 = vunpack.i.l.bf16 %v6793_v61 }
 0x2e9   :  { %v9580_v20 = vpop.permute.xlu1 %6797  ;;  %v2489_v50 = vsel %vm856_vm9, %v9482_v0, %v1924_v16  ;;  %vm12751_vm13 = vmmov %vm12749_vm6  ;;  %vm12752_vm15 = vcmask 1046528  }
 0x2ea   :  { %v2029_v43 = vsel %vm12748_vm10, %v6750_v54, %v6674_v45  ;;  %v2030_v7 = vsel %vm12749_vm6, %v6674_v45, %v6675_v44  ;;  %v2031_v11 = vsel %vm12751_vm13, %v6675_v44, %v12750_v24  ;;  %v2712_v16 = vsel %vm12752_vm15, %v2700_v34, %v1976_v30  ;;  %vm12753_vm0 = vmmov %vm12752_vm15 }
 0x2eb   :  { %v6678_v38 = vpop.permute.xlu0 %6677  ;;  %v2713_v36 = vsel %vm12753_vm0, %v2701_v19, %v9567_v56  ;;  %vm12754_vm1 = vmmov %vm12753_vm0  ;;  %v2508_v45 = vsel %vm830_vm4, %v1975_v4, %v2029_v43  ;;  %v2509_v61 = vsel %vm830_vm4, %v1976_v30, %v2030_v7  ;;  %v6800_v6 = vunpack.i.h.bf16 %v9580_v20 }
 0x2ec   :  { %v6680_v1 = vunpack.i.h.bf16 %v6678_v38  ;;  %v6679_v33 = vunpack.i.l.bf16 %v6678_v38  ;;  %v2500_v48 = vsel %vm12754_vm1, %v2489_v50, %v9515_v9  ;;  %vm12755_vm3 = vmmov %vm12753_vm0  ;;  %v2510_v19 = vsel %vm830_vm4, %v9567_v56, %v2031_v11 }
 0x2ed   :  { %v2711_v54 = vsel %vm12755_vm3, %v2699_v41, %v1975_v4  ;;  %v9605_v44 = vpop.permute.xlu1 %6802  ;;  %v5495_v34 = vpack.c.bf16 %v2500_v48, %v9496_v29  ;;  %vm12756_vm10 = vcmask 801792   ;;  %vm12760_vm15 = vcmask 785408  }
 0x2ee   :  { %v2085_v24 = vsel %vm12756_vm10, %v6680_v1, %v6754_v13  ;;  %vm12757_vm6 = vmmov %vm12756_vm10  ;;  %v6805_v41 = vunpack.i.h.bf16 %v9605_v44  ;;  %vm12761_vm0 = vcmask 1014784   ;;  %vm12765_vm10 = vcmask 588800  }
 0x2ef   :  { %v2083_v38 = vsel %vm12757_vm6, %v6755_v57, %v6679_v33  ;;  %vm12758_vm13 = vmmov %vm12757_vm6  ;;  %5496 = vmatprep.subr.bf16.mxu1 %v5495_v34  ;;  %v6683_v43 = vpop.permute.xlu0 %6682  ;;  %v9618_v35 = vsel %vm869_vm11, %v2510_v19, %v2085_v24  ;;  %v7016_v34 = vpack.i.bf16 %v2713_v36, %v2712_v16  ;;  %v6981_v19 = vpack.i.bf16 %v2711_v54, %v9585_v10 }
 0x2f0   :  { %v2084_v50 = vsel %vm12758_vm13, %v6679_v33, %v6680_v1  ;;  %v9621_v48 = vsel %vm869_vm11, %v2508_v45, %v2083_v38  ;;  %v6685_v11 = vunpack.i.h.bf16 %v6683_v43  ;;  %v6684_v21 = vunpack.i.l.bf16 %v6683_v43  ;;  %vm12762_vm1 = vmmov %vm12761_vm0 }
 0x2f1   :  { %v9615_v7 = vsel %vm869_vm11, %v2509_v61, %v2084_v50  ;;  %v6976_v57 = vpack.i.bf16 %v9502_v51, %v9621_v48  ;;  %v12759_v1 = vunpack.i.l.bf16 %v9242_v27  ;;  %v9630_v61 = vpop.permute.xlu1 %6807  ;;  %v9635_v45 = vsel %vm882_vm12, %v2454_v14, %v9532_v42  ;;  %vm12763_vm3 = vmmov %vm12761_vm0 }
 0x2f2   :  { %v7001_v13 = vpack.i.bf16 %v9618_v35, %v9615_v7  ;;  %v1923_v24 = vsel %vm12761_vm0, %v6685_v11, %v6795_v47  ;;  %v1921_v38 = vsel %vm12762_vm1, %v6794_v31, %v6684_v21  ;;  %v1922_v50 = vsel %vm12763_vm3, %v6684_v21, %v6685_v11 }
 0x2f3   :  { %v2172_v33 = vsel %vm12760_vm15, %v6800_v6, %v12759_v1  ;;  %6977 = vrot.lane.b32.xlu0 %v6976_v57, %s7231_s28  ;;  %v2488_v43 = vsel %vm856_vm9, %v9550_v25, %v1923_v24  ;;  %v2486_v16 = vsel %vm856_vm9, %v9542_v17, %v1921_v38  ;;  %v6688_v36 = vpop.permute.xlu0 %6687  ;;  %v2487_v42 = vsel %vm856_vm9, %v9546_v3, %v1922_v50 }
 0x2f4   :  { %7002 = vrot.lane.b32.xlu1 %v7001_v13, %s7231_s28  ;;  %v12764_v47 = vunpack.i.l.bf16 %v9278_v49  ;;  %v6799_v21 = vunpack.i.l.bf16 %v9580_v20  ;;  %v6690_v31 = vunpack.i.h.bf16 %v6688_v36  ;;  %v6689_v54 = vunpack.i.l.bf16 %v6688_v36 }
 0x2f5   :  { %vm12766_vm6 = vcmask 1046528   ;;  %v9655_v13 = vpop.permute.xlu1 %6812  ;;  %v2533_v57 = vsel %vm843_vm5, %v9438_v60, %v2172_v33  ;;  %vm12769_vm0 = vcmask 785408   ;;  %vm12772_vm1 = vcmask 826368  }
 0x2f6   :  { %v9651_v14 = vsel %vm12765_vm10, %v6805_v41, %v12764_v47  ;;  %v2498_v11 = vsel %vm12766_vm6, %v2487_v42, %v1976_v30  ;;  %vm12767_vm13 = vmmov %vm12766_vm6  ;;  %v2171_v1 = vsel %vm12769_vm0, %v6690_v31, %v6800_v6  ;;  %v2466_v30 = vsel %vm882_vm12, %v9571_v12, %v9518_v63 }
 0x2f7   :  { %v5473_v25 = vpack.c.bf16 %v2498_v11, %v9635_v45  ;;  %v2499_v17 = vsel %vm12767_vm13, %v2488_v43, %v9567_v56  ;;  %vm12768_vm15 = vmmov %vm12766_vm6  ;;  %6982 = vrot.lane.b32.xlu0 %v6981_v19, %s7231_s28  ;;  %v2544_v20 = vsel %vm882_vm12, %v2533_v57, %v9651_v14  ;;  %v12770_v56 = vunpack.i.l.bf16 %v9161_v5  ;;  %v6693_v6 = vpop.permute.xlu0 %6692 }
 0x2f8   :  { %v2497_v3 = vsel %vm12768_vm15, %v2486_v16, %v1975_v4  ;;  %7017 = vrot.lane.b32.xlu1 %v7016_v34, %s7231_s28  ;;  %v12771_v4 = vunpack.i.l.bf16 %v9380_v55  ;;  %vm12773_vm3 = vmmov %vm12769_vm0  ;;  %v5497_v33 = vpack.c.bf16 %v2499_v17, %v2466_v30  ;;  %v9680_v34 = vsel %vm869_vm11, %v9526_v15, %v9555_v62 }
 0x2f9   :  { %v2169_v60 = vsel %vm12773_vm3, %v6799_v21, %v6689_v54  ;;  %5474 = vmatprep.subr.bf16.mxu0 %v5473_v25  ;;  %v6804_v63 = vunpack.i.l.bf16 %v9605_v44  ;;  %v6695_v12 = vunpack.i.h.bf16 %v6693_v6  ;;  %v6694_v19 = vunpack.i.l.bf16 %v6693_v6  ;;  %vm12774_vm10 = vmmov %vm12769_vm0  ;;  %v9688_v16 = vpop.permute.xlu1 %6822 }
 0x2fa   :  { %v2653_v24 = vsel %vm12772_vm1, %v12771_v4, %v12770_v56  ;;  %v5475_v38 = vpack.c.bf16 %v2497_v3, %v9585_v10  ;;  %v2532_v55 = vsel %vm843_vm5, %v9499_v46, %v2171_v1  ;;  %v2170_v50 = vsel %vm12774_vm10, %v6689_v54, %v6690_v31  ;;  %5498 = vmatpush1.bf16.msra.mxu1 %v5497_v33 }
 0x2fb   :  { %v5499_v43 = vpack.c.bf16 %v2544_v20, %v9680_v34  ;;  %v6986_v15 = vpack.i.bf16 %v9499_v46, %v9508_v8  ;;  %v2530_v62 = vsel %vm843_vm5, %v9502_v51, %v2169_v60  ;;  %vm12775_vm6 = vcmask 588800   ;;  %v9703_v36 = vpop.permute.xlu0 %6697 }
 0x2fc   :  { %v9695_v44 = vsel %vm12775_vm6, %v6695_v12, %v6805_v41  ;;  %vm12776_vm13 = vmmov %vm12775_vm6  ;;  %5476 = vmatpush1.bf16.msra.mxu0 %v5475_v38  ;;  %7022 = vrot.lane.b32.xlu1 %v9027_v53, %s7228_s25  ;;  %v2531_v47 = vsel %vm843_vm5, %v9508_v8, %v2170_v50  ;;  %v2702_v53 = vsel %vm856_vm9, %v9482_v0, %v2653_v24  ;;  %vm12778_vm0 = vcmask 1046528  }
 0x2fd   :  { %v9698_v10 = vsel %vm12776_vm13, %v6804_v63, %v6694_v19  ;;  %5500 = vmatprep.subr.bf16.mxu1 %v5499_v43  ;;  %6987 = vrot.lane.b32.xlu0 %v6986_v15, %s7231_s28  ;;  %v2543_v46 = vsel %vm882_vm12, %v2532_v55, %v9695_v44  ;;  %vm12777_vm15 = vmmov %vm12775_vm6  ;;  %v6996_v21 = vpack.i.bf16 %v2466_v30, %v9635_v45  ;;  %v9718_v31 = vpop.permute.xlu1 %6827  ;;  %v6710_v17 = vunpack.i.h.bf16 %v9293_v59 }
 0x2fe   :  { %v9708_v51 = vsel %vm12777_vm15, %v6694_v19, %v6695_v12  ;;  %v2541_v41 = vsel %vm882_vm12, %v2530_v62, %v9698_v10  ;;  %v5501_v42 = vpack.c.bf16 %v2543_v46, %v9618_v35  ;;  %v2714_v11 = vsel %vm12778_vm0, %v2702_v53, %v9515_v9  ;;  %vm12779_vm1 = vmmov %vm12778_vm0 }
 0x2ff   :  { %v2542_v54 = vsel %vm882_vm12, %v2531_v47, %v9708_v51  ;;  %v2703_v35 = vsel %vm856_vm9, %v9212_v28, %v9452_v18  ;;  %v5479_v0 = vpack.c.bf16 %v2541_v41, %v9621_v48  ;;  %v9732_v45 = vpop.permute.xlu0 %6702  ;;  %v12483_v28 = vunpack.i.l.bf16 %v9293_v59 }
 0x300   :  { %2296 = vrot.lane.b32.xlu1 %v9339_v37, %s7227_s24  ;;  %5502 = vmatpush1.bf16.msra.mxu1 %v5501_v42  ;;  %v5477_v8 = vpack.c.bf16 %v2542_v54, %v9615_v7  ;;  %v2715_v25 = vsel %vm12779_vm1, %v2703_v35, %v9224_v26  ;;  %v7006_v37 = vpack.i.bf16 %v9234_v40, %v9496_v29  ;;  %v12477_v48 = vunpack.i.h.bf16 %v9408_v32  ;;  %s7243_s24 = smov 120  }
 0x301   :  { %6997 = vrot.lane.b32.xlu0 %v6996_v21, %s7231_s28  ;;  %v7031_v9 = vpack.i.bf16 %v2715_v25, %v2714_v11  ;;  %v9740_v18 = vpop.permute.xlu1 %6842  ;;  %v6700_v7 = vunpack.i.h.bf16 %v9703_v36  ;;  %v6699_v3 = vunpack.i.l.bf16 %v9703_v36  ;;  %v6644_v57 = vunpack.i.l.bf16 %v9408_v32 }
 0x302   :  { %5478 = vmatprep.subr.bf16.mxu0 %v5477_v8  ;;  %v6845_v26 = vunpack.i.h.bf16 %v9740_v18  ;;  %v6705_v1 = vunpack.i.h.bf16 %v9732_v45  ;;  %v6704_v29 = vunpack.i.l.bf16 %v9732_v45  ;;  %v6844_v30 = vunpack.i.l.bf16 %v9740_v18 }
 0x303   :  { %5480 = vmatpush1.bf16.msra.mxu0 %v5479_v0  ;;  %v9752_v20 = vpop.permute.xlu0 %6712  ;;  %v12476_v56 = vunpack.i.h.bf16 %v9457_v52  ;;  %v12479_v4 = vunpack.i.l.bf16 %v9457_v52  ;;  %v6810_v24 = vunpack.i.h.bf16 %v9630_v61  ;;  %v7011_v60 = vpack.i.bf16 %v9308_v23, %v9680_v34 }
 0x304   :  { %7032 = vrot.lane.b32.xlu1 %v7031_v9, %s7231_s28  ;;  %v12780_v6 = vunpack.i.h.bf16 %v9145_v39  ;;  %vm12781_vm3 = vcmask 793600   ;;  %v6715_v12 = vunpack.i.h.bf16 %v9752_v20  ;;  %v6714_v19 = vunpack.i.l.bf16 %v9752_v20 }
 0x305   :  { %7007 = vrot.lane.b32.xlu0 %v7006_v37, %s7231_s28  ;;  %vm12782_vm10 = vmmov %vm12781_vm3  ;;  %v9771_v38 = vpop.permute.xlu1 %6847  ;;  %v12475_v55 = vunpack.i.h.bf16 %v9488_v58  ;;  %v12478_v34 = vunpack.i.l.bf16 %v9488_v58  ;;  %v12474_v39 = vunpack.i.h.bf16 %v9522_v2  ;;  %v2256_v50 = vsel %vm601_vm8, %v6699_v3, %v6700_v7  ;;  %v12789_v37 = vld [vmem:[#allocation23_spill] sm:$0xff] }
 0x306   :  { %v9762_v33 = vsel %vm12781_vm3, %v12780_v6, %v6844_v30  ;;  %v9767_v63 = vsel %vm12782_vm10, %v6844_v30, %v6845_v26  ;;  %v6779_v43 = vunpack.i.l.bf16 %v9522_v2  ;;  %v6815_v15 = vunpack.i.h.bf16 %v9655_v13  ;;  %vm12783_vm6 = vmmov %vm12781_vm3 }
 0x307   :  { %v2299_v62 = vsel %vm649_vm14, %v6704_v29, %v6705_v1  ;;  %v9781_v36 = vpop.permute.xlu0 %6717  ;;  %v7036_v46 = vpack.i.bf16 %v9767_v63, %v9762_v33  ;;  %v9790_v41 = vsel %vm12783_vm6, %v6644_v57, %v12477_v48  ;;  %v2342_v53 = vsel %vm697_vm7, %v12483_v28, %v6710_v17  ;;  %v12794_v48 = vld [vmem:[#allocation29_spill] sm:$0xff] }
 0x308   :  { %v6720_v42 = vunpack.i.h.bf16 %v9781_v36  ;;  %v6719_v47 = vunpack.i.l.bf16 %v9781_v36  ;;  %v12784_v21 = vunpack.i.l.bf16 %v9303_v22  ;;  %v6809_v11 = vunpack.i.l.bf16 %v9630_v61 }
 0x309   :  { %7012 = vrot.lane.b32.xlu0 %v7011_v60, %s7231_s28  ;;  %vm12785_vm13 = vcmask 556032   ;;  %7037 = vrot.lane.b32.xlu1 %v7036_v46, %s7231_s28  ;;  %v9809_v0 = vpop.permute.xlu1 %6872  ;;  %v2553_v8 = vsel %vm817_vm2, %v9708_v51, %v2256_v50  ;;  %vm12786_vm15 = vcmask 1022976   ;;  %vm12787_vm0 = vcmask 826368   ;;  %v12791_v50 = vld [vmem:[#allocation6_spill] sm:$0xff] }
 0x30a   :  { %v2258_v54 = vsel %vm601_vm8, %v6810_v24, %v12784_v21  ;;  %v2385_v35 = vsel %vm12785_vm13, %v6714_v19, %v6715_v12  ;;  %v1875_v45 = vsel %vm12786_vm15, %v12479_v4, %v12476_v56  ;;  %v9823_v61 = vsel %vm12787_vm0, %v12478_v34, %v12475_v55  ;;  %vm12796_vm6 = vmmov %vm12785_vm13 }
 0x30b   :  { %v6825_v25 = vunpack.i.h.bf16 %v9688_v16  ;;  %v2564_v9 = vsel %vm856_vm9, %v2553_v8, %v2299_v62  ;;  %vm12788_vm1 = vcmask 818176   ;;  %v12790_v30 = vunpack.i.l.bf16 %v12789_v37  ;;  %v9840_v46 = vpop.permute.xlu0 %6757 }
 0x30c   :  { %v9832_v51 = vsel %vm12788_vm1, %v6779_v43, %v12474_v39  ;;  %v2255_v6 = vsel %vm601_vm8, %v6809_v11, %v6699_v3  ;;  %vm12792_vm3 = vcmask 359424   ;;  %v6814_v21 = vunpack.i.l.bf16 %v9655_v13  ;;  %vm12804_vm1 = vmmov %vm12796_vm6 }
 0x30d   :  { %v2301_v60 = vsel %vm649_vm14, %v6815_v15, %v12790_v30  ;;  %7027 = vrot.lane.b32.xlu0 %v12791_v50, %s7229_s26  ;;  %v2432_v62 = vsel %vm12792_vm3, %v6719_v47, %v6720_v42  ;;  %v6830_v8 = vunpack.i.h.bf16 %v9718_v31  ;;  %v2586_v39 = vsel %vm830_vm4, %v2342_v53, %v2385_v35  ;;  %v9854_v50 = vpop.permute.xlu1 %6877  ;;  %vm12802_vm15 = vmmov %vm12792_vm3 }
 0x30e   :  { %v2555_v3 = vsel %vm817_vm2, %v9651_v14, %v2258_v54  ;;  %v6824_v11 = vunpack.i.l.bf16 %v9688_v16  ;;  %v2257_v30 = vsel %vm601_vm8, %v6700_v7, %v6810_v24  ;;  %vm12793_vm10 = vcmask 1046528   ;;  %vm12805_vm3 = vmmov %vm12804_vm1 }
 0x30f   :  { %v2575_v55 = vsel %vm12793_vm10, %v2564_v9, %v2342_v53  ;;  %v2597_v56 = vsel %vm869_vm11, %v2586_v39, %v2432_v62  ;;  %v12795_v34 = vunpack.i.l.bf16 %v12794_v48  ;;  %v2552_v35 = vsel %vm817_vm2, %v9698_v10, %v2255_v6  ;;  %v12797_v53 = vld [vmem:[#allocation20_spill] sm:$0xff] }
 0x310   :  { %v5481_v4 = vpack.c.bf16 %v2597_v56, %v2575_v55  ;;  %v9866_v14 = vsel %vm856_vm9, %v2555_v3, %v2301_v60  ;;  %v2300_v16 = vsel %vm649_vm14, %v6705_v1, %v6815_v15  ;;  %v2298_v7 = vsel %vm649_vm14, %v6814_v21, %v6704_v29  ;;  %v12800_v29 = vld [vmem:[#allocation27_spill] sm:$0xff] }
 0x311   :  { %v9861_v13 = vsel %vm12796_vm6, %v6825_v25, %v12795_v34  ;;  %v12480_v24 = vunpack.i.h.bf16 %v9840_v46  ;;  %v6759_v39 = vunpack.i.l.bf16 %v9840_v46  ;;  %v12798_v54 = vrot.slane %v12797_v53, 1  ;;  %v9875_v34 = vpop.permute.xlu0 %6767  ;;  %v9896_v6 = vpop.permute.xlu1 %6882 }
 0x312   :  { %v2554_v10 = vsel %vm817_vm2, %v9695_v44, %v2257_v30  ;;  %v6829_v56 = vunpack.i.l.bf16 %v9718_v31  ;;  %vm12799_vm13 = vcmask 793600   ;;  %5482 = vmatprep.subr.bf16.mxu0 %v5481_v4  ;;  %v12801_v55 = vunpack.i.l.bf16 %v12800_v29 }
 0x313   :  { %2339 = vrot.lane.b32.xlu0 %v12798_v54, %s7228_s25  ;;  %v9885_v1 = vsel %vm12799_vm13, %v6845_v26, %v6644_v57  ;;  %v6850_v9 = vunpack.i.h.bf16 %v9771_v38  ;;  %v6849_v60 = vunpack.i.l.bf16 %v9771_v38  ;;  %v12481_v44 = vunpack.i.h.bf16 %v9875_v34  ;;  %v12806_v54 = vld [vmem:[#allocation14_spill] sm:$0xff]  ;;  %vm12810_vm13 = vmmov %vm12802_vm15  ;;  %s7244_s25 = smov 16  }
 0x314   :  { %v9890_v15 = vsel %vm12802_vm15, %v6830_v8, %v12801_v55  ;;  %v12482_v31 = vunpack.i.l.bf16 %v9875_v34  ;;  %v9899_v18 = vsel %vm856_vm9, %v2552_v35, %v2298_v7  ;;  %v9902_v26 = vsel %vm856_vm9, %v2554_v10, %v2300_v16 }
 0x315   :  { %v6880_v57 = vunpack.i.h.bf16 %v9854_v50  ;;  %v6879_v4 = vunpack.i.l.bf16 %v9854_v50  ;;  %v6874_v62 = vunpack.i.l.bf16 %v9809_v0  ;;  %vm12803_vm0 = vcmask 1031168   ;;  %v9912_v30 = vpop.permute.xlu0 %6782 }
 0x316   :  { %v1821_v38 = vsel %vm12803_vm0, %v6759_v39, %v12480_v24  ;;  %v12484_v21 = vunpack.i.h.bf16 %v9896_v6  ;;  %v6884_v3 = vunpack.i.l.bf16 %v9896_v6  ;;  %v2386_v35 = vsel %vm12804_vm1, %v6715_v12, %v6825_v25  ;;  %vm12808_vm10 = vmmov %vm12803_vm0 }
 0x317   :  { %v2384_v50 = vsel %vm12805_vm3, %v6824_v11, %v6714_v19  ;;  %v6875_v16 = vunpack.i.h.bf16 %v9809_v0  ;;  %v12807_v10 = vunpack.i.h.bf16 %v12806_v54  ;;  %vm12809_vm6 = vmmov %vm12803_vm0  ;;  %v9934_v12 = vsel %vm12810_vm13, %v6720_v42, %v6830_v8  ;;  %v9941_v19 = vpop.permute.xlu1 %6887  ;;  %v12813_v11 = vld [vmem:[#allocation15_spill] sm:$0xff]  ;;  %v12817_v8 = vld [vmem:[#allocation18_spill] sm:$0xff] }
 0x318   :  { %v9929_v24 = vsel %vm12809_vm6, %v6849_v60, %v6850_v9  ;;  %vm12811_vm15 = vcmask 1039360   ;;  %vm12812_vm0 = vmmov %vm12810_vm13  ;;  %v2483_v25 = vsel %vm817_vm2, %v1821_v38, %v1875_v45  ;;  %vm12815_vm1 = vcmask 809984  }
 0x319   :  { %v9926_v55 = vsel %vm12808_vm10, %v12807_v10, %v6849_v60  ;;  %v1767_v20 = vsel %vm12811_vm15, %v12482_v31, %v12481_v44  ;;  %v2431_v0 = vsel %vm12812_vm0, %v6829_v56, %v6719_v47  ;;  %v12814_v60 = vunpack.i.h.bf16 %v12813_v11  ;;  %vm12816_vm3 = vmmov %vm12815_vm1  ;;  %v12820_v44 = vld [vmem:[#allocation21_spill] sm:$0xff]  ;;  %v9963_v45 = vpop.permute.xlu0 %6787 }
 0x31a   :  { %v2035_v42 = vsel %vm12816_vm3, %v6879_v4, %v6880_v57  ;;  %v12818_v10 = vunpack.i.h.bf16 %v12817_v8  ;;  %vm12819_vm10 = vcmask 818176   ;;  %v12821_v31 = vunpack.i.h.bf16 %v12820_v44 }
 0x31b   :  { %v2034_v54 = vsel %vm12815_vm1, %v12814_v60, %v6879_v4  ;;  %vm12822_vm6 = vcmask 801792   ;;  %v6784_v47 = vunpack.i.l.bf16 %v9912_v30  ;;  %vm12824_vm15 = vmmov %vm12819_vm10  ;;  %vm12826_vm1 = vcmask 1031168   ;;  %v6893_v8 = vpop.permute.xlu1 %6892 }
 0x31c   :  { %v9954_v7 = vsel %vm12819_vm10, %v12818_v10, %v6874_v62  ;;  %v2088_v28 = vsel %vm12822_vm6, %v12821_v31, %v6884_v3  ;;  %vm12823_vm13 = vmmov %vm12822_vm6  ;;  %v9966_v56 = vsel %vm12824_vm15, %v6874_v62, %v6875_v16  ;;  %v9974_v44 = vsel %vm12826_vm1, %v6850_v9, %v6759_v39  ;;  %v12827_v31 = vld [vmem:[#allocation9_spill] sm:$0xff] }
 0x31d   :  { %v2089_v36 = vsel %vm12823_vm13, %v6884_v3, %v12484_v21  ;;  %vm12825_vm0 = vmmov %vm12819_vm10  ;;  %v2461_v11 = vsel %vm843_vm5, %v12827_v31, %v1767_v20  ;;  %v2513_v3 = vsel %vm830_vm4, %v9954_v7, %v2034_v54  ;;  %v2514_v60 = vsel %vm830_vm4, %v9966_v56, %v2035_v42  ;;  %v6818_v31 = vpop.permute.xlu0 %6817 }
 0x31e   :  { %v9971_v4 = vsel %vm12825_vm0, %v6875_v16, %v6779_v43  ;;  %v12485_v62 = vunpack.i.h.bf16 %v9912_v30  ;;  %v9985_v10 = vsel %vm856_vm9, %v2483_v25, %v9823_v61  ;;  %v6895_v43 = vunpack.i.h.bf16 %v6893_v8  ;;  %vm12833_vm13 = vmmov %vm12816_vm3 }
 0x31f   :  { %v6894_v16 = vunpack.i.l.bf16 %v6893_v8  ;;  %v9988_v39 = vsel %vm869_vm11, %v2513_v3, %v2088_v28  ;;  %v9991_v9 = vsel %vm869_vm11, %v2514_v60, %v2089_v36  ;;  %v9994_v20 = vsel %vm12816_vm3, %v6880_v57, %v6784_v47 }
 0x320   :  { %12828 = vst [vmem:[#allocation31_spill] sm:$0xff] %v9988_v39  ;;  %v9999_v21 = vsel %vm882_vm12, %v2461_v11, %v1821_v38  ;;  %v12830_v61 = vunpack.i.h.bf16 %v9242_v27  ;;  %vm12831_vm10 = vcmask 785408   ;;  %v6820_v3 = vunpack.i.h.bf16 %v6818_v31  ;;  %v10013_v38 = vpop.permute.xlu1 %6897 }
 0x321   :  { %12829 = vst [vmem:[#allocation28_spill] sm:$0xff] %v9999_v21  ;;  %vm12832_vm6 = vmmov %vm12831_vm10  ;;  %v6819_v36 = vunpack.i.l.bf16 %v6818_v31  ;;  %v10008_v57 = vsel %vm12833_vm13, %v6784_v47, %v12485_v62  ;;  %v12836_v47 = vunpack.i.l.bf16 %v9293_v59  ;;  %v12489_v60 = vunpack.i.h.bf16 %v10013_v38 }
 0x322   :  { %v2174_v8 = vsel %vm12831_vm10, %v12830_v61, %v6894_v16  ;;  %v2175_v28 = vsel %vm12832_vm6, %v6894_v16, %v6895_v43  ;;  %v2343_v11 = vsel %vm697_vm7, %v6710_v17, %v6820_v3  ;;  %v12834_v16 = vld [vmem:[#allocation13_spill] sm:$0xff]  ;;  %vm12837_vm15 = vcmask 1046528  }
 0x323   :  { %v2536_v42 = vsel %vm843_vm5, %v9767_v63, %v2175_v28  ;;  %v2535_v27 = vsel %vm843_vm5, %v9762_v33, %v2174_v8  ;;  %v12835_v31 = vunpack.i.l.bf16 %v12834_v16  ;;  %v2341_v62 = vsel %vm697_vm7, %v6819_v36, %v12836_v47  ;;  %v10030_v8 = vpop.permute.xlu0 %6832  ;;  %vm12838_vm0 = vmmov %vm12837_vm15 }
 0x324   :  { %v2585_v63 = vsel %vm830_vm4, %v2341_v62, %v2384_v50  ;;  %v2587_v28 = vsel %vm830_vm4, %v2343_v11, %v2386_v35  ;;  %v6899_v33 = vunpack.i.l.bf16 %v10013_v38  ;;  %v2574_v17 = vsel %vm12837_vm15, %v9899_v18, %v2341_v62  ;;  %v10045_v47 = vpop.permute.xlu1 %6902  ;;  %vm12846_vm13 = vmmov %vm12838_vm0 }
 0x325   :  { %v2344_v61 = vsel %vm697_vm7, %v6820_v3, %v12835_v31  ;;  %v6834_v3 = vunpack.i.l.bf16 %v10030_v8  ;;  %v2596_v59 = vsel %vm869_vm11, %v2585_v63, %v2431_v0  ;;  %v12839_v50 = vunpack.i.h.bf16 %v9278_v49 }
 0x326   :  { %v2577_v36 = vsel %vm12838_vm0, %v9866_v14, %v2344_v61  ;;  %vm12840_vm1 = vcmask 588800   ;;  %v5483_v18 = vpack.c.bf16 %v2596_v59, %v2574_v17  ;;  %v2588_v62 = vsel %vm830_vm4, %v2344_v61, %v9861_v13 }
 0x327   :  { %v2217_v35 = vsel %vm12840_vm1, %v12839_v50, %v6899_v33  ;;  %vm12841_vm3 = vmmov %vm12840_vm1  ;;  %v12842_v54 = vunpack.i.h.bf16 %v9941_v19  ;;  %vm12843_vm10 = vcmask 1014784   ;;  %v12844_v14 = vunpack.i.h.bf16 %v10030_v8  ;;  %v10062_v17 = vpop.permute.xlu0 %6837 }
 0x328   :  { %v2218_v31 = vsel %vm12841_vm3, %v6899_v33, %v12489_v60  ;;  %vm12845_vm6 = vmmov %vm12843_vm10  ;;  %v12487_v63 = vunpack.i.h.bf16 %v10045_v47  ;;  %v6904_v50 = vunpack.i.l.bf16 %v10045_v47  ;;  %5484 = vmatpush1.bf16.msra.mxu0 %v5483_v18  ;;  %v2599_v13 = vsel %vm869_vm11, %v2588_v62, %v9890_v15 }
 0x329   :  { %v10052_v0 = vsel %vm12843_vm10, %v12842_v54, %v6834_v3  ;;  %v1929_v49 = vsel %vm12845_vm6, %v6834_v3, %v12844_v14  ;;  %v2576_v54 = vsel %vm12846_vm13, %v9902_v26, %v2343_v11  ;;  %v2598_v61 = vsel %vm869_vm11, %v2587_v28, %v9934_v12  ;;  %vm12861_vm10 = vmmov %vm12845_vm6 }
 0x32a   :  { %v10060_v33 = vsel %vm856_vm9, %v2483_v25, %v1929_v49  ;;  %v12847_v3 = vunpack.i.h.bf16 %v9303_v22  ;;  %v2261_v25 = vsel %vm601_vm8, %v6904_v50, %v12487_v63  ;;  %v12488_v14 = vunpack.i.h.bf16 %v10062_v17  ;;  %v10080_v49 = vpop.permute.xlu1 %6907  ;;  %vm12866_vm13 = vmmov %vm12861_vm10 }
 0x32b   :  { %v6839_v18 = vunpack.i.l.bf16 %v10062_v17  ;;  %v2558_v62 = vsel %vm817_vm2, %v2218_v31, %v2261_v25  ;;  %v5503_v26 = vpack.c.bf16 %v2599_v13, %v2577_v36  ;;  %v5505_v11 = vpack.c.bf16 %v2598_v61, %v2576_v54  ;;  %v6853_v36 = vpop.permute.xlu0 %6852 }
 0x32c   :  { %v2260_v59 = vsel %vm601_vm8, %v12847_v3, %v6904_v50  ;;  %vm12848_vm15 = vcmask 785408   ;;  %v12486_v28 = vunpack.i.h.bf16 %v10080_v49  ;;  %v6909_v50 = vunpack.i.l.bf16 %v10080_v49 }
 0x32d   :  { %v2557_v15 = vsel %vm817_vm2, %v2217_v35, %v2260_v59  ;;  %v2176_v22 = vsel %vm12848_vm15, %v6895_v43, %v6839_v18  ;;  %vm12849_vm0 = vmmov %vm12848_vm15  ;;  %v12491_v3 = vunpack.i.h.bf16 %v9963_v45  ;;  %5504 = vmatprep.subr.bf16.mxu1 %v5503_v26  ;;  %v10094_v13 = vsel %vm882_vm12, %v2535_v27, %v2217_v35 }
 0x32e   :  { %v2177_v12 = vsel %vm12849_vm0, %v6839_v18, %v12488_v14  ;;  %12850 = vst [vmem:[#allocation32_spill] sm:$0xff] %v10094_v13  ;;  %v10098_v43 = vsel %vm843_vm5, %v9885_v1, %v2176_v22  ;;  %5506 = vmatpush1.bf16.msra.mxu1 %v5505_v11  ;;  %v12851_v54 = vunpack.i.h.bf16 %v12789_v37  ;;  %v2304_v25 = vsel %vm649_vm14, %v6909_v50, %v12486_v28  ;;  %v10109_v27 = vpop.permute.xlu1 %6917 }
 0x32f   :  { %v10091_v59 = vsel %vm843_vm5, %v9790_v41, %v2177_v12  ;;  %v6855_v18 = vunpack.i.h.bf16 %v6853_v36  ;;  %v6854_v12 = vunpack.i.l.bf16 %v6853_v36  ;;  %v10107_v26 = vsel %vm856_vm9, %v2558_v62, %v2304_v25 }
 0x330   :  { %v2303_v61 = vsel %vm649_vm14, %v12851_v54, %v6909_v50  ;;  %v10117_v37 = vsel %vm882_vm12, %v2536_v42, %v2218_v31  ;;  %v2515_v22 = vsel %vm830_vm4, %v9971_v4, %v9994_v20  ;;  %v12852_v50 = vunpack.i.l.bf16 %v9963_v45  ;;  %v12855_v54 = vld [vmem:[#allocation16_spill] sm:$0xff] }
 0x331   :  { %v10114_v11 = vsel %vm856_vm9, %v2557_v15, %v2303_v61  ;;  %v12853_v62 = vunpack.i.h.bf16 %v9896_v6  ;;  %vm12854_vm1 = vcmask 801792   ;;  %v12856_v25 = vunpack.i.h.bf16 %v12855_v54  ;;  %v12859_v20 = vld [vmem:[#allocation12_spill] sm:$0xff]  ;;  %v6858_v54 = vpop.permute.xlu0 %6857 }
 0x332   :  { %vm12857_vm3 = vcmask 1022976   ;;  %v7046_v15 = vpack.i.bf16 %v9991_v9, %v9988_v39  ;;  %v2516_v42 = vsel %vm830_vm4, %v9832_v51, %v10008_v57  ;;  %v12858_v31 = vunpack.i.l.bf16 %v9941_v19  ;;  %vm12868_vm15 = vmmov %vm12854_vm1 }
 0x333   :  { %v2090_v36 = vsel %vm12854_vm1, %v12853_v62, %v12852_v50  ;;  %v1872_v35 = vsel %vm12857_vm3, %v12856_v25, %v6854_v12  ;;  %v12860_v61 = vunpack.i.h.bf16 %v12859_v20  ;;  %v12862_v6 = vunpack.i.l.bf16 %v9457_v52  ;;  %vm12863_vm6 = vmmov %vm12857_vm3 }
 0x334   :  { %v2480_v62 = vsel %vm817_vm2, %v9926_v55, %v1872_v35  ;;  %v12864_v25 = vunpack.i.h.bf16 %v9941_v19  ;;  %v12865_v63 = vmov %v12858_v31  ;;  %v6860_v14 = vunpack.i.h.bf16 %v6858_v54  ;;  %vm12869_vm0 = vmmov %vm12857_vm3  ;;  %v10157_v35 = vpop.permute.xlu1 %6922 }
 0x335   :  { %v1926_v28 = vsel %vm12861_vm10, %v12860_v61, %v12858_v31  ;;  %v1874_v50 = vsel %vm12863_vm6, %v6855_v18, %v12862_v6  ;;  %v6859_v60 = vunpack.i.l.bf16 %v6858_v54  ;;  %v12867_v31 = vunpack.i.l.bf16 %v9963_v45 }
 0x336   :  { %v1927_v57 = vsel %vm12866_vm13, %v12865_v63, %v12864_v25  ;;  %v2491_v20 = vsel %vm856_vm9, %v2480_v62, %v1926_v28  ;;  %v1873_v6 = vsel %vm12869_vm0, %v6854_v12, %v6855_v18  ;;  %v10160_v23 = vsel %vm869_vm11, %v2515_v22, %v2090_v36  ;;  %v12871_v28 = vld [vmem:[#allocation17_spill] sm:$0xff] }
 0x337   :  { %v2091_v61 = vsel %vm12868_vm15, %v12867_v31, %v12491_v3  ;;  %vm12870_vm1 = vcmask 1046528   ;;  %v10168_v63 = vsel %vm817_vm2, %v9974_v44, %v1874_v50  ;;  %v12872_v54 = vunpack.i.h.bf16 %v12871_v28  ;;  %v12877_v36 = vld [vmem:[#allocation5_spill] sm:$0xff]  ;;  %v12878_v3 = vld [vmem:[#allocation8_spill] sm:$0xff]  ;;  %v12879_v50 = vld [vmem:[#allocation10_spill] sm:$0xff]  ;;  %v6863_v28 = vpop.permute.xlu0 %6862 }
 0x338   :  { %v10164_v19 = vsel %vm12870_vm1, %v2491_v20, %v9954_v7  ;;  %vm12873_vm3 = vcmask 1039360   ;;  %v12875_v18 = vunpack.i.l.bf16 %v9875_v34  ;;  %v12495_v22 = vunpack.i.h.bf16 %v10109_v27  ;;  %vm12884_vm0 = vmmov %vm12870_vm1 }
 0x339   :  { %v1764_v25 = vsel %vm12873_vm3, %v12872_v54, %v6859_v60  ;;  %vm12874_vm10 = vmmov %vm12873_vm3  ;;  %v6865_v40 = vunpack.i.h.bf16 %v6863_v28  ;;  %v6864_v54 = vunpack.i.l.bf16 %v6863_v28  ;;  %vm12881_vm13 = vcmask 826368  }
 0x33a   :  { %v1765_v31 = vsel %vm12874_vm10, %v6859_v60, %v6860_v14  ;;  %vm12876_vm6 = vmmov %vm12873_vm3  ;;  %v2458_v20 = vsel %vm843_vm5, %v12877_v36, %v1764_v25  ;;  %v2481_v25 = vsel %vm817_vm2, %v9929_v24, %v1873_v6  ;;  %v6924_v36 = vunpack.i.l.bf16 %v10157_v35 }
 0x33b   :  { %v1766_v12 = vsel %vm12876_vm6, %v6860_v14, %v12875_v18  ;;  %v2459_v39 = vsel %vm843_vm5, %v12878_v3, %v1765_v31  ;;  %v10186_v60 = vsel %vm882_vm12, %v2458_v20, %v9926_v55  ;;  %v6919_v18 = vunpack.i.l.bf16 %v10109_v27  ;;  %v10195_v3 = vpop.permute.xlu1 %6927  ;;  %vm12882_vm15 = vmmov %vm12881_vm13  ;;  %v6868_v28 = vpop.permute.xlu0 %6867 }
 0x33c   :  { %v2460_v13 = vsel %vm843_vm5, %v12879_v50, %v1766_v12  ;;  %v10190_v14 = vsel %vm882_vm12, %v2459_v39, %v9929_v24  ;;  %v2493_v12 = vsel %vm856_vm9, %v10168_v63, %v10052_v0  ;;  %v12880_v39 = vunpack.i.h.bf16 %v9161_v5  ;;  %vm12885_vm1 = vmmov %vm12884_vm0 }
 0x33d   :  { %v7041_v31 = vpack.i.bf16 %v10190_v14, %v10186_v60  ;;  %v2656_v24 = vsel %vm12882_vm15, %v6864_v54, %v6865_v40  ;;  %v10213_v0 = vsel %vm882_vm12, %v2460_v13, %v9974_v44  ;;  %v10216_v55 = vsel %vm869_vm11, %v2516_v42, %v2091_v61  ;;  %vm12889_vm6 = vmmov %vm12884_vm0 }
 0x33e   :  { %v2655_v20 = vsel %vm12881_vm13, %v12880_v39, %v6864_v54  ;;  %v2705_v50 = vsel %vm856_vm9, %v2481_v25, %v2656_v24  ;;  %12883 = vst [vmem:[#allocation33_spill] sm:$0xff] %v10216_v55  ;;  %v10219_v5 = vunpack.i.l.bf16 %v10195_v3  ;;  %v6869_v39 = vunpack.i.l.bf16 %v6868_v28 }
 0x33f   :  { %v2704_v6 = vsel %vm856_vm9, %v2480_v62, %v2655_v20  ;;  %7042 = vrot.lane.b32.xlu0 %v7041_v31, %s7231_s28  ;;  %v2717_v62 = vsel %vm12885_vm1, %v2705_v50, %v9966_v56  ;;  %v12886_v20 = vunpack.i.h.bf16 %v12794_v48  ;;  %vm12887_vm3 = vcmask 556032   ;;  %v10231_v13 = vpop.permute.xlu1 %1919 }
 0x340   :  { %v2716_v54 = vsel %vm12884_vm0, %v2704_v6, %v9954_v7  ;;  %vm12888_vm10 = vmmov %vm12887_vm3  ;;  %v10235_v61 = vsel %vm12889_vm6, %v2493_v12, %v9971_v4  ;;  %v12890_v7 = vunpack.i.h.bf16 %v12800_v29  ;;  %vm12891_vm13 = vcmask 359424  }
 0x341   :  { %v2389_v31 = vsel %vm12887_vm3, %v12886_v20, %v6919_v18  ;;  %v2390_v44 = vsel %vm12888_vm10, %v6919_v18, %v12495_v22  ;;  %v7051_v42 = vpack.i.bf16 %v2717_v62, %v2716_v54  ;;  %v12892_v6 = vunpack.i.h.bf16 %v10157_v35  ;;  %vm12893_vm15 = vmmov %vm12891_vm13 }
 0x342   :  { %v2436_v24 = vsel %vm12891_vm13, %v12890_v7, %v6924_v36  ;;  %v12894_v50 = vunpack.i.h.bf16 %v10013_v38  ;;  %vm12895_vm0 = vcmask 588800   ;;  %v12896_v18 = vunpack.i.h.bf16 %v10030_v8  ;;  %v10257_v7 = vpop.permute.xlu0 %6912  ;;  %vm12902_vm13 = vmmov %vm12889_vm6 }
 0x343   :  { %v2437_v48 = vsel %vm12893_vm15, %v6924_v36, %v12892_v6  ;;  %vm12897_vm1 = vcmask 1014784   ;;  %v12898_v12 = vunpack.i.l.bf16 %v9488_v58  ;;  %vm12899_vm3 = vcmask 826368   ;;  %7052 = vrot.lane.b32.xlu1 %v7051_v42, %s7231_s28  ;;  %7047 = vrot.lane.b32.xlu0 %v7046_v15, %s7231_s28 }
 0x344   :  { %v10246_v20 = vsel %vm12895_vm0, %v12894_v50, %v6869_v39  ;;  %v10252_v54 = vsel %vm12897_vm1, %v12896_v18, %v10231_v13  ;;  %v6870_v62 = vunpack.i.h.bf16 %v6868_v28  ;;  %v12496_v36 = vunpack.i.h.bf16 %v10257_v7  ;;  %v2168_v50 = vpop.permute.xlu1 %2167  ;;  %vm12909_vm1 = vmmov %vm12889_vm6 }
 0x345   :  { %v2657_v29 = vsel %vm12899_vm3, %v6865_v40, %v12898_v12  ;;  %v6914_v6 = vunpack.i.l.bf16 %v10257_v7  ;;  %v12900_v40 = vunpack.i.h.bf16 %v9408_v32  ;;  %vm12901_vm10 = vcmask 793600   ;;  %vm12910_vm3 = vmmov %vm12909_vm1 }
 0x346   :  { %v2492_v42 = vsel %vm856_vm9, %v2481_v25, %v1927_v57  ;;  %v10281_v18 = vsel %vm882_vm12, %v10098_v43, %v10246_v20  ;;  %v10288_v32 = vsel %vm12902_vm13, %v10060_v33, %v9832_v51  ;;  %v12904_v57 = vunpack.i.h.bf16 %v12834_v16  ;;  %v10304_v8 = vpop.permute.xlu0 %6937 }
 0x347   :  { %v10271_v28 = vsel %vm12901_vm10, %v12900_v40, %v10219_v5  ;;  %v10276_v15 = vsel %vm12889_vm6, %v2492_v42, %v9966_v56  ;;  %12903 = vst [vmem:[#allocation23_spill] sm:$0xff] %v10288_v32  ;;  %v2347_v56 = vsel %vm697_vm7, %v6914_v6, %v12496_v36  ;;  %v2540_v43 = vsel %vm843_vm5, %v10219_v5, %v2168_v50  ;;  %vm12911_vm10 = vmmov %vm12895_vm0 }
 0x348   :  { %v2346_v25 = vsel %vm697_vm7, %v12904_v57, %v6914_v6  ;;  %v12905_v40 = vunpack.i.h.bf16 %v10062_v17  ;;  %vm12906_vm15 = vcmask 785408   ;;  %v2591_v12 = vsel %vm830_vm4, %v2347_v56, %v2390_v44  ;;  %v12908_v6 = vld [vmem:[#allocation7_spill] sm:$0xff]  ;;  %vm12914_vm6 = vmmov %vm12909_vm1 }
 0x349   :  { %v12907_v16 = vrot.slane %v12797_v53, 6  ;;  %7057 = vrot.lane.b32.xlu0 %v12908_v6, %s7230_s27  ;;  %v10314_v17 = vsel %vm12895_vm0, %v6869_v39, %v6870_v62  ;;  %v7061_v44 = vpack.i.bf16 %v9999_v21, %v10213_v0  ;;  %v10332_v39 = vsel %vm12910_vm3, %v10107_v26, %v2347_v56 }
 0x34a   :  { %v2178_v42 = vsel %vm12906_vm15, %v12905_v40, %v2168_v50  ;;  %v10320_v50 = vsel %vm12909_vm1, %v10114_v11, %v2346_v25  ;;  %v2590_v40 = vsel %vm830_vm4, %v2346_v25, %v2389_v31  ;;  %v10335_v57 = vsel %vm869_vm11, %v2591_v12, %v2437_v48  ;;  %v10349_v26 = vpop.permute.xlu0 %6942  ;;  %vm12916_vm15 = vmmov %vm12909_vm1 }
 0x34b   :  { %v2539_v33 = vsel %vm843_vm5, %v10271_v28, %v2178_v42  ;;  %2382 = vrot.lane.b32.xlu1 %v12907_v16, %s7229_s26  ;;  %v10323_v42 = vpop.permute.xlu1 %2210  ;;  %v10326_v16 = vsel %vm869_vm11, %v2590_v40, %v2436_v24  ;;  %v2706_v11 = vsel %vm856_vm9, %v10168_v63, %v2657_v29  ;;  %v12497_v31 = vunpack.i.h.bf16 %v10195_v3  ;;  %s7245_s26 = smov 32  }
 0x34c   :  { %v10342_v25 = vsel %vm12911_vm10, %v6870_v62, %v10323_v42  ;;  %v10346_v24 = vsel %vm882_vm12, %v2540_v43, %v10323_v42  ;;  %v6939_v40 = vunpack.i.l.bf16 %v10304_v8  ;;  %v12912_v48 = vrot.slane %v12797_v53, 3 }
 0x34d   :  { %7062 = vrot.lane.b32.xlu0 %v7061_v44, %s7231_s28  ;;  %v6945_v12 = vunpack.i.h.bf16 %v10349_v26  ;;  %v10363_v56 = vunpack.i.l.bf16 %v10349_v26  ;;  %v10367_v43 = vsel %vm882_vm12, %v2539_v33, %v10342_v25  ;;  %v10372_v44 = vsel %vm882_vm12, %v10091_v59, %v10314_v17 }
 0x34e   :  { %12913 = vst [vmem:[#allocation6_spill] sm:$0xff] %v10372_v44  ;;  %v7066_v62 = vpack.i.bf16 %v10216_v55, %v10160_v23  ;;  %v2718_v6 = vsel %vm12914_vm6, %v2706_v11, %v9971_v4  ;;  %vm12915_vm13 = vcmask 793600   ;;  %v2719_v59 = vsel %vm12916_vm15, %v9985_v10, %v9832_v51  ;;  %v6948_v22 = vpop.permute.xlu0 %6947 }
 0x34f   :  { %2427 = vrot.lane.b32.xlu1 %v12912_v48, %s7230_s27  ;;  %v6940_v48 = vunpack.i.h.bf16 %v10304_v8  ;;  %v6933_v29 = vpop.permute.xlu1 %6932  ;;  %v10385_v33 = vsel %vm12915_vm13, %v10219_v5, %v12497_v31  ;;  %v12917_v8 = vunpack.i.h.bf16 %v9875_v34  ;;  %vm12918_vm0 = vcmask 1039360  }
 0x350   :  { %vm12919_vm1 = vmmov %vm12918_vm0  ;;  %v10396_v11 = vunpack.i.h.bf16 %v6933_v29  ;;  %v10398_v26 = vunpack.i.l.bf16 %v6933_v29  ;;  %v12920_v5 = vpack.i.bf16 %v9790_v41, %v9885_v1  ;;  %v12921_v51 = vunpack.i.h.bf16 %v9457_v52 }
 0x351   :  { %v1768_v63 = vsel %vm12918_vm0, %v12917_v8, %v10363_v56  ;;  %v2610_v4 = vsel %vm12919_vm1, %v10363_v56, %v6945_v12  ;;  %7067 = vrot.lane.b32.xlu0 %v7066_v62, %s7231_s28  ;;  %vm12922_vm3 = vcmask 1022976   ;;  %v6950_v10 = vunpack.i.h.bf16 %v6948_v22  ;;  %v12927_v62 = vld [vmem:[#allocation11_spill] sm:$0xff] }
 0x352   :  { %v1876_v34 = vsel %vm12922_vm3, %v12921_v51, %v6939_v40  ;;  %v6949_v8 = vunpack.i.l.bf16 %v6948_v22  ;;  %v7076_v38 = vpack.i.bf16 %v2719_v59, %v2718_v6  ;;  %vm12923_vm10 = vmmov %vm12922_vm3  ;;  %v12924_v29 = vunpack.i.h.bf16 %v9840_v46  ;;  %v6953_v44 = vpop.permute.xlu0 %6952 }
 0x353   :  { %7072 = vrot.lane.b32.xlu1 %v12920_v5, %s7231_s28  ;;  %v2622_v36 = vsel %vm12923_vm10, %v6939_v40, %v6940_v48  ;;  %vm12925_vm6 = vcmask 1031168   ;;  %v2485_v41 = vsel %vm817_vm2, %v10398_v26, %v6939_v40  ;;  %v6958_v52 = vpop.permute.xlu1 %6957  ;;  %v2462_v5 = vsel %vm843_vm5, %v12927_v62, %v1768_v63 }
 0x354   :  { %v1822_v31 = vsel %vm12925_vm6, %v12924_v29, %v10398_v26  ;;  %vm12926_vm13 = vmmov %vm12925_vm6  ;;  %v2693_v22 = vsel %vm843_vm5, %v12797_v53, %v2610_v4  ;;  %v12928_v46 = vunpack.i.h.bf16 %v9488_v58  ;;  %vm12929_vm15 = vcmask 826368  }
 0x355   :  { %v2616_v1 = vsel %vm12926_vm13, %v10398_v26, %v10396_v11  ;;  %v2484_v6 = vsel %vm817_vm2, %v1822_v31, %v1876_v34  ;;  %vm12930_vm0 = vmmov %vm12929_vm15  ;;  %v10430_v55 = vunpack.i.h.bf16 %v6958_v52  ;;  %v2698_v63 = vsel %vm817_vm2, %v10396_v11, %v6940_v48 }
 0x356   :  { %v2659_v59 = vsel %vm12929_vm15, %v12928_v46, %v6949_v8  ;;  %v2697_v51 = vsel %vm817_vm2, %v2616_v1, %v2622_v36  ;;  %v2660_v29 = vsel %vm12930_vm0, %v6949_v8, %v6950_v10  ;;  %v6959_v4 = vunpack.i.l.bf16 %v6958_v52 }
 0x357   :  { %7077 = vrot.lane.b32.xlu1 %v7076_v38, %s7231_s28  ;;  %v6955_v34 = vunpack.i.h.bf16 %v6953_v44  ;;  %v6954_v58 = vunpack.i.l.bf16 %v6953_v44  ;;  %v2708_v62 = vsel %vm856_vm9, %v2484_v6, %v2659_v59  ;;  %v10437_v46 = vsel %vm882_vm12, %v2462_v5, %v1822_v31  ;;  %v6963_v40 = vpop.permute.xlu1 %6962 }
 0x358   :  { %v2695_v36 = vsel %vm882_vm12, %v2693_v22, %v2616_v1  ;;  %v2495_v8 = vsel %vm856_vm9, %v2484_v6, %v10252_v54  ;;  %v2709_v21 = vsel %vm856_vm9, %v2697_v51, %v2660_v29  ;;  %v12931_v38 = vunpack.i.h.bf16 %v9522_v2  ;;  %v10455_v6 = vpop.permute.xlu0 %6972  ;;  %v12935_v29 = vld [vmem:[#allocation22_spill] sm:$0xff] }
 0x359   :  { %vm12932_vm1 = vcmask 818176   ;;  %v12934_v52 = vunpack.i.h.bf16 %v10045_v47  ;;  %v2263_v5 = vsel %vm601_vm8, %v6954_v58, %v6955_v34  ;;  %v7081_v54 = vpack.i.bf16 %v2695_v36, %v10437_v46 }
 0x35a   :  { %v1984_v48 = vsel %vm12932_vm1, %v12931_v38, %v6959_v4  ;;  %vm12933_vm3 = vmmov %vm12932_vm1  ;;  %v6965_v22 = vunpack.i.h.bf16 %v6963_v40  ;;  %v2560_v2 = vsel %vm817_vm2, %v10314_v17, %v2263_v5  ;;  %v6964_v59 = vunpack.i.l.bf16 %v6963_v40 }
 0x35b   :  { %v2676_v44 = vsel %vm12933_vm3, %v6959_v4, %v10430_v55  ;;  %v2262_v31 = vsel %vm601_vm8, %v12934_v52, %v6954_v58  ;;  %v6975_v51 = vunpack.i.h.bf16 %v10455_v6  ;;  %v6974_v47 = vunpack.i.l.bf16 %v10455_v6  ;;  %7082 = vrot.lane.b32.xlu0 %v7081_v54, %s7231_s28  ;;  %v6968_v36 = vpop.permute.xlu1 %6967 }
 0x35c   :  { %v2559_v1 = vsel %vm817_vm2, %v10246_v20, %v2262_v31  ;;  %v2694_v38 = vsel %vm843_vm5, %v12935_v29, %v6945_v12  ;;  %vm12936_vm10 = vcmask 1046528   ;;  %v2463_v17 = vsel %vm843_vm5, %v12797_v53, %v10363_v56 }
 0x35d   :  { %v2720_v20 = vsel %vm12936_vm10, %v2708_v62, %v1984_v48  ;;  %vm12937_vm6 = vmmov %vm12936_vm10  ;;  %v2710_v40 = vsel %vm856_vm9, %v2698_v63, %v6950_v10  ;;  %v2518_v31 = vsel %vm830_vm4, %v6959_v4, %v6964_v59  ;;  %v12939_v12 = vunpack.i.h.bf16 %v10080_v49 }
 0x35e   :  { %v2721_v58 = vsel %vm12937_vm6, %v2709_v21, %v2676_v44  ;;  %vm12938_vm13 = vmmov %vm12937_vm6  ;;  %v12940_v62 = vunpack.i.h.bf16 %v9912_v30  ;;  %vm12941_vm15 = vcmask 809984   ;;  %v6970_v56 = vunpack.i.h.bf16 %v6968_v36 }
 0x35f   :  { %v10467_v52 = vsel %vm12938_vm13, %v2495_v8, %v1984_v48  ;;  %v2305_v5 = vsel %vm649_vm14, %v12939_v12, %v6974_v47  ;;  %vm12942_vm0 = vmmov %vm12941_vm15  ;;  %v2306_v8 = vsel %vm649_vm14, %v6974_v47, %v6975_v51  ;;  %v7091_v32 = vpack.i.bf16 %v2721_v58, %v2720_v20  ;;  %v2254_v30 = vpop.permute.xlu1 %2253 }
 0x360   :  { %v2038_v21 = vsel %vm12941_vm15, %v12940_v62, %v6964_v59  ;;  %v2682_v54 = vsel %vm12942_vm0, %v6964_v59, %v6965_v22  ;;  %v10485_v53 = vsel %vm856_vm9, %v2560_v2, %v2306_v8  ;;  %v6969_v10 = vunpack.i.l.bf16 %v6968_v36  ;;  %vm12943_vm1 = vmmov %vm12937_vm6 }
 0x361   :  { %v2570_v49 = vsel %vm856_vm9, %v2559_v1, %v2305_v5  ;;  %v2722_v63 = vsel %vm12943_vm1, %v2710_v40, %v10430_v55  ;;  %7092 = vrot.lane.b32.xlu1 %v7091_v32, %s7231_s28  ;;  %v5561_v59 = vpack.c.bf16 %v10467_v52, %v10437_v46  ;;  %v10495_v47 = vsel %vm882_vm12, %v2463_v17, %v10398_v26  ;;  %vm12947_vm6 = vmmov %vm12943_vm1 }
 0x362   :  { %v2496_v2 = vsel %vm856_vm9, %v2485_v41, %v10231_v13  ;;  %v2517_v20 = vsel %vm830_vm4, %v1984_v48, %v2038_v21  ;;  %v10501_v1 = vsel %vm869_vm11, %v2518_v31, %v6969_v10  ;;  %vm12944_vm3 = vcmask 801792  }
 0x363   :  { %v2687_v58 = vsel %vm12944_vm3, %v6969_v10, %v6970_v56  ;;  %v12945_v32 = vunpack.i.h.bf16 %v9963_v45  ;;  %vm12946_vm10 = vmmov %vm12944_vm3  ;;  %v2723_v40 = vsel %vm830_vm4, %v2676_v44, %v2682_v54  ;;  %v2264_v17 = vsel %vm601_vm8, %v6955_v34, %v2254_v30  ;;  %v10547_v21 = vpop.permute.xlu1 %6992 }
 0x364   :  { %v2562_v13 = vsel %vm817_vm2, %v10323_v42, %v2254_v30  ;;  %v2561_v41 = vsel %vm817_vm2, %v10342_v25, %v2264_v17  ;;  %v2725_v45 = vsel %vm869_vm11, %v2723_v40, %v2687_v58  ;;  %v10520_v31 = vsel %vm12947_vm6, %v2496_v2, %v6959_v4  ;;  %vm12952_vm8 = vmmov %vm12943_vm1 }
 0x365   :  { %v2092_v36 = vsel %vm12946_vm10, %v12945_v32, %v6969_v10  ;;  %v12948_v44 = vpack.i.bf16 %v10385_v33, %v10271_v28  ;;  %v2696_v12 = vsel %vm882_vm12, %v2694_v38, %v10396_v11  ;;  %v2724_v4 = vsel %vm830_vm4, %v10430_v55, %v6965_v22  ;;  %v2937_v33 = vld [vmem:[%s12348_s4] sm:$0x1f]  ;;  %v6978_v22 = vpop.permute.xlu0 %6977  ;;  %vm12953_vm12 = vmmov %vm12943_vm1 }
 0x366   :  { %v10516_v48 = vsel %vm869_vm11, %v2517_v20, %v2092_v36  ;;  %v7101_v5 = vpack.i.bf16 %v2722_v63, %v2696_v12  ;;  %v2726_v28 = vsel %vm869_vm11, %v2724_v4, %v6970_v56  ;;  %v12949_v62 = vrot.slane %v12935_v29, 3 }
 0x367   :  { %7097 = vrot.lane.b32.xlu1 %v12948_v44, %s7231_s28  ;;  %v7086_v34 = vpack.i.bf16 %v2725_v45, %v10516_v48  ;;  %v12950_v11 = vunpack.i.h.bf16 %v10195_v3  ;;  %v10549_v55 = vpop.permute.xlu1 %7002  ;;  %v12951_v20 = vunpack.i.h.bf16 %v10257_v7  ;;  %v6979_v6 = vunpack.i.l.bf16 %v6978_v22 }
 0x368   :  { %v7005_v3 = vunpack.i.h.bf16 %v10549_v55  ;;  %vm12954_vm13 = vcmask 351232   ;;  %vm12960_vm10 = vmmov 1   ;;  %v13011_v46 = vpack.c.bf16 %v10367_v43, %v10516_v48 }
 0x369   :  { %7087 = vrot.lane.b32.xlu0 %v7086_v34, %s7231_s28  ;;  %v7106_v38 = vpack.i.bf16 %v12950_v11, %v2726_v28  ;;  %v6983_v8 = vpop.permute.xlu0 %6982  ;;  %v7004_v34 = vunpack.i.l.bf16 %v10549_v55  ;;  %v6995_v11 = vunpack.i.h.bf16 %v10547_v21  ;;  %vm12956_vm15 = vmmov %vm12954_vm13 }
 0x36a   :  { %v6985_v2 = vunpack.i.h.bf16 %v6983_v8  ;;  %v6984_v12 = vunpack.i.l.bf16 %v6983_v8  ;;  %vm12957_vm0 = vmmov %vm12954_vm13 }
 0x36b   :  { %7102 = vrot.lane.b32.xlu1 %v7101_v5, %s7231_s28  ;;  %v7018_v54 = vpop.permute.xlu1 %7017  ;;  %vm12958_vm1 = vmmov %vm12957_vm0 }
 0x36c   :  { %v7019_v30 = vunpack.i.l.bf16 %v7018_v54  ;;  %v7020_v36 = vunpack.i.h.bf16 %v7018_v54  ;;  %vm12959_vm3 = vmmov %vm12957_vm0 }
 0x36d   :  { %2429 = vrot.lane.b32.xlu0 %v12949_v62, %s7230_s27  ;;  %vm10603_vm6 = vmpackc.low %vm843_vm5, %vm12960_vm10 }
 0x36e   :  { %v2871_v8 = vsel %vm12958_vm1, %v7019_v30, %v7020_v36  ;;  %vm12968_vm5 = vmmov %vm12957_vm0 }
 0x36f   :  { %2940 = vperm.xlu1 %6550, %v2937_v33   ;;  %v10551_v56 = vpop.permute.xlu1 %7022  ;;  %v6988_v63 = vpop.permute.xlu0 %6987  ;;  %v2881_v26 = vsel %vm12968_vm5, %v6979_v6, %v7004_v34  ;;  %vm12969_vm1 = vmmov %vm12957_vm0 }
 0x370   :  { %v7025_v10 = vunpack.i.h.bf16 %v10551_v56  ;;  %v7024_v29 = vunpack.i.l.bf16 %v10551_v56  ;;  %v6990_v40 = vunpack.i.h.bf16 %v6988_v63  ;;  %v6989_v17 = vunpack.i.l.bf16 %v6988_v63  ;;  %vm12971_vm10 = vmmov %vm12957_vm0 }
 0x371   :  { %7107 = vrot.lane.b32.xlu0 %v7106_v38, %s7231_s28  ;;  %v6980_v38 = vunpack.i.h.bf16 %v6978_v22  ;;  %v12988_v56 = vpack.c.bf16 %v10326_v16, %v10320_v50  ;;  %vm12997_vm5 = vmmov %vm12957_vm0 }
 0x372   :  { %v10559_v58 = vsel %vm697_vm7, %v12951_v20, %v7024_v29  ;;  %v10564_v32 = vsel %vm697_vm7, %v7024_v29, %v7025_v10 }
 0x373   :  { %v2297_v45 = vpop.permute.xlu1 %2296  ;;  %v10568_v44 = vsel %vm12952_vm8, %v2570_v49, %v10559_v58  ;;  %v6998_v4 = vpop.permute.xlu0 %6997  ;;  %v10583_v49 = vsel %vm12953_vm12, %v10485_v53, %v10564_v32  ;;  %vm12963_vm8 = vmmov %vm12957_vm0 }
 0x374   :  { %v2307_v7 = vsel %vm649_vm14, %v6975_v51, %v2297_v45  ;;  %v10575_v5 = vsel %vm856_vm9, %v2562_v13, %v2297_v45  ;;  %v7000_v33 = vunpack.i.h.bf16 %v6998_v4  ;;  %v6999_v62 = vunpack.i.l.bf16 %v6998_v4  ;;  %vm12955_vm14 = vmmov %vm12954_vm13 }
 0x375   :  { %v10578_v28 = vsel %vm856_vm9, %v2561_v41, %v2307_v7  ;;  %v2870_v51 = vsel %vm12954_vm13, %v6985_v2, %v7019_v30  ;;  %v2893_v13 = vsel %vm12955_vm14, %v6989_v17, %v6990_v40  ;;  %v6994_v2 = vunpack.i.l.bf16 %v10547_v21  ;;  %vm12964_vm12 = vmmov %vm12957_vm0  ;;  %v3712_v30 = vld [vmem:[%s12349_s5 + $0x88] sm:$0xff] }
 0x376   :  { %v2859_v55 = vsel %vm12956_vm15, %v6984_v12, %v6999_v62  ;;  %v2860_v41 = vsel %vm12957_vm0, %v6999_v62, %v7000_v33  ;;  %v2882_v45 = vsel %vm12959_vm3, %v7004_v34, %v7005_v3  ;;  %v2892_v4 = vsel %vm12963_vm8, %v6980_v38, %v6989_v17  ;;  %vm12965_vm13 = vmmov %vm12957_vm0 }
 0x377   :  { %v10589_v54 = vpop.permute.xlu1 %7032  ;;  %v5487_v29 = vpack.c.bf16 %v2870_v51, %v2859_v55  ;;  %v10595_v20 = vpop.permute.xlu0 %7007  ;;  %v5485_v22 = vpack.c.bf16 %v2871_v8, %v2860_v41  ;;  %v5489_v62 = vpack.c.bf16 %v2893_v13, %v2882_v45  ;;  %vm12966_vm14 = vmmov %vm12957_vm0  ;;  %v5492_v17 = vpack.c.bf16 %v2892_v4, %v2881_v26  ;;  %v10636_v26 = vld [vmem:[%s12347_s3] sm:$0x1f]  ;;  %v12976_v4 = vld [vmem:[#allocation19_spill] sm:$0xff] }
 0x378   :  { %v7035_v53 = vunpack.i.h.bf16 %v10589_v54  ;;  %v7034_v63 = vunpack.i.l.bf16 %v10589_v54  ;;  %v7010_v12 = vunpack.i.h.bf16 %v10595_v20  ;;  %v7009_v7 = vunpack.i.l.bf16 %v10595_v20  ;;  %vm12967_vm15 = vmmov %vm12957_vm0 }
 0x379   :  { %5486 = vmatprep.subr.bf16.mxu0 %v5485_v22  ;;  %vm12970_vm3 = vmmov %vm12957_vm0  ;;  %vm2943_vm8 = vcmask 613376  }
 0x37a   :  { %v2872_v51 = vsel %vm12964_vm12, %v7020_v36, %v7034_v63  ;;  %v2873_v55 = vsel %vm12965_vm13, %v7034_v63, %v7035_v53  ;;  %v2861_v41 = vsel %vm12966_vm14, %v7000_v33, %v7009_v7  ;;  %5488 = vmatpush1.bf16.msra.mxu0 %v5487_v29  ;;  %v2862_v8 = vsel %vm12967_vm15, %v7009_v7, %v7010_v12  ;;  %v12975_v7 = vld [vmem:[#allocation34_spill] sm:$0xff]  ;;  %vm12995_vm14 = vmmov %vm12957_vm0 }
 0x37b   :  { %v5509_v25 = vpack.c.bf16 %v2872_v51, %v2861_v41  ;;  %v10617_v42 = vpop.permute.xlu0 %7012  ;;  %5491 = vmatprep.subr.msk.bf16.mxu0 %vm10603_vm6, %v5489_v62  ;;  %v5507_v36 = vpack.c.bf16 %v2873_v55, %v2862_v8  ;;  %v2895_v33 = vsel %vm12957_vm0, %v6994_v2, %v6995_v11  ;;  %v2894_v29 = vsel %vm12969_vm1, %v6990_v40, %v6994_v2  ;;  %v12979_v51 = vld [vmem:[#allocation31_spill] sm:$0xff]  ;;  %vm12996_vm15 = vmmov %vm12957_vm0 }
 0x37c   :  { %v7015_v38 = vunpack.i.h.bf16 %v10617_v42  ;;  %v7014_v13 = vunpack.i.l.bf16 %v10617_v42  ;;  %vm12974_vm12 = vcmask 556032   ;;  %v12977_v62 = vpack.c.bf16 %v12975_v7, %v12976_v4 }
 0x37d   :  { %5508 = vmatprep.subr.bf16.mxu1 %v5507_v36  ;;  %v12981_v41 = vpack.c.bf16 %v10235_v61, %v10213_v0  ;;  %v12982_v36 = vmov 0.0   ;;  %vm12983_vm13 = vcmask 1046528   ;;  %v12985_v0 = vld [vmem:[#allocation26_spill] sm:$0xff]  ;;  %vm12998_vm1 = vmmov %vm12974_vm12 }
 0x37e   :  { %v2883_v34 = vsel %vm12970_vm3, %v7005_v3, %v7014_v13  ;;  %v2884_v6 = vsel %vm12971_vm10, %v7014_v13, %v7015_v38  ;;  %5494 = vmatpush1.bf16.msk.msra.mxu0 %vm10603_vm6, %v5492_v17  ;;  %5510 = vmatpush1.bf16.msra.mxu1 %v5509_v25  ;;  %v12972_v3 = vpack.c.bf16 %v10164_v19, %v10186_v60  ;;  %v12973_v25 = vunpack.i.h.bf16 %v10109_v27  ;;  %v12978_v60 = vld [vmem:[#allocation32_spill] sm:$0xff]  ;;  %v12984_v13 = vld [vmem:[#allocation25_spill] sm:$0xff]  ;;  %vm12999_vm3 = vmmov %vm12957_vm0 }
 0x37f   :  { %v5511_v63 = vpack.c.bf16 %v2895_v33, %v2884_v6  ;;  %v5514_v22 = vpack.c.bf16 %v2894_v29, %v2883_v34  ;;  %v7028_v45 = vpop.permute.xlu0 %7027  ;;  %v12980_v55 = vpack.c.bf16 %v12978_v60, %v12979_v51  ;;  %v12986_v61 = vpack.c.bf16 %v12984_v13, %v12985_v0  ;;  %v12991_v33 = vld [vmem:[#allocation24_spill] sm:$0xff]  ;;  %vm13000_vm10 = vmmov %vm12957_vm0 }
 0x380   :  { %5518 = vmatprep.subr.bf16.mxu0 %v12972_v3  ;;  %v7029_v40 = vunpack.i.l.bf16 %v7028_v45  ;;  %v12993_v34 = vpack.c.bf16 %v10117_v37, %v9991_v9  ;;  %v7030_v6 = vunpack.i.h.bf16 %v7028_v45 }
 0x381   :  { %4966 = vmatmul.mubr.msk.f32.vlgmr.msra.gmra.mrb[4].mxu0 %vm2943_vm8, %v10636_v26  ;;  %5513 = vmatprep.subr.msk.bf16.mxu1 %vm10603_vm6, %v5511_v63 }
 0x382   :  { %v2391_v2 = vsel %vm12974_vm12, %v12973_v25, %v7029_v40  ;;  %5516 = vmatpush1.bf16.msk.msra.mxu1 %vm10603_vm6, %v5514_v22  ;;  %5520 = vmatpush1.bf16.msra.mxu0 %v12977_v62  ;;  %v2392_v60 = vsel %vm12998_vm1, %v7029_v40, %v7030_v6  ;;  %vm13001_vm12 = vmmov %vm12998_vm1 }
 0x383   :  { %5522 = vmatprep.subr.bf16.mxu0 %v12980_v55  ;;  %5540 = vmatprep.subr.bf16.mxu1 %v12981_v41  ;;  %v2592_v27 = vsel %vm830_vm4, %v10559_v58, %v2391_v2  ;;  %v12987_v58 = vpack.c.bf16 %v10276_v15, %v10190_v14  ;;  %v10693_v14 = vpop.permute.xlu1 %7037  ;;  %v2593_v40 = vsel %vm830_vm4, %v10564_v32, %v2392_v60  ;;  %vm13013_vm1 = vmmov %vm12957_vm0 }
 0x384   :  { %3175 = vmatprep.mubr.f32.mxu0 %v12982_v36 }
 0x385   :  { %v10653_v19 = vpop.permute.xlu0 %2339  ;;  %4969 = vmatmul.mubr.msk.f32.vlgmr.msra.gmra.mrb[8].mxu1 %vm2943_vm8, %v10636_v26 }
 0x386   :  { %v2350_v8 = vsel %vm697_vm7, %v7025_v10, %v10653_v19  ;;  %5524 = vmatpush1.bf16.msra.mxu0 %v12986_v61  ;;  %5542 = vmatpush1.bf16.msra.mxu1 %v12987_v58  ;;  %v12989_v10 = vpack.c.bf16 %v10281_v18, %v10160_v23  ;;  %v7040_v23 = vunpack.i.h.bf16 %v10693_v14  ;;  %v7039_v18 = vunpack.i.l.bf16 %v10693_v14  ;;  %vm12994_vm7 = vmmov %vm12957_vm0 }
 0x387   :  { %v10672_v17 = vsel %vm12983_vm13, %v10578_v28, %v2350_v8  ;;  %5526 = vmatprep.subr.bf16.mxu0 %v12988_v56  ;;  %3245 = vmatprep.mubr.f32.mxu1 %v12982_v36  ;;  %v12990_v28 = vld [vmem:[#allocation30_spill] sm:$0xff]  ;;  %v13002_v58 = vunpack.i.h.bf16 %v10157_v35  ;;  %vm13003_vm13 = vcmask 359424  }
 0x388   :  { %5544 = vmatprep.subr.bf16.mxu1 %v12989_v10  ;;  %v12992_v29 = vpack.c.bf16 %v12990_v28, %v12991_v33  ;;  %v2897_v54 = vsel %vm12999_vm3, %v7039_v18, %v7040_v23  ;;  %vm13014_vm3 = vmmov %vm12957_vm0 }
 0x38a   :  { %5528 = vmatpush1.bf16.msra.mxu0 %v12992_v29  ;;  %5546 = vmatpush1.bf16.msra.mxu1 %v12993_v34 }
 0x3b1   :  { %v10695_v15 = vpop.permute.xlu0 %7042 }
 0x3b2   :  { %v7044_v50 = vunpack.i.l.bf16 %v10695_v15  ;;  %v7045_v16 = vunpack.i.h.bf16 %v10695_v15 }
 0x3b4   :  { %v2863_v2 = vsel %vm12994_vm7, %v7010_v12, %v7044_v50  ;;  %v2864_v4 = vsel %vm12997_vm5, %v7044_v50, %v7045_v16  ;;  %vm13004_vm7 = vmmov %vm13003_vm13 }
 0x3b5   :  { %v10701_v63 = vpop.permute.xlu1 %7052  ;;  %v10703_v22 = vpop.permute.xlu0 %7047  ;;  %vm13012_vm5 = vmmov %vm12957_vm0 }
 0x3b6   :  { %v7055_v9 = vunpack.i.h.bf16 %v10701_v63  ;;  %v7054_v37 = vunpack.i.l.bf16 %v10701_v63  ;;  %v7050_v3 = vunpack.i.h.bf16 %v10703_v22  ;;  %v7049_v25 = vunpack.i.l.bf16 %v10703_v22 }
 0x3b8   :  { %v2874_v45 = vsel %vm12995_vm14, %v7035_v53, %v7054_v37  ;;  %v2886_v7 = vsel %vm12996_vm15, %v7049_v25, %v7050_v3  ;;  %v2875_v62 = vsel %vm12957_vm0, %v7054_v37, %v7055_v9  ;;  %v2885_v13 = vsel %vm13000_vm10, %v7015_v38, %v7049_v25  ;;  %vm13005_vm14 = vmmov %vm12957_vm0 }
 0x3b9   :  { %v5531_v51 = vpack.c.bf16 %v2874_v45, %v2863_v2  ;;  %v5529_v55 = vpack.c.bf16 %v2875_v62, %v2864_v4  ;;  %v5533_v0 = vpack.c.bf16 %v2897_v54, %v2886_v7  ;;  %v2896_v42 = vsel %vm13005_vm14, %v6995_v11, %v7039_v18  ;;  %vm13006_vm15 = vmmov %vm13004_vm7  ;;  %v13008_v2 = vld [vmem:[#allocation23_spill] sm:$0xff] }
 0x3ba   :  { %v5536_v35 = vpack.c.bf16 %v2896_v42, %v2885_v13  ;;  %vm13015_vm10 = vmmov %vm12957_vm0 }
 0x3bb   :  { %v7058_v12 = vpop.permute.xlu0 %7057  ;;  %5530 = vmatprep.subr.bf16.mxu0 %v5529_v55  ;;  %v13017_v55 = vld [vmem:[#allocation33_spill] sm:$0xff]  ;;  %vm13022_vm14 = vmmov %vm12957_vm0 }
 0x3bc   :  { %v7060_v53 = vunpack.i.h.bf16 %v7058_v12  ;;  %v7059_v41 = vunpack.i.l.bf16 %v7058_v12  ;;  %5532 = vmatpush1.bf16.msra.mxu0 %v5531_v51  ;;  %v13016_v12 = vld [vmem:[#allocation6_spill] sm:$0xff] }
 0x3bd   :  { %v10723_v20 = vpop.permute.xlu1 %2382  ;;  %5535 = vmatprep.subr.msk.bf16.mxu0 %vm10603_vm6, %v5533_v0  ;;  %v13018_v43 = vpack.c.bf16 %v13016_v12, %v13017_v55  ;;  %v3696_v12 = vld [vmem:[%s12349_s5 + $0x8] sm:$0xff]  ;;  %v3713_v55 = vld [vmem:[%s12349_s5 + $0x90] sm:$0xff] }
 0x3be   :  { %v2393_v61 = vsel %vm13001_vm12, %v7030_v6, %v10723_v20  ;;  %v2438_v56 = vsel %vm13003_vm13, %v13002_v58, %v7059_v41  ;;  %v2439_v10 = vsel %vm13004_vm7, %v7059_v41, %v7060_v53  ;;  %vm13019_vm12 = vmmov %vm12957_vm0 }
 0x3bf   :  { %v7063_v28 = vpop.permute.xlu0 %7062  ;;  %v2603_v33 = vsel %vm869_vm11, %v2592_v27, %v2438_v56  ;;  %v2604_v32 = vsel %vm869_vm11, %v2593_v40, %v2439_v10  ;;  %v2594_v29 = vsel %vm830_vm4, %v2350_v8, %v2393_v61  ;;  %v13007_v8 = vpack.c.bf16 %v10335_v57, %v10332_v39  ;;  %v13009_v57 = vld [vmem:[#allocation28_spill] sm:$0xff]  ;;  %vm13020_vm13 = vmmov %vm12957_vm0 }
 0x3c0   :  { %v5547_v21 = vpack.c.bf16 %v2603_v33, %v10568_v44  ;;  %v5571_v50 = vpack.c.bf16 %v2604_v32, %v10583_v49  ;;  %5538 = vmatpush1.bf16.msk.msra.mxu0 %vm10603_vm6, %v5536_v35  ;;  %v7065_v44 = vunpack.i.h.bf16 %v7063_v28  ;;  %v7064_v49 = vunpack.i.l.bf16 %v7063_v28  ;;  %vm13021_vm7 = vmmov %vm12957_vm0 }
 0x3c1   :  { %v10742_v38 = vpop.permute.xlu1 %2427  ;;  %5562 = vmatprep.subr.bf16.mxu0 %v5561_v59  ;;  %v13010_v39 = vpack.c.bf16 %v13008_v2, %v13009_v57 }
 0x3c2   :  { %v2440_v34 = vsel %vm13006_vm15, %v7060_v53, %v10742_v38  ;;  %5548 = vmatprep.subr.bf16.mxu1 %v5547_v21  ;;  %v2865_v7 = vsel %vm13012_vm5, %v7045_v16, %v7064_v49  ;;  %v2866_v4 = vsel %vm12957_vm0, %v7064_v49, %v7065_v44  ;;  %vm13023_vm15 = vmmov %vm12957_vm0 }
 0x3c3   :  { %v2605_v11 = vsel %vm869_vm11, %v2594_v29, %v2440_v34  ;;  %v10759_v6 = vpop.permute.xlu0 %7067  ;;  %5550 = vmatpush1.bf16.msra.mxu1 %v13007_v8  ;;  %4972 = vmatmul.mubr.msk.f32.vlgmr.msra.gmra.mrb[6].mxu0 %vm2943_vm8, %v10636_v26  ;;  %vm13024_vm5 = vmmov %vm12957_vm0  ;;  %v13025_v29 = vpack.c.bf16 %v10520_v31, %v10495_v47  ;;  %v13030_v31 = vpack.c.bf16 %v10346_v24, %v10501_v1 }
 0x3c4   :  { %v5569_v27 = vpack.c.bf16 %v2605_v11, %v10672_v17  ;;  %v7070_v37 = vunpack.i.h.bf16 %v10759_v6  ;;  %v7069_v25 = vunpack.i.l.bf16 %v10759_v6  ;;  %5564 = vmatpush1.bf16.msra.mxu0 %v13010_v39  ;;  %3316 = vmatprep.mubr.f32.mxu0 %v12982_v36 }
 0x3c5   :  { %v10757_v18 = vpop.permute.xlu1 %7072  ;;  %5566 = vmatprep.subr.bf16.mxu0 %v13011_v46 }
 0x3c6   :  { %v7075_v63 = vunpack.i.h.bf16 %v10757_v18  ;;  %v7074_v17 = vunpack.i.l.bf16 %v10757_v18  ;;  %v2888_v60 = vsel %vm13014_vm3, %v7069_v25, %v7070_v37  ;;  %v2887_v16 = vsel %vm13021_vm7, %v7050_v3, %v7069_v25  ;;  %vm13026_vm3 = vmmov %vm12957_vm0 }
 0x3c7   :  { %vm13031_vm7 = vcmask 359424  }
 0x3c8   :  { %v2899_v62 = vsel %vm13013_vm1, %v7074_v17, %v7075_v63  ;;  %5568 = vmatpush1.bf16.msra.mxu0 %v13018_v43  ;;  %v2898_v15 = vsel %vm13020_vm13, %v7040_v23, %v7074_v17  ;;  %v7235_v23 = vmov 0.0|0.0   ;;  %vm7236_vm1 = vmmov 0   ;;  %vm13029_vm13 = vmmov %vm12957_vm0  ;;  %v3714_v43 = vld [vmem:[%s12349_s5 + $0x98] sm:$0xff] }
 0x3c9   :  { %v7078_v45 = vpop.permute.xlu1 %7077  ;;  %5570 = vmatprep.subr.bf16.mxu0 %v5569_v27  ;;  %v5555_v41 = vpack.c.bf16 %v2899_v62, %v2888_v60  ;;  %v3711_v60 = vld [vmem:[%s12349_s5 + $0x80] sm:$0xff] }
 0x3ca   :  { %v7080_v52 = vunpack.i.h.bf16 %v7078_v45  ;;  %v7079_v59 = vunpack.i.l.bf16 %v7078_v45 }
 0x3cc   :  { %v2876_v51 = vsel %vm13015_vm10, %v7055_v9, %v7079_v59  ;;  %v2877_v48 = vsel %vm13019_vm12, %v7079_v59, %v7080_v52  ;;  %5572 = vmatpush1.bf16.msra.mxu0 %v5571_v50  ;;  %v5558_v9 = vpack.c.bf16 %v2898_v15, %v2887_v16  ;;  %vm13027_vm10 = vmmov %vm12957_vm0  ;;  %v3698_v15 = vld [vmem:[%s12349_s5 + $0x18] sm:$0xff]  ;;  %v3715_v16 = vld [vmem:[%s12349_s5 + $0xa0] sm:$0xff] }
 0x3cd   :  { %v5553_v54 = vpack.c.bf16 %v2876_v51, %v2865_v7  ;;  %v5551_v53 = vpack.c.bf16 %v2877_v48, %v2866_v4  ;;  %v7083_v13 = vpop.permute.xlu0 %7082  ;;  %vm13028_vm12 = vmmov %vm12957_vm0  ;;  %v5599_v51 = vpack.c.bf16 %v3712_v30, %v3711_v60  ;;  %v3723_v30 = vld [vmem:[%s12349_s5 + $0xe0] sm:$0xff] }
 0x3ce   :  { %v7085_v0 = vunpack.i.h.bf16 %v7083_v13  ;;  %v7084_v61 = vunpack.i.l.bf16 %v7083_v13 }
 0x3cf   :  { %5552 = vmatprep.subr.bf16.mxu1 %v5551_v53  ;;  %v3697_v53 = vld [vmem:[%s12349_s5 + $0x10] sm:$0xff] }
 0x3d0   :  { %5554 = vmatpush1.bf16.msra.mxu1 %v5553_v54  ;;  %v2867_v22 = vsel %vm13022_vm14, %v7065_v44, %v7084_v61  ;;  %v2868_v56 = vsel %vm13024_vm5, %v7084_v61, %v7085_v0  ;;  %vm13032_vm14 = vcmask 1046528   ;;  %vm13034_vm5 = vmmov %vm12957_vm0  ;;  %v5603_v54 = vpack.c.bf16 %v3714_v43, %v3713_v55  ;;  %v3744_v61 = vld [vmem:[%s12349_s5 + $0x188] sm:$0xff]  ;;  %v3734_v55 = vld [vmem:[%s12349_s5 + $0x138] sm:$0xff] }
 0x3d1   :  { %5557 = vmatprep.subr.msk.bf16.mxu1 %vm10603_vm6, %v5555_v41  ;;  %v2584_v2 = vsel %vm13032_vm14, %v10575_v5, %v10653_v19  ;;  %v3716_v41 = vld [vmem:[%s12349_s5 + $0xa8] sm:$0xff]  ;;  %v5605_v13 = vpack.c.bf16 %v3698_v15, %v3697_v53  ;;  %v3707_v43 = vld [vmem:[%s12349_s5 + $0x60] sm:$0xff]  ;;  %vm3473_vm14 = vcmask 982016  }
 0x3d3   :  { %v7093_v40 = vpop.permute.xlu1 %7092 }
 0x3d4   :  { %v7095_v58 = vunpack.i.h.bf16 %v7093_v40  ;;  %v7094_v14 = vunpack.i.l.bf16 %v7093_v40  ;;  %5560 = vmatpush1.bf16.msk.msra.mxu1 %vm10603_vm6, %v5558_v9  ;;  %v3699_v9 = vld [vmem:[%s12349_s5 + $0x20] sm:$0xff]  ;;  %v5607_v40 = vpack.c.bf16 %v3716_v41, %v3715_v16 }
 0x3d5   :  { %5583 = vmatprep.subr.bf16.mxu1 %v7235_v23 }
 0x3d6   :  { %v2878_v3 = vsel %vm13023_vm15, %v7080_v52, %v7094_v14  ;;  %v2879_v10 = vsel %vm12957_vm0, %v7094_v14, %v7095_v58  ;;  %vm13033_vm15 = vmmov %vm12957_vm0 }
 0x3d7   :  { %v5575_v42 = vpack.c.bf16 %v2878_v3, %v2867_v22  ;;  %v5573_v33 = vpack.c.bf16 %v2879_v10, %v2868_v56  ;;  %4975 = vmatmul.mubr.msk.f32.vlgmr.msra.gmra.mrb[10].mxu1 %vm2943_vm8, %v10636_v26  ;;  %v3727_v22 = vld [vmem:[%s12349_s5 + $0x100] sm:$0xff]  ;;  %v3728_v3 = vld [vmem:[%s12349_s5 + $0x108] sm:$0xff]  ;;  %v3717_v56 = vld [vmem:[%s12349_s5 + $0xb0] sm:$0xff] }
 0x3d8   :  { %5585 = vmatpush3.bf16.msra.mxu1 %v13025_v29  ;;  %5381 = vmatprep.mubr.msk.f32.mxu1 %vm7236_vm1, %v12982_v36  ;;  %v3718_v10 = vld [vmem:[%s12349_s5 + $0xb8] sm:$0xff] }
 0x3d9   :  { %v7098_v28 = vpop.permute.xlu1 %7097  ;;  %5574 = vmatprep.subr.bf16.mxu0 %v5573_v33  ;;  %5586 = vmatprep.subr.bf16.mxu1 %v7235_v23  ;;  %v5611_v33 = vpack.c.bf16 %v3718_v10, %v3717_v56 }
 0x3da   :  { %v7100_v32 = vunpack.i.h.bf16 %v7098_v28  ;;  %v7099_v35 = vunpack.i.l.bf16 %v7098_v28  ;;  %5576 = vmatpush1.bf16.msra.mxu0 %v5575_v42  ;;  %v5633_v42 = vpack.c.bf16 %v3728_v3, %v3727_v22 }
 0x3db   :  { %v7088_v34 = vpop.permute.xlu0 %7087 }
 0x3dc   :  { %v7090_v21 = vunpack.i.h.bf16 %v7088_v34  ;;  %v7089_v11 = vunpack.i.l.bf16 %v7088_v34  ;;  %v2900_v27 = vsel %vm13026_vm3, %v7075_v63, %v7099_v35  ;;  %v2901_v18 = vsel %vm13027_vm10, %v7099_v35, %v7100_v32  ;;  %5588 = vmatpush3.bf16.msra.mxu1 %v13030_v31  ;;  %v3702_v35 = vld [vmem:[%s12349_s5 + $0x38] sm:$0xff] }
 0x3dd   :  { %v7103_v50 = vpop.permute.xlu1 %7102  ;;  %5589 = vmatprep.subr.bf16.mxu1 %v7235_v23  ;;  %v2595_v63 = vsel %vm830_vm4, %v10653_v19, %v10723_v20  ;;  %vm13035_vm4 = vmmov %vm12957_vm0  ;;  %v3730_v31 = vld [vmem:[%s12349_s5 + $0x118] sm:$0xff]  ;;  %vm3571_vm3 = vcmask 523264   ;;  %vm3448_vm10 = vcmask 654336  }
 0x3de   :  { %v2889_v6 = vsel %vm13028_vm12, %v7070_v37, %v7089_v11  ;;  %v2890_v47 = vsel %vm13029_vm13, %v7089_v11, %v7090_v21  ;;  %v7105_v8 = vunpack.i.h.bf16 %v7103_v50  ;;  %v7104_v44 = vunpack.i.l.bf16 %v7103_v50  ;;  %v3745_v11 = vld [vmem:[%s12349_s5 + $0x190] sm:$0xff]  ;;  %v3746_v50 = vld [vmem:[%s12349_s5 + $0x198] sm:$0xff] }
 0x3df   :  { %v5577_v49 = vpack.c.bf16 %v2901_v18, %v2890_v47  ;;  %v5580_v17 = vpack.c.bf16 %v2900_v27, %v2889_v6  ;;  %v2430_v25 = vpop.permute.xlu0 %2429  ;;  %v3719_v27 = vld [vmem:[%s12349_s5 + $0xc0] sm:$0xff]  ;;  %v5635_v18 = vpack.c.bf16 %v3746_v50, %v3745_v11  ;;  %v3720_v6 = vld [vmem:[%s12349_s5 + $0xc8] sm:$0xff]  ;;  %v3729_v47 = vld [vmem:[%s12349_s5 + $0x110] sm:$0xff]  ;;  %vm3615_vm12 = vcmask 130048  }
 0x3e0   :  { %v2441_v37 = vsel %vm13031_vm7, %v10742_v38, %v2430_v25  ;;  %v2869_v57 = vsel %vm13033_vm15, %v7085_v0, %v7104_v44  ;;  %v2880_v20 = vsel %vm13034_vm5, %v7095_v58, %v7105_v8  ;;  %v3743_v0 = vld [vmem:[%s12349_s5 + $0x180] sm:$0xff]  ;;  %v3700_v58 = vld [vmem:[%s12349_s5 + $0x28] sm:$0xff]  ;;  %v5615_v8 = vpack.c.bf16 %v3720_v6, %v3719_v27  ;;  %v3709_v6 = vld [vmem:[%s12349_s5 + $0x70] sm:$0xff] }
 0x3e1   :  { %v2606_v24 = vsel %vm869_vm11, %v2595_v63, %v2441_v37  ;;  %5579 = vmatprep.subr.msk.bf16.mxu0 %vm10603_vm6, %v5577_v49  ;;  %v5593_v5 = vpack.c.bf16 %v2880_v20, %v2869_v57  ;;  %vm13036_vm11 = vmmov %vm12957_vm0  ;;  %v5631_v14 = vpack.c.bf16 %v3744_v61, %v3743_v0  ;;  %v5609_v28 = vpack.c.bf16 %v3700_v58, %v3699_v9  ;;  %v3703_v49 = vld [vmem:[%s12349_s5 + $0x40] sm:$0xff]  ;;  %v3748_v37 = vld [vmem:[%s12349_s5 + $0x1a8] sm:$0xff] }
 0x3e2   :  { %v5590_v1 = vpack.c.bf16 %v2606_v24, %v2584_v2  ;;  %5582 = vmatpush1.bf16.msk.msra.mxu0 %vm10603_vm6, %v5580_v17  ;;  %v5637_v44 = vpack.c.bf16 %v3730_v31, %v3729_v47  ;;  %v3704_v17 = vld [vmem:[%s12349_s5 + $0x48] sm:$0xff]  ;;  %v3747_v25 = vld [vmem:[%s12349_s5 + $0x1a0] sm:$0xff]  ;;  %v3721_v2 = vld [vmem:[%s12349_s5 + $0xd0] sm:$0xff]  ;;  %vm3423_vm0 = vcmask 326656   ;;  %vm3499_vm13 = vcmask 261120  }
 0x3e3   :  { %v7108_v39 = vpop.permute.xlu0 %7107  ;;  %5600 = vmatprep.subr.bf16.mxu0 %v5599_v51  ;;  %v5617_v63 = vpack.c.bf16 %v3704_v17, %v3703_v49  ;;  %v3722_v24 = vld [vmem:[%s12349_s5 + $0xd8] sm:$0xff]  ;;  %v3731_v20 = vld [vmem:[%s12349_s5 + $0x120] sm:$0xff]  ;;  %v3733_v51 = vld [vmem:[%s12349_s5 + $0x130] sm:$0xff]  ;;  %vm3593_vm7 = vcmask 850944   ;;  %vm13037_vm15 = vcmask 588800  }
 0x3e4   :  { %v7110_v45 = vunpack.i.h.bf16 %v7108_v39  ;;  %v7109_v38 = vunpack.i.l.bf16 %v7108_v39  ;;  %5591 = vmatpush3.bf16.msra.mxu1 %v5590_v1  ;;  %v5639_v1 = vpack.c.bf16 %v3748_v37, %v3747_v25  ;;  %v5619_v57 = vpack.c.bf16 %v3722_v24, %v3721_v2  ;;  %v3732_v39 = vld [vmem:[%s12349_s5 + $0x128] sm:$0xff]  ;;  %v3735_v11 = vld [vmem:[%s12349_s5 + $0x140] sm:$0xff]  ;;  %v3710_v47 = vld [vmem:[%s12349_s5 + $0x78] sm:$0xff] }
 0x3e5   :  { %4978 = vmatmul.mubr.msk.f32.vlgmr.msra.gmra.mrb[8].mxu0 %vm2943_vm8, %v10636_v26  ;;  %5592 = vmatprep.subr.bf16.mxu1 %v7235_v23  ;;  %v3736_v50 = vld [vmem:[%s12349_s5 + $0x148] sm:$0xff]  ;;  %v3753_v49 = vld [vmem:[%s12349_s5 + $0x1d0] sm:$0xff]  ;;  %v3754_v17 = vld [vmem:[%s12349_s5 + $0x1d8] sm:$0xff] }
 0x3e6   :  { %v2902_v19 = vsel %vm13035_vm4, %v7100_v32, %v7110_v45  ;;  %v2891_v46 = vsel %vm13036_vm11, %v7090_v21, %v7109_v38  ;;  %v3701_v32 = vld [vmem:[%s12349_s5 + $0x30] sm:$0xff]  ;;  %v5641_v38 = vpack.c.bf16 %v3732_v39, %v3731_v20  ;;  %v5651_v2 = vpack.c.bf16 %v3754_v17, %v3753_v49  ;;  %v3738_v24 = vld [vmem:[%s12349_s5 + $0x158] sm:$0xff] }
 0x3e7   :  { %v5596_v52 = vpack.c.bf16 %v2902_v19, %v2891_v46  ;;  %v5613_v29 = vpack.c.bf16 %v3702_v35, %v3701_v32  ;;  %v3705_v45 = vld [vmem:[%s12349_s5 + $0x50] sm:$0xff]  ;;  %v3750_v46 = vld [vmem:[%s12349_s5 + $0x1b8] sm:$0xff]  ;;  %v3752_v32 = vld [vmem:[%s12349_s5 + $0x1c8] sm:$0xff] }
 0x3e8   :  { %5594 = vmatpush3.bf16.msra.mxu1 %v5593_v5  ;;  %v3706_v5 = vld [vmem:[%s12349_s5 + $0x58] sm:$0xff]  ;;  %v3749_v19 = vld [vmem:[%s12349_s5 + $0x1b0] sm:$0xff] }
 0x3e9   :  { %5595 = vmatprep.subr.bf16.mxu1 %v7235_v23  ;;  %v5643_v60 = vpack.c.bf16 %v3750_v46, %v3749_v19  ;;  %v3725_v35 = vld [vmem:[%s12349_s5 + $0xf0] sm:$0xff]  ;;  %v3739_v19 = vld [vmem:[%s12349_s5 + $0x160] sm:$0xff]  ;;  %v3740_v46 = vld [vmem:[%s12349_s5 + $0x168] sm:$0xff] }
 0x3ea   :  { %v3737_v25 = vld [vmem:[%s12349_s5 + $0x150] sm:$0xff] }
 0x3ec   :  { %5598 = vmatpush3.bf16.msk.msra.mxu1 %vm10603_vm6, %v5596_v52  ;;  %v5621_v52 = vpack.c.bf16 %v3706_v5, %v3705_v45  ;;  %v3755_v45 = vld [vmem:[%s12349_s5 + $0x1e0] sm:$0xff]  ;;  %vm3528_vm6 = vcmask 916480  }
 0x3ed   :  { %5632 = vmatprep.subr.bf16.mxu1 %v5631_v14 }
 0x3ee   :  { %v10989_v53 = vpop.permute.xlu1 %2940 }
 0x3ef   :  { %5382 = vmatmul.mubr.msk.f32.vlgmr.msra.gmra.mrb[12].mxu1 %vm2943_vm8, %v10636_v26  ;;  %v3695_v26 = vld [vmem:[%s12349_s5] sm:$0xff]  ;;  %vm3549_vm8 = vcmask 195584  }
 0x3f0   :  { %v5601_v48 = vpack.c.bf16 %v3696_v12, %v3695_v26  ;;  %5634 = vmatpush3.bf16.msra.mxu1 %v5633_v42  ;;  %v3724_v26 = vld [vmem:[%s12349_s5 + $0xe8] sm:$0xff] }
 0x3f1   :  { %5636 = vmatprep.subr.bf16.mxu1 %v5635_v18  ;;  %v5623_v12 = vpack.c.bf16 %v3724_v26, %v3723_v30  ;;  %v5649_v18 = vpack.c.bf16 %v3736_v50, %v3735_v11 }
 0x3f2   :  { %5602 = vmatpush3.bf16.msra.mxu0 %v5601_v48  ;;  %v3708_v48 = vld [vmem:[%s12349_s5 + $0x68] sm:$0xff] }
 0x3f3   :  { %5604 = vmatprep.subr.bf16.mxu0 %v5603_v54  ;;  %v5645_v54 = vpack.c.bf16 %v3734_v55, %v3733_v51  ;;  %v5625_v16 = vpack.c.bf16 %v3708_v48, %v3707_v43  ;;  %v5657_v55 = vpack.c.bf16 %v3740_v46, %v3739_v19  ;;  %v3757_v48 = vld [vmem:[%s12349_s5 + $0x1f0] sm:$0xff] }
 0x3f4   :  { %5638 = vmatpush3.bf16.msra.mxu1 %v5637_v44  ;;  %v5629_v44 = vpack.c.bf16 %v3710_v47, %v3709_v6 }
 0x3f5   :  { %5640 = vmatprep.subr.bf16.mxu1 %v5639_v1  ;;  %v3775_v1 = vld [vmem:[%s12349_s5 + $0x280] sm:$0xff] }
 0x3f6   :  { %5606 = vmatpush3.bf16.msra.mxu0 %v5605_v13 }
 0x3f7   :  { %5608 = vmatprep.subr.bf16.mxu0 %v5607_v40 }
 0x3f8   :  { %5642 = vmatpush3.bf16.msra.mxu1 %v5641_v38  ;;  %v3756_v38 = vld [vmem:[%s12349_s5 + $0x1e8] sm:$0xff] }
 0x3f9   :  { %5644 = vmatprep.subr.bf16.mxu1 %v5643_v60  ;;  %v5655_v5 = vpack.c.bf16 %v3756_v38, %v3755_v45 }
 0x3fa   :  { %5610 = vmatpush3.bf16.msra.mxu0 %v5609_v28 }
 0x3fb   :  { %5612 = vmatprep.subr.bf16.mxu0 %v5611_v33  ;;  %v3751_v33 = vld [vmem:[%s12349_s5 + $0x1c0] sm:$0xff] }
 0x3fc   :  { %5646 = vmatpush3.bf16.msra.mxu1 %v5645_v54  ;;  %v3758_v54 = vld [vmem:[%s12349_s5 + $0x1f8] sm:$0xff] }
 0x3fe   :  { %5614 = vmatpush3.bf16.msra.mxu0 %v5613_v29  ;;  %v5647_v29 = vpack.c.bf16 %v3752_v32, %v3751_v33 }
 0x3ff   :  { %5616 = vmatprep.subr.bf16.mxu0 %v5615_v8 }
 0x400   :  { %5648 = vmatprep.subr.bf16.mxu1 %v5647_v29 }
 0x401   :  { %5650 = vmatpush3.bf16.msra.mxu1 %v5649_v18 }
 0x402   :  { %5618 = vmatpush3.bf16.msra.mxu0 %v5617_v63  ;;  %5652 = vmatprep.subr.bf16.mxu1 %v5651_v2 }
 0x403   :  { %5620 = vmatprep.subr.bf16.mxu0 %v5619_v57  ;;  %v3776_v57 = vld [vmem:[%s12349_s5 + $0x288] sm:$0xff] }
 0x404   :  { %v5663_v20 = vpack.c.bf16 %v3776_v57, %v3775_v1 }
 0x406   :  { %5622 = vmatpush3.bf16.msra.mxu0 %v5621_v52 }
 0x407   :  { %5624 = vmatprep.subr.bf16.mxu0 %v5623_v12 }
 0x40a   :  { %5626 = vmatpush3.bf16.msra.mxu0 %v5625_v16 }
 0x454   :  { %v10847_v59 = vpop.f32.mrb[4].mxu0 }
 0x455   :  { %v10849_v7 = vpop.f32.mrb[5].mxu0  ;;  %v3036_v31 = vadd.f32 %v10847_v59, %v10989_v53 }
 0x456   :  { %v3038_v63 = vadd.f32 %v10849_v7, %v10989_v53  ;;  %v5653_v7 = vpack.c.bf16 %v3738_v24, %v3737_v25 }
 0x457   :  { %v11067_v52 = vmax.f32 %v3036_v31, 0.0 }
 0x458   :  { %v10851_v4 = vpop.f32.mrb[8].mxu1  ;;  %v11069_v60 = vmax.f32 %v3038_v63, 0.0  ;;  %5654 = vmatpush3.bf16.msra.mxu1 %v5653_v7 }
 0x459   :  { %v10853_v62 = vpop.f32.mrb[9].mxu1  ;;  %5656 = vmatprep.subr.bf16.mxu1 %v5655_v5  ;;  %v3107_v17 = vadd.f32 %v10851_v4, %v10989_v53  ;;  %v3433_v63 = vrot.slane %v11067_v52, 2 }
 0x45a   :  { %v3459_v7 = vrot.slane %v11069_v60, 3 }
 0x45c   :  { %5658 = vmatpush3.bf16.msra.mxu1 %v5657_v55 }
 0x496   :  { %v10915_v34 = vpop.f32.mrb[6].mxu0 }
 0x497   :  { %v3179_v21 = vpop.f32.mrb[7].mxu0  ;;  %v3178_v16 = vadd.f32 %v10915_v34, %v10989_v53 }
 0x498   :  { %v3726_v21 = vld [vmem:[%s12349_s5 + $0xf8] sm:$0xff] }
 0x499   :  { %v5627_v27 = vpack.c.bf16 %v3726_v21, %v3725_v35  ;;  %v3808_v35 = vld [vmem:[%s12349_s5 + $0x388] sm:$0xff] }
 0x49b   :  { %5628 = vmatprep.subr.bf16.mxu0 %v5627_v27 }
 0x49c   :  { %5630 = vmatpush3.bf16.msra.mxu0 %v5629_v44 }
 0x49d   :  { %5664 = vmatprep.subr.bf16.mxu0 %v5663_v20 }
 0x4aa   :  { %v3247_v15 = vpop.f32.mrb[10].mxu1 }
 0x4ab   :  { %v3248_v41 = vadd.f32 %v3247_v15, %v10989_v53  ;;  %v3249_v13 = vpop.f32.mrb[11].mxu1  ;;  %v3741_v15 = vld [vmem:[%s12349_s5 + $0x170] sm:$0xff] }
 0x4ac   :  { %v3250_v9 = vadd.f32 %v3249_v13, %v10989_v53  ;;  %v3409_v13 = vrot.slane %v11069_v60, 1 }
 0x4ad   :  { %v10993_v0 = vmax.f32 %v3248_v41, 0.0  ;;  %v3408_v41 = vrot.slane %v11067_v52, 1 }
 0x4ae   :  { %v3399_v61 = vmax.f32 %v3250_v9, 0.0  ;;  %v5659_v9 = vpack.c.bf16 %v3758_v54, %v3757_v48 }
 0x4af   :  { %3518 = vrot.lane.b32.xlu1 %v10993_v0, %s7237_s21  ;;  %v3534_v40 = vrot.slane %v10993_v0, 1  ;;  %v3556_v58 = vrot.slane %v10993_v0, 2  ;;  %v3578_v14 = vrot.slane %v10993_v0, 3  ;;  %v7121_v32 = vpack.i.bf16 %v3409_v13, %v3408_v41 }
 0x4b0   :  { %v3535_v22 = vrot.slane %v3399_v61, 1  ;;  %v3557_v3 = vrot.slane %v3399_v61, 2  ;;  %v3579_v56 = vrot.slane %v3399_v61, 3  ;;  %v3601_v51 = vrot.slane %v3399_v61, 4  ;;  %5660 = vmatprep.subr.bf16.mxu1 %v5659_v9  ;;  %v3759_v9 = vld [vmem:[%s12349_s5 + $0x200] sm:$0xff] }
 0x4b1   :  { %v3600_v46 = vrot.slane %v10993_v0, 4  ;;  %v3485_v0 = vrot.slane %v11069_v60, 4 }
 0x4b2   :  { %v11000_v10 = vpack.i.bf16 %v3535_v22, %v3534_v40  ;;  %v11002_v42 = vpack.i.bf16 %v3557_v3, %v3556_v58  ;;  %v11004_v28 = vpack.i.bf16 %v3579_v56, %v3578_v14  ;;  %v3109_v40 = vadd.f32 %v10853_v62, %v10989_v53  ;;  %v3807_v62 = vld [vmem:[%s12349_s5 + $0x380] sm:$0xff] }
 0x4b3   :  { %v11100_v56 = vmax.f32 %v3178_v16, 0.0  ;;  %v5695_v11 = vpack.c.bf16 %v3808_v35, %v3807_v62 }
 0x4b4   :  { %v11110_v29 = vmax.f32 %v3109_v40, 0.0 }
 0x4b5   :  { %v3412_v31 = vrot.slane %v11100_v56, 1  ;;  %v3462_v5 = vrot.slane %v11100_v56, 3 }
 0x4b6   :  { %v3411_v49 = vrot.slane %v11110_v29, 1  ;;  %v3436_v1 = vrot.slane %v11110_v29, 2  ;;  %v3461_v19 = vrot.slane %v11110_v29, 3 }
 0x4b8   :  { %v3318_v8 = vpop.f32.mrb[8].mxu0  ;;  %v7136_v25 = vpack.i.bf16 %v3412_v31, %v3411_v49 }
 0x4b9   :  { %v3319_v59 = vadd.f32 %v3318_v8, %v10989_v53  ;;  %v3320_v37 = vpop.f32.mrb[9].mxu0 }
 0x4ba   :  { %v3321_v26 = vadd.f32 %v3320_v37, %v10989_v53  ;;  %v11130_v37 = vmax.f32 %v3107_v17, 0.0 }
 0x4bb   :  { %v11053_v39 = vmax.f32 %v3319_v59, 0.0  ;;  %v3434_v59 = vrot.slane %v11069_v60, 2 }
 0x4bc   :  { %v11095_v58 = vmax.f32 %v3321_v26, 0.0  ;;  %v3410_v4 = vrot.slane %v11130_v37, 1  ;;  %v3435_v38 = vrot.slane %v11130_v37, 2 }
 0x4bd   :  { %v7111_v30 = vpack.i.bf16 %v11053_v39, %v3399_v61  ;;  %v3602_v12 = vrot.slane %v11053_v39, 4  ;;  %v3742_v61 = vld [vmem:[%s12349_s5 + $0x178] sm:$0xff]  ;;  %v7141_v2 = vpack.i.bf16 %v3434_v59, %v3433_v63  ;;  %v3536_v24 = vrot.slane %v11053_v39, 1  ;;  %v3764_v63 = vld [vmem:[%s12349_s5 + $0x228] sm:$0xff] }
 0x4be   :  { %v5661_v22 = vpack.c.bf16 %v3742_v61, %v3741_v15  ;;  %v3559_v21 = vrot.slane %v11095_v58, 2  ;;  %v3581_v18 = vrot.slane %v11095_v58, 3  ;;  %v3558_v45 = vrot.slane %v11053_v39, 2  ;;  %v3760_v61 = vld [vmem:[%s12349_s5 + $0x208] sm:$0xff] }
 0x4bf   :  { %7112 = vrot.lane.b32.xlu0 %v7111_v30, %s7237_s21  ;;  %v11075_v43 = vpack.i.bf16 %v3602_v12, %v3601_v51  ;;  %v7171_v30 = vpack.i.bf16 %v3461_v19, %v3462_v5  ;;  %v3580_v26 = vrot.slane %v11053_v39, 3  ;;  %v3460_v51 = vrot.slane %v11130_v37, 3  ;;  %v3810_v5 = vld [vmem:[%s12349_s5 + $0x398] sm:$0xff] }
 0x4c0   :  { %5662 = vmatpush3.bf16.msra.mxu1 %v5661_v22  ;;  %v3486_v12 = vrot.slane %v11130_v37, 4  ;;  %v3603_v48 = vrot.slane %v11095_v58, 4  ;;  %v3487_v39 = vrot.slane %v11110_v29, 4  ;;  %v3488_v15 = vrot.slane %v11100_v56, 4  ;;  %v3778_v22 = vld [vmem:[%s12349_s5 + $0x298] sm:$0xff] }
 0x4c1   :  { %5696 = vmatprep.subr.bf16.mxu1 %v5695_v11  ;;  %v5665_v35 = vpack.c.bf16 %v3760_v61, %v3759_v9  ;;  %v3767_v9 = vld [vmem:[%s12349_s5 + $0x240] sm:$0xff]  ;;  %v3768_v61 = vld [vmem:[%s12349_s5 + $0x248] sm:$0xff] }
 0x4c2   :  { %v3389_v14 = vpop.f32.mrb[12].mxu1  ;;  %v7181_v55 = vpack.i.bf16 %v3486_v12, %v3485_v0  ;;  %v3783_v12 = vld [vmem:[%s12349_s5 + $0x2c0] sm:$0xff]  ;;  %v3784_v0 = vld [vmem:[%s12349_s5 + $0x2c8] sm:$0xff] }
 0x4c3   :  { %v3390_v3 = vadd.f32 %v3389_v14, %v10989_v53  ;;  %7117 = vrot.lane.b32.xlu0 %v11000_v10, %s7238_s16  ;;  %v5383_v34 = vpop.f32.mrb[13].mxu1  ;;  %v3537_v10 = vrot.slane %v11095_v58, 1  ;;  %v3437_v53 = vrot.slane %v11100_v56, 2  ;;  %v3777_v14 = vld [vmem:[%s12349_s5 + $0x290] sm:$0xff] }
 0x4c4   :  { %v5667_v11 = vpack.c.bf16 %v3778_v22, %v3777_v14  ;;  %v3785_v14 = vld [vmem:[%s12349_s5 + $0x2d0] sm:$0xff]  ;;  %v3786_v22 = vld [vmem:[%s12349_s5 + $0x2d8] sm:$0xff] }
 0x4c5   :  { %v11102_v33 = vmax.f32 %v3390_v3, 0.0  ;;  %v7156_v57 = vpack.i.bf16 %v3437_v53, %v3436_v1 }
 0x4c7   :  { %7122 = vrot.lane.b32.xlu0 %v7121_v32, %s7239_s0  ;;  %3526 = vrot.lane.b32.xlu1 %v11102_v33, %s7237_s21  ;;  %v3538_v50 = vrot.slane %v11102_v33, 1  ;;  %v3560_v27 = vrot.slane %v11102_v33, 2  ;;  %v3582_v6 = vrot.slane %v11102_v33, 3  ;;  %v3604_v54 = vrot.slane %v11102_v33, 4 }
 0x4c9   :  { %v7131_v47 = vpack.i.bf16 %v3538_v50, %v3537_v10  ;;  %v7151_v8 = vpack.i.bf16 %v3560_v27, %v3559_v21  ;;  %v7166_v44 = vpack.i.bf16 %v3581_v18, %v3582_v6  ;;  %v3761_v50 = vld [vmem:[%s12349_s5 + $0x210] sm:$0xff]  ;;  %v3762_v27 = vld [vmem:[%s12349_s5 + $0x218] sm:$0xff] }
 0x4cb   :  { %3524 = vrot.lane.b32.xlu1 %v11095_v58, %s7237_s21  ;;  %7132 = vrot.lane.b32.xlu0 %v7131_v47, %s7238_s16  ;;  %s7241_s21 = smov 80  }
 0x4cf   :  { %7127 = vrot.lane.b32.xlu1 %v11002_v42, %s7240_s22  ;;  %7137 = vrot.lane.b32.xlu0 %v7136_v25, %s7239_s0  ;;  %v3458_v42 = vrot.slane %v11067_v52, 3  ;;  %v3763_v25 = vld [vmem:[%s12349_s5 + $0x220] sm:$0xff] }
 0x4d1   :  { %v7161_v20 = vpack.i.bf16 %v3459_v7, %v3458_v42  ;;  %v3792_v42 = vld [vmem:[%s12349_s5 + $0x308] sm:$0xff] }
 0x4d3   :  { %7142 = vrot.lane.b32.xlu1 %v7141_v2, %s7241_s21  ;;  %3543 = vrot.lane.b32.xlu0 %v3536_v24, %s7238_s16  ;;  %v3781_v2 = vld [vmem:[%s12349_s5 + $0x2b0] sm:$0xff]  ;;  %v3782_v24 = vld [vmem:[%s12349_s5 + $0x2b8] sm:$0xff] }
 0x4d7   :  { %3417 = vrot.lane.b32.xlu1 %v3410_v4, %s7239_s0  ;;  %7152 = vrot.lane.b32.xlu0 %v7151_v8, %s7240_s22 }
 0x4db   :  { %7147 = vrot.lane.b32.xlu1 %v11004_v28, %s7242_s23  ;;  %7157 = vrot.lane.b32.xlu0 %v7156_v57, %s7241_s21  ;;  %v3484_v28 = vrot.slane %v11067_v52, 4  ;;  %v3791_v57 = vld [vmem:[%s12349_s5 + $0x300] sm:$0xff] }
 0x4df   :  { %7162 = vrot.lane.b32.xlu1 %v7161_v20, %s7243_s24  ;;  %3565 = vrot.lane.b32.xlu0 %v3558_v45, %s7240_s22  ;;  %v5673_v45 = vpack.c.bf16 %v3764_v63, %v3763_v25  ;;  %v3787_v25 = vld [vmem:[%s12349_s5 + $0x2e0] sm:$0xff]  ;;  %v3788_v63 = vld [vmem:[%s12349_s5 + $0x2e8] sm:$0xff] }
 0x4e3   :  { %3442 = vrot.lane.b32.xlu1 %v3435_v38, %s7241_s21  ;;  %7167 = vrot.lane.b32.xlu0 %v7166_v44, %s7242_s23  ;;  %v5669_v44 = vpack.c.bf16 %v3762_v27, %v3761_v50  ;;  %v3809_v38 = vld [vmem:[%s12349_s5 + $0x390] sm:$0xff]  ;;  %v5681_v50 = vpack.c.bf16 %v3768_v61, %v3767_v9 }
 0x4e4   :  { %v3813_v27 = vld [vmem:[%s12349_s5 + $0x3b0] sm:$0xff] }
 0x4e7   :  { %3605 = vrot.lane.b32.xlu1 %v3600_v46, %s7244_s25  ;;  %7172 = vrot.lane.b32.xlu0 %v7171_v30, %s7243_s24  ;;  %v5675_v30 = vpack.c.bf16 %v3782_v24, %v3781_v2 }
 0x4eb   :  { %3489 = vrot.lane.b32.xlu1 %v3484_v28, %s7245_s26  ;;  %3587 = vrot.lane.b32.xlu0 %v3580_v26, %s7242_s23  ;;  %v3765_v28 = vld [vmem:[%s12349_s5 + $0x230] sm:$0xff]  ;;  %v3766_v26 = vld [vmem:[%s12349_s5 + $0x238] sm:$0xff] }
 0x4ef   :  { %3467 = vrot.lane.b32.xlu1 %v3460_v51, %s7243_s24  ;;  %7177 = vrot.lane.b32.xlu0 %v11075_v43, %s7244_s25  ;;  %v5697_v51 = vpack.c.bf16 %v3792_v42, %v3791_v57  ;;  %v3798_v57 = vld [vmem:[%s12349_s5 + $0x338] sm:$0xff] }
 0x4f3   :  { %7182 = vrot.lane.b32.xlu1 %v7181_v55, %s7245_s26  ;;  %3611 = vrot.lane.b32.xlu0 %v3603_v48, %s7244_s25 }
 0x4f7   :  { %3613 = vrot.lane.b32.xlu1 %v3604_v54, %s7244_s25  ;;  %3495 = vrot.lane.b32.xlu0 %v3487_v39, %s7245_s26 }
 0x4fb   :  { %3497 = vrot.lane.b32.xlu1 %v3488_v15, %s7245_s26  ;;  %v5699_v15 = vpack.c.bf16 %v3810_v5, %v3809_v38  ;;  %v5687_v5 = vpack.c.bf16 %v3788_v63, %v3787_v25 }
 0x521   :  { %v3519_v13 = vpop.permute.xlu1 %3518 }
 0x531   :  { %v7113_v16 = vpop.permute.xlu0 %7112 }
 0x532   :  { %v7115_v41 = vunpack.i.h.bf16 %v7113_v16  ;;  %v7114_v43 = vunpack.i.l.bf16 %v7113_v16  ;;  %v3793_v16 = vld [vmem:[%s12349_s5 + $0x310] sm:$0xff] }
 0x534   :  { %v3529_v40 = vsel %vm3528_vm6, %v3519_v13, %v7114_v43  ;;  %v3530_v58 = vsel %vm3528_vm6, %v7114_v43, %v7115_v41  ;;  %v5677_v43 = vpack.c.bf16 %v3766_v26, %v3765_v28  ;;  %v3811_v13 = vld [vmem:[%s12349_s5 + $0x3a0] sm:$0xff]  ;;  %v3789_v28 = vld [vmem:[%s12349_s5 + $0x2f0] sm:$0xff]  ;;  %v3790_v26 = vld [vmem:[%s12349_s5 + $0x2f8] sm:$0xff] }
 0x535   :  { %v3629_v3 = vrot.slane %v3529_v40, 7  ;;  %v11169_v34 = vpop.permute.xlu0 %7117  ;;  %v3630_v33 = vrot.slane %v3530_v58, 7 }
 0x536   :  { %v7120_v32 = vunpack.i.h.bf16 %v11169_v34  ;;  %v7119_v62 = vunpack.i.l.bf16 %v11169_v34 }
 0x537   :  { %v3674_v10 = vsel %vm817_vm2, %v11069_v60, %v3630_v33  ;;  %v3673_v21 = vsel %vm817_vm2, %v11067_v52, %v3629_v3  ;;  %v3779_v52 = vld [vmem:[%s12349_s5 + $0x2a0] sm:$0xff]  ;;  %v3780_v60 = vld [vmem:[%s12349_s5 + $0x2a8] sm:$0xff] }
 0x538   :  { %v3550_v18 = vsel %vm3549_vm8, %v7119_v62, %v7120_v32  ;;  %4114 = vmatprep.mubr.f32.mxu0 %v3674_v10  ;;  %v5671_v17 = vpack.c.bf16 %v3780_v60, %v3779_v52  ;;  %v3795_v10 = vld [vmem:[%s12349_s5 + $0x320] sm:$0xff]  ;;  %v5683_v52 = vpack.c.bf16 %v3786_v22, %v3785_v14  ;;  %v3769_v60 = vld [vmem:[%s12349_s5 + $0x250] sm:$0xff]  ;;  %v3840_v14 = vld [vmem:[%s12349_s5 + $0x488] sm:$0xff] }
 0x539   :  { %4115 = vmatmul.mubr.f32.vlgmr.msra.gmra.mrb[10].mxu0 %v3673_v21  ;;  %v11194_v6 = vpop.permute.xlu0 %7122  ;;  %v11196_v47 = vpop.permute.xlu1 %3526  ;;  %v3634_v49 = vrot.slane %v3550_v18, 7  ;;  %v3796_v21 = vld [vmem:[%s12349_s5 + $0x328] sm:$0xff]  ;;  %v3814_v18 = vld [vmem:[%s12349_s5 + $0x3b8] sm:$0xff] }
 0x53a   :  { %5666 = vmatpush3.bf16.msra.mxu0 %v5665_v35  ;;  %v7125_v31 = vunpack.i.h.bf16 %v11194_v6  ;;  %v7124_v8 = vunpack.i.l.bf16 %v11194_v6  ;;  %v3621_v22 = vsel %vm3423_vm0, %v11196_v47, %v7119_v62 }
 0x53b   :  { %5668 = vmatprep.subr.bf16.mxu0 %v5667_v11  ;;  %v3633_v25 = vrot.slane %v3621_v22, 7  ;;  %v3872_v22 = vld [vmem:[%s12349_s5 + $0x588] sm:$0xff] }
 0x53c   :  { %v3424_v59 = vsel %vm3423_vm0, %v7124_v8, %v7125_v31 }
 0x53d   :  { %v3525_v4 = vpop.permute.xlu1 %3524  ;;  %v11217_v53 = vpop.permute.xlu0 %7132  ;;  %v3678_v1 = vsel %vm817_vm2, %v3424_v59, %v3634_v49 }
 0x53e   :  { %5670 = vmatpush3.bf16.msra.mxu0 %v5669_v44  ;;  %v3531_v7 = vsel %vm3528_vm6, %v7115_v41, %v3525_v4  ;;  %v3532_v20 = vsel %vm3528_vm6, %v3525_v4, %v11196_v47  ;;  %4254 = vmatprep.mubr.f32.mxu0 %v3678_v1  ;;  %v3794_v41 = vld [vmem:[%s12349_s5 + $0x318] sm:$0xff]  ;;  %v7134_v40 = vunpack.i.l.bf16 %v11217_v53  ;;  %v5707_v4 = vpack.c.bf16 %v3814_v18, %v3813_v27  ;;  %v3797_v1 = vld [vmem:[%s12349_s5 + $0x330] sm:$0xff]  ;;  %v3819_v47 = vld [vmem:[%s12349_s5 + $0x3e0] sm:$0xff] }
 0x53f   :  { %v3631_v19 = vrot.slane %v3531_v7, 7  ;;  %v3632_v46 = vrot.slane %v3532_v20, 7  ;;  %5672 = vmatprep.subr.bf16.mxu0 %v5671_v17  ;;  %v5701_v58 = vpack.c.bf16 %v3794_v41, %v3793_v16  ;;  %v3770_v44 = vld [vmem:[%s12349_s5 + $0x258] sm:$0xff]  ;;  %v5705_v17 = vpack.c.bf16 %v3796_v21, %v3795_v10  ;;  %v3815_v20 = vld [vmem:[%s12349_s5 + $0x3c0] sm:$0xff]  ;;  %v3817_v16 = vld [vmem:[%s12349_s5 + $0x3d0] sm:$0xff] }
 0x540   :  { %v5685_v7 = vpack.c.bf16 %v3770_v44, %v3769_v60  ;;  %v3818_v41 = vld [vmem:[%s12349_s5 + $0x3d8] sm:$0xff]  ;;  %v3823_v44 = vld [vmem:[%s12349_s5 + $0x400] sm:$0xff] }
 0x541   :  { %v11247_v55 = vpop.permute.xlu1 %7127  ;;  %v11249_v48 = vpop.permute.xlu0 %7137  ;;  %v3676_v54 = vsel %vm817_vm2, %v11110_v29, %v3632_v46  ;;  %v3675_v39 = vsel %vm817_vm2, %v11130_v37, %v3631_v19  ;;  %v3812_v29 = vld [vmem:[%s12349_s5 + $0x3a8] sm:$0xff]  ;;  %v5679_v37 = vpack.c.bf16 %v3784_v0, %v3783_v12  ;;  %v3771_v19 = vld [vmem:[%s12349_s5 + $0x260] sm:$0xff]  ;;  %v5715_v21 = vpack.c.bf16 %v3818_v41, %v3817_v16 }
 0x542   :  { %5674 = vmatpush3.bf16.msra.mxu0 %v5673_v45  ;;  %4184 = vmatprep.mubr.f32.mxu1 %v3676_v54  ;;  %v5703_v35 = vpack.c.bf16 %v3812_v29, %v3811_v13  ;;  %v7139_v49 = vunpack.i.l.bf16 %v11249_v48  ;;  %v3816_v45 = vld [vmem:[%s12349_s5 + $0x3c8] sm:$0xff]  ;;  %v3799_v54 = vld [vmem:[%s12349_s5 + $0x340] sm:$0xff]  ;;  %v3773_v13 = vld [vmem:[%s12349_s5 + $0x270] sm:$0xff]  ;;  %v7129_v9 = vunpack.i.l.bf16 %v11247_v55 }
 0x543   :  { %4185 = vmatmul.mubr.f32.vlgmr.msra.gmra.mrb[14].mxu1 %v3675_v39  ;;  %5676 = vmatprep.subr.bf16.mxu0 %v5675_v30  ;;  %v3772_v46 = vld [vmem:[%s12349_s5 + $0x268] sm:$0xff]  ;;  %v5709_v30 = vpack.c.bf16 %v3798_v57, %v3797_v1  ;;  %v5711_v0 = vpack.c.bf16 %v3816_v45, %v3815_v20  ;;  %v3774_v29 = vld [vmem:[%s12349_s5 + $0x278] sm:$0xff]  ;;  %v3803_v45 = vld [vmem:[%s12349_s5 + $0x360] sm:$0xff] }
 0x544   :  { %5698 = vmatpush3.bf16.msra.mxu1 %v5697_v51  ;;  %v3800_v39 = vld [vmem:[%s12349_s5 + $0x348] sm:$0xff]  ;;  %v5693_v62 = vpack.c.bf16 %v3774_v29, %v3773_v13  ;;  %v3842_v1 = vld [vmem:[%s12349_s5 + $0x498] sm:$0xff]  ;;  %v3805_v29 = vld [vmem:[%s12349_s5 + $0x370] sm:$0xff] }
 0x545   :  { %v11280_v3 = vpop.permute.xlu1 %7142  ;;  %v11282_v33 = vpop.permute.xlu0 %3543  ;;  %5700 = vmatprep.subr.bf16.mxu1 %v5699_v15  ;;  %v5689_v15 = vpack.c.bf16 %v3772_v46, %v3771_v19  ;;  %v5713_v61 = vpack.c.bf16 %v3800_v39, %v3799_v54  ;;  %v3843_v39 = vld [vmem:[%s12349_s5 + $0x4a0] sm:$0xff] }
 0x546   :  { %5678 = vmatpush3.bf16.msra.mxu0 %v5677_v43  ;;  %v3552_v11 = vsel %vm3549_vm8, %v11282_v33, %v7134_v40  ;;  %v5691_v43 = vpack.c.bf16 %v3790_v26, %v3789_v28  ;;  %v7145_v27 = vunpack.i.h.bf16 %v11280_v3  ;;  %v7144_v18 = vunpack.i.l.bf16 %v11280_v3  ;;  %v3825_v28 = vld [vmem:[%s12349_s5 + $0x410] sm:$0xff]  ;;  %v3826_v26 = vld [vmem:[%s12349_s5 + $0x418] sm:$0xff] }
 0x547   :  { %5680 = vmatprep.subr.bf16.mxu0 %v5679_v37  ;;  %v3636_v59 = vrot.slane %v3552_v11, 7  ;;  %v7130_v37 = vunpack.i.h.bf16 %v11247_v55  ;;  %v3801_v11 = vld [vmem:[%s12349_s5 + $0x350] sm:$0xff] }
 0x548   :  { %5702 = vmatpush3.bf16.msra.mxu1 %v5701_v58  ;;  %v3839_v58 = vld [vmem:[%s12349_s5 + $0x480] sm:$0xff]  ;;  %v3449_v19 = vsel %vm3448_vm10, %v7144_v18, %v7145_v27 }
 0x549   :  { %v11313_v2 = vpop.permute.xlu1 %3417  ;;  %v11315_v24 = vpop.permute.xlu0 %7152  ;;  %5704 = vmatprep.subr.bf16.mxu1 %v5703_v35  ;;  %v5727_v60 = vpack.c.bf16 %v3840_v14, %v3839_v58  ;;  %v5733_v58 = vpack.c.bf16 %v3826_v26, %v3825_v28  ;;  %v3871_v14 = vld [vmem:[%s12349_s5 + $0x580] sm:$0xff]  ;;  %v3857_v26 = vld [vmem:[%s12349_s5 + $0x510] sm:$0xff] }
 0x54a   :  { %5682 = vmatpush3.bf16.msra.mxu0 %v5681_v50  ;;  %v3426_v42 = vsel %vm3423_vm0, %v11313_v2, %v7139_v49  ;;  %v3802_v50 = vld [vmem:[%s12349_s5 + $0x358] sm:$0xff] }
 0x54b   :  { %5684 = vmatprep.subr.bf16.mxu0 %v5683_v52  ;;  %v3680_v38 = vsel %vm817_vm2, %v3426_v42, %v3636_v59  ;;  %v3820_v52 = vld [vmem:[%s12349_s5 + $0x3e8] sm:$0xff]  ;;  %v5717_v63 = vpack.c.bf16 %v3802_v50, %v3801_v11  ;;  %v3572_v59 = vsel %vm3571_vm3, %v7129_v9, %v7130_v37  ;;  %v3827_v11 = vld [vmem:[%s12349_s5 + $0x420] sm:$0xff] }
 0x54c   :  { %5706 = vmatpush3.bf16.msra.mxu1 %v5705_v17  ;;  %4324 = vmatprep.mubr.f32.mxu1 %v3680_v38  ;;  %v3824_v17 = vld [vmem:[%s12349_s5 + $0x408] sm:$0xff]  ;;  %v5719_v20 = vpack.c.bf16 %v3820_v52, %v3819_v47  ;;  %v3638_v46 = vrot.slane %v3572_v59, 7  ;;  %v3845_v52 = vld [vmem:[%s12349_s5 + $0x4b0] sm:$0xff]  ;;  %v3855_v59 = vld [vmem:[%s12349_s5 + $0x500] sm:$0xff] }
 0x54d   :  { %v11346_v51 = vpop.permute.xlu1 %7147  ;;  %v11348_v12 = vpop.permute.xlu0 %7157  ;;  %5708 = vmatprep.subr.bf16.mxu1 %v5707_v4  ;;  %v3841_v4 = vld [vmem:[%s12349_s5 + $0x490] sm:$0xff]  ;;  %v3804_v38 = vld [vmem:[%s12349_s5 + $0x368] sm:$0xff] }
 0x54e   :  { %5686 = vmatpush3.bf16.msra.mxu0 %v5685_v7  ;;  %v3509_v7 = vsel %vm3423_vm0, %v11100_v56, %v7124_v8  ;;  %v3821_v56 = vld [vmem:[%s12349_s5 + $0x3f0] sm:$0xff]  ;;  %v3822_v8 = vld [vmem:[%s12349_s5 + $0x3f8] sm:$0xff]  ;;  %v5721_v54 = vpack.c.bf16 %v3804_v38, %v3803_v45  ;;  %v3682_v16 = vsel %vm817_vm2, %v3449_v19, %v3638_v46  ;;  %v3828_v50 = vld [vmem:[%s12349_s5 + $0x428] sm:$0xff] }
 0x54f   :  { %5688 = vmatprep.subr.bf16.mxu0 %v5687_v5  ;;  %v5729_v5 = vpack.c.bf16 %v3824_v17, %v3823_v44  ;;  %v5723_v13 = vpack.c.bf16 %v3822_v8, %v3821_v56  ;;  %v3551_v44 = vsel %vm3549_vm8, %v7120_v32, %v11282_v33  ;;  %v5737_v32 = vpack.c.bf16 %v3828_v50, %v3827_v11  ;;  %v3873_v33 = vld [vmem:[%s12349_s5 + $0x590] sm:$0xff]  ;;  %v3850_v50 = vld [vmem:[%s12349_s5 + $0x4d8] sm:$0xff] }
 0x550   :  { %5710 = vmatpush3.bf16.msra.mxu1 %v5709_v30  ;;  %v5731_v30 = vpack.c.bf16 %v3842_v1, %v3841_v4  ;;  %v3856_v4 = vld [vmem:[%s12349_s5 + $0x508] sm:$0xff]  ;;  %v7159_v1 = vunpack.i.l.bf16 %v11348_v12  ;;  %v3829_v38 = vld [vmem:[%s12349_s5 + $0x430] sm:$0xff]  ;;  %v3635_v19 = vrot.slane %v3551_v44, 7 }
 0x551   :  { %v11380_v35 = vpop.permute.xlu1 %7162  ;;  %v11382_v10 = vpop.permute.xlu0 %3565  ;;  %5712 = vmatprep.subr.bf16.mxu1 %v5711_v0  ;;  %v3677_v0 = vsel %vm817_vm2, %v3509_v7, %v3633_v25  ;;  %v3874_v7 = vld [vmem:[%s12349_s5 + $0x598] sm:$0xff]  ;;  %v5761_v6 = vpack.c.bf16 %v3856_v4, %v3855_v59  ;;  %v3849_v11 = vld [vmem:[%s12349_s5 + $0x4d0] sm:$0xff]  ;;  %v3860_v59 = vld [vmem:[%s12349_s5 + $0x528] sm:$0xff] }
 0x552   :  { %5690 = vmatpush3.bf16.msra.mxu0 %v5689_v15  ;;  %v3844_v15 = vld [vmem:[%s12349_s5 + $0x4a8] sm:$0xff]  ;;  %v5763_v28 = vpack.c.bf16 %v3874_v7, %v3873_v33  ;;  %v3877_v33 = vld [vmem:[%s12349_s5 + $0x5b0] sm:$0xff]  ;;  %v3878_v7 = vld [vmem:[%s12349_s5 + $0x5b8] sm:$0xff] }
 0x553   :  { %5692 = vmatprep.subr.bf16.mxu0 %v5691_v43 }
 0x554   :  { %5714 = vmatpush3.bf16.msra.mxu1 %v5713_v61  ;;  %v3806_v61 = vld [vmem:[%s12349_s5 + $0x378] sm:$0xff] }
 0x555   :  { %v11415_v57 = vpop.permute.xlu1 %3442  ;;  %v11417_v42 = vpop.permute.xlu0 %7167  ;;  %5716 = vmatprep.subr.bf16.mxu1 %v5715_v21  ;;  %v5735_v21 = vpack.c.bf16 %v3844_v15, %v3843_v39  ;;  %v5725_v47 = vpack.c.bf16 %v3806_v61, %v3805_v29 }
 0x556   :  { %5694 = vmatpush3.bf16.msra.mxu0 %v5693_v62  ;;  %v7154_v62 = vunpack.i.l.bf16 %v11315_v24  ;;  %v3451_v56 = vsel %vm3448_vm10, %v11415_v57, %v7159_v1 }
 0x557   :  { %5728 = vmatprep.subr.bf16.mxu0 %v5727_v60  ;;  %v3846_v60 = vld [vmem:[%s12349_s5 + $0x4b8] sm:$0xff] }
 0x558   :  { %5718 = vmatpush3.bf16.msra.mxu1 %v5717_v63  ;;  %v5759_v63 = vpack.c.bf16 %v3872_v22, %v3871_v14  ;;  %v3574_v34 = vsel %vm3571_vm3, %v11382_v10, %v7154_v62  ;;  %v5739_v45 = vpack.c.bf16 %v3846_v60, %v3845_v52  ;;  %v3832_v14 = vld [vmem:[%s12349_s5 + $0x448] sm:$0xff] }
 0x559   :  { %4255 = vmatmul.mubr.f32.vlgmr.msra.gmra.mrb[12].mxu0 %v3677_v0  ;;  %v11454_v41 = vpop.permute.xlu1 %3605  ;;  %v11456_v43 = vpop.permute.xlu0 %7172  ;;  %5720 = vmatprep.subr.bf16.mxu1 %v5719_v20  ;;  %v3425_v20 = vsel %vm3423_vm0, %v7125_v31, %v11313_v2  ;;  %v3847_v31 = vld [vmem:[%s12349_s5 + $0x4c0] sm:$0xff]  ;;  %v3848_v2 = vld [vmem:[%s12349_s5 + $0x4c8] sm:$0xff]  ;;  %v3640_v8 = vrot.slane %v3574_v34, 7  ;;  %v3858_v0 = vld [vmem:[%s12349_s5 + $0x518] sm:$0xff] }
 0x55a   :  { %5730 = vmatpush3.bf16.msra.mxu0 %v5729_v5  ;;  %4394 = vmatprep.mubr.f32.mxu0 %v3682_v16  ;;  %v3830_v5 = vld [vmem:[%s12349_s5 + $0x438] sm:$0xff]  ;;  %v3679_v39 = vsel %vm817_vm2, %v3425_v20, %v3635_v19  ;;  %v3875_v16 = vld [vmem:[%s12349_s5 + $0x5a0] sm:$0xff]  ;;  %v5743_v61 = vpack.c.bf16 %v3848_v2, %v3847_v31  ;;  %v5747_v20 = vpack.c.bf16 %v3850_v50, %v3849_v11  ;;  %v3852_v31 = vld [vmem:[%s12349_s5 + $0x4e8] sm:$0xff] }
 0x55b   :  { %5732 = vmatprep.subr.bf16.mxu0 %v5731_v30  ;;  %v5741_v15 = vpack.c.bf16 %v3830_v5, %v3829_v38  ;;  %v3684_v29 = vsel %vm817_vm2, %v3451_v56, %v3640_v8  ;;  %v3834_v38 = vld [vmem:[%s12349_s5 + $0x458] sm:$0xff] }
 0x55c   :  { %5722 = vmatpush3.bf16.msra.mxu1 %v5721_v54 }
 0x55d   :  { %v11487_v17 = vpop.permute.xlu1 %3489  ;;  %v11489_v25 = vpop.permute.xlu0 %3587  ;;  %5724 = vmatprep.subr.bf16.mxu1 %v5723_v13  ;;  %v3876_v13 = vld [vmem:[%s12349_s5 + $0x5a8] sm:$0xff] }
 0x55e   :  { %5734 = vmatpush3.bf16.msra.mxu0 %v5733_v58  ;;  %v3831_v58 = vld [vmem:[%s12349_s5 + $0x440] sm:$0xff]  ;;  %v5767_v44 = vpack.c.bf16 %v3876_v13, %v3875_v16 }
 0x55f   :  { %5736 = vmatprep.subr.bf16.mxu0 %v5735_v21  ;;  %v5765_v21 = vpack.c.bf16 %v3858_v0, %v3857_v26  ;;  %v5771_v26 = vpack.c.bf16 %v3878_v7, %v3877_v33  ;;  %v3861_v0 = vld [vmem:[%s12349_s5 + $0x530] sm:$0xff] }
 0x560   :  { %5726 = vmatpush3.bf16.msra.mxu1 %v5725_v47  ;;  %v3881_v7 = vld [vmem:[%s12349_s5 + $0x5d0] sm:$0xff] }
 0x561   :  { %v11528_v46 = vpop.permute.xlu1 %3467  ;;  %v11530_v30 = vpop.permute.xlu0 %7177  ;;  %5760 = vmatprep.subr.bf16.mxu1 %v5759_v63  ;;  %v3859_v63 = vld [vmem:[%s12349_s5 + $0x520] sm:$0xff] }
 0x562   :  { %5738 = vmatpush3.bf16.msra.mxu0 %v5737_v32  ;;  %v7179_v54 = vunpack.i.l.bf16 %v11530_v30  ;;  %v7180_v22 = vunpack.i.h.bf16 %v11530_v30  ;;  %v5745_v32 = vpack.c.bf16 %v3832_v14, %v3831_v58  ;;  %v5769_v56 = vpack.c.bf16 %v3860_v59, %v3859_v63  ;;  %v3835_v14 = vld [vmem:[%s12349_s5 + $0x460] sm:$0xff]  ;;  %v3957_v30 = vld [vmem:[%s12349_s5 + $0x830] sm:$0xff] }
 0x563   :  { %4325 = vmatmul.mubr.f32.vlgmr.msra.gmra.mrb[16].mxu1 %v3679_v39  ;;  %5740 = vmatprep.subr.bf16.mxu0 %v5739_v45  ;;  %v3833_v45 = vld [vmem:[%s12349_s5 + $0x450] sm:$0xff]  ;;  %v3862_v39 = vld [vmem:[%s12349_s5 + $0x538] sm:$0xff]  ;;  %v3863_v59 = vld [vmem:[%s12349_s5 + $0x540] sm:$0xff] }
 0x564   :  { %5762 = vmatpush3.bf16.msra.mxu1 %v5761_v6  ;;  %4464 = vmatprep.mubr.f32.mxu1 %v3684_v29  ;;  %v3616_v47 = vsel %vm3615_vm12, %v11454_v41, %v7179_v54  ;;  %v3851_v6 = vld [vmem:[%s12349_s5 + $0x4e0] sm:$0xff]  ;;  %v5749_v13 = vpack.c.bf16 %v3834_v38, %v3833_v45  ;;  %v5773_v50 = vpack.c.bf16 %v3862_v39, %v3861_v0  ;;  %v3837_v38 = vld [vmem:[%s12349_s5 + $0x470] sm:$0xff] }
 0x565   :  { %v11564_v52 = vpop.permute.xlu1 %7182  ;;  %v11566_v60 = vpop.permute.xlu0 %3611  ;;  %5764 = vmatprep.subr.bf16.mxu1 %v5763_v28  ;;  %v3647_v5 = vrot.slane %v3616_v47, 7  ;;  %v3879_v29 = vld [vmem:[%s12349_s5 + $0x5c0] sm:$0xff]  ;;  %v5751_v58 = vpack.c.bf16 %v3852_v31, %v3851_v6  ;;  %v3853_v47 = vld [vmem:[%s12349_s5 + $0x4f0] sm:$0xff]  ;;  %v7150_v6 = vunpack.i.h.bf16 %v11346_v51  ;;  %v7149_v31 = vunpack.i.l.bf16 %v11346_v51 }
 0x566   :  { %5742 = vmatpush3.bf16.msra.mxu0 %v5741_v15  ;;  %v7184_v4 = vunpack.i.l.bf16 %v11564_v52  ;;  %v3618_v34 = vsel %vm3615_vm12, %v7180_v22, %v11566_v60  ;;  %v7185_v19 = vunpack.i.h.bf16 %v11564_v52  ;;  %v3865_v39 = vld [vmem:[%s12349_s5 + $0x550] sm:$0xff]  ;;  %v3617_v51 = vsel %vm3615_vm12, %v7179_v54, %v7180_v22  ;;  %v3958_v54 = vld [vmem:[%s12349_s5 + $0x838] sm:$0xff] }
 0x567   :  { %5744 = vmatprep.subr.bf16.mxu0 %v5743_v61  ;;  %v3649_v8 = vrot.slane %v3618_v34, 7  ;;  %v3880_v61 = vld [vmem:[%s12349_s5 + $0x5c8] sm:$0xff]  ;;  %v3986_v52 = vld [vmem:[%s12349_s5 + $0x918] sm:$0xff] }
 0x568   :  { %5766 = vmatpush3.bf16.msra.mxu1 %v5765_v21  ;;  %v3500_v2 = vsel %vm3499_vm13, %v11487_v17, %v7184_v4  ;;  %v3836_v21 = vld [vmem:[%s12349_s5 + $0x468] sm:$0xff]  ;;  %v5775_v63 = vpack.c.bf16 %v3880_v61, %v3879_v29  ;;  %v7165_v29 = vunpack.i.h.bf16 %v11380_v35  ;;  %v7164_v61 = vunpack.i.l.bf16 %v11380_v35 }
 0x569   :  { %v11602_v28 = vpop.permute.xlu0 %3495  ;;  %5768 = vmatprep.subr.bf16.mxu1 %v5767_v44  ;;  %v11611_v15 = vsel %vm817_vm2, %v3500_v2, %v3647_v5  ;;  %v3854_v44 = vld [vmem:[%s12349_s5 + $0x4f8] sm:$0xff]  ;;  %v3864_v34 = vld [vmem:[%s12349_s5 + $0x548] sm:$0xff]  ;;  %v5753_v33 = vpack.c.bf16 %v3836_v21, %v3835_v14  ;;  %v3883_v14 = vld [vmem:[%s12349_s5 + $0x5e0] sm:$0xff]  ;;  %v3501_v35 = vsel %vm3499_vm13, %v7184_v4, %v7185_v19 }
 0x56a   :  { %5746 = vmatpush3.bf16.msra.mxu0 %v5745_v32  ;;  %v3502_v16 = vsel %vm3499_vm13, %v7185_v19, %v11602_v28  ;;  %v7135_v32 = vunpack.i.h.bf16 %v11217_v53  ;;  %v5755_v45 = vpack.c.bf16 %v3854_v44, %v3853_v47  ;;  %v3838_v5 = vld [vmem:[%s12349_s5 + $0x478] sm:$0xff]  ;;  %v5777_v2 = vpack.c.bf16 %v3864_v34, %v3863_v59  ;;  %v3884_v21 = vld [vmem:[%s12349_s5 + $0x5e8] sm:$0xff]  ;;  %v3905_v59 = vld [vmem:[%s12349_s5 + $0x690] sm:$0xff] }
 0x56b   :  { %5748 = vmatprep.subr.bf16.mxu0 %v5747_v20  ;;  %v11630_v11 = vsel %vm817_vm2, %v3502_v16, %v3649_v8  ;;  %v3882_v20 = vld [vmem:[%s12349_s5 + $0x5d8] sm:$0xff]  ;;  %v3903_v8 = vld [vmem:[%s12349_s5 + $0x680] sm:$0xff]  ;;  %v3888_v47 = vld [vmem:[%s12349_s5 + $0x608] sm:$0xff]  ;;  %v5869_v19 = vpack.c.bf16 %v3958_v54, %v3957_v30 }
 0x56c   :  { %5770 = vmatpush3.bf16.msra.mxu1 %v5769_v56  ;;  %v7140_v56 = vunpack.i.h.bf16 %v11249_v48  ;;  %v5779_v0 = vpack.c.bf16 %v3882_v20, %v3881_v7  ;;  %v3866_v16 = vld [vmem:[%s12349_s5 + $0x558] sm:$0xff] }
 0x56d   :  { %5772 = vmatprep.subr.bf16.mxu1 %v5771_v26  ;;  %v3904_v26 = vld [vmem:[%s12349_s5 + $0x688] sm:$0xff]  ;;  %v3906_v34 = vld [vmem:[%s12349_s5 + $0x698] sm:$0xff] }
 0x56e   :  { %5750 = vmatpush3.bf16.msra.mxu0 %v5749_v13  ;;  %v3553_v13 = vsel %vm3549_vm8, %v7134_v40, %v7135_v32  ;;  %v5791_v40 = vpack.c.bf16 %v3904_v26, %v3903_v8  ;;  %v3427_v44 = vsel %vm3423_vm0, %v7139_v49, %v7140_v56  ;;  %v5783_v49 = vpack.c.bf16 %v3884_v21, %v3883_v14  ;;  %v3867_v32 = vld [vmem:[%s12349_s5 + $0x560] sm:$0xff]  ;;  %v3890_v8 = vld [vmem:[%s12349_s5 + $0x618] sm:$0xff]  ;;  %v3869_v14 = vld [vmem:[%s12349_s5 + $0x570] sm:$0xff] }
 0x56f   :  { %5752 = vmatprep.subr.bf16.mxu0 %v5751_v58  ;;  %v5757_v58 = vpack.c.bf16 %v3838_v5, %v3837_v38  ;;  %v3622_v53 = vsel %vm3448_vm10, %v3553_v13, %v7129_v9  ;;  %v3594_v9 = vsel %vm3593_vm7, %v7149_v31, %v7150_v6  ;;  %v3510_v48 = vsel %vm3448_vm10, %v3427_v44, %v7144_v18  ;;  %v3885_v18 = vld [vmem:[%s12349_s5 + $0x5f0] sm:$0xff]  ;;  %v3886_v38 = vld [vmem:[%s12349_s5 + $0x5f8] sm:$0xff]  ;;  %v3891_v44 = vld [vmem:[%s12349_s5 + $0x620] sm:$0xff] }
 0x570   :  { %5774 = vmatpush3.bf16.msra.mxu1 %v5773_v50  ;;  %v3887_v50 = vld [vmem:[%s12349_s5 + $0x600] sm:$0xff]  ;;  %v3637_v7 = vrot.slane %v3622_v53, 7  ;;  %v3642_v5 = vrot.slane %v3594_v9, 7  ;;  %v5795_v56 = vpack.c.bf16 %v3906_v34, %v3905_v59  ;;  %v3870_v21 = vld [vmem:[%s12349_s5 + $0x578] sm:$0xff]  ;;  %v7170_v9 = vunpack.i.h.bf16 %v11417_v42  ;;  %v3909_v34 = vld [vmem:[%s12349_s5 + $0x6b0] sm:$0xff] }
 0x571   :  { %5776 = vmatprep.subr.bf16.mxu1 %v5775_v63  ;;  %v5781_v63 = vpack.c.bf16 %v3866_v16, %v3865_v39  ;;  %v5793_v20 = vpack.c.bf16 %v3888_v47, %v3887_v50  ;;  %v3907_v39 = vld [vmem:[%s12349_s5 + $0x6a0] sm:$0xff]  ;;  %v3908_v16 = vld [vmem:[%s12349_s5 + $0x6a8] sm:$0xff]  ;;  %v5789_v59 = vpack.c.bf16 %v3870_v21, %v3869_v14  ;;  %v4010_v30 = vld [vmem:[%s12349_s5 + $0x9d8] sm:$0xff] }
 0x572   :  { %5754 = vmatpush3.bf16.msra.mxu0 %v5753_v33  ;;  %v3868_v33 = vld [vmem:[%s12349_s5 + $0x568] sm:$0xff]  ;;  %v3681_v26 = vsel %vm817_vm2, %v3510_v48, %v3637_v7  ;;  %v5799_v47 = vpack.c.bf16 %v3908_v16, %v3907_v39  ;;  %v3910_v48 = vld [vmem:[%s12349_s5 + $0x6b8] sm:$0xff]  ;;  %v3921_v39 = vld [vmem:[%s12349_s5 + $0x710] sm:$0xff] }
 0x573   :  { %5756 = vmatprep.subr.bf16.mxu0 %v5755_v45  ;;  %v3474_v45 = vsel %vm3473_vm14, %v7164_v61, %v7165_v29  ;;  %v3936_v50 = vld [vmem:[%s12349_s5 + $0x788] sm:$0xff]  ;;  %v3922_v16 = vld [vmem:[%s12349_s5 + $0x718] sm:$0xff]  ;;  %v3939_v14 = vld [vmem:[%s12349_s5 + $0x7a0] sm:$0xff] }
 0x574   :  { %5778 = vmatpush3.bf16.msra.mxu1 %v5777_v2  ;;  %v3889_v2 = vld [vmem:[%s12349_s5 + $0x610] sm:$0xff]  ;;  %v3686_v13 = vsel %vm817_vm2, %v3474_v45, %v3642_v5  ;;  %v3920_v7 = vld [vmem:[%s12349_s5 + $0x708] sm:$0xff]  ;;  %v3596_v45 = vsel %vm3593_vm7, %v11489_v25, %v7170_v9 }
 0x575   :  { %5780 = vmatprep.subr.bf16.mxu1 %v5779_v0  ;;  %v5785_v0 = vpack.c.bf16 %v3868_v33, %v3867_v32  ;;  %v5797_v53 = vpack.c.bf16 %v3890_v8, %v3889_v2  ;;  %v3919_v33 = vld [vmem:[%s12349_s5 + $0x700] sm:$0xff]  ;;  %v3893_v5 = vld [vmem:[%s12349_s5 + $0x630] sm:$0xff]  ;;  %v3940_v21 = vld [vmem:[%s12349_s5 + $0x7a8] sm:$0xff] }
 0x576   :  { %5758 = vmatpush3.bf16.msra.mxu0 %v5757_v58  ;;  %v5787_v58 = vpack.c.bf16 %v3886_v38, %v3885_v18  ;;  %v3450_v18 = vsel %vm3448_vm10, %v7145_v27, %v11415_v57  ;;  %v5803_v38 = vpack.c.bf16 %v3910_v48, %v3909_v34  ;;  %v5825_v3 = vpack.c.bf16 %v3920_v7, %v3919_v33  ;;  %v3911_v27 = vld [vmem:[%s12349_s5 + $0x6c0] sm:$0xff]  ;;  %v3912_v57 = vld [vmem:[%s12349_s5 + $0x6c8] sm:$0xff]  ;;  %v3941_v33 = vld [vmem:[%s12349_s5 + $0x7b0] sm:$0xff] }
 0x577   :  { %5792 = vmatprep.subr.bf16.mxu0 %v5791_v40  ;;  %v3935_v40 = vld [vmem:[%s12349_s5 + $0x780] sm:$0xff]  ;;  %v5831_v34 = vpack.c.bf16 %v3940_v21, %v3939_v14  ;;  %v3942_v7 = vld [vmem:[%s12349_s5 + $0x7b8] sm:$0xff]  ;;  %v3928_v21 = vld [vmem:[%s12349_s5 + $0x748] sm:$0xff] }
 0x578   :  { %5782 = vmatpush3.bf16.msra.mxu1 %v5781_v63  ;;  %v3892_v63 = vld [vmem:[%s12349_s5 + $0x628] sm:$0xff]  ;;  %v5823_v32 = vpack.c.bf16 %v3936_v50, %v3935_v40  ;;  %v5807_v40 = vpack.c.bf16 %v3912_v57, %v3911_v27  ;;  %v3895_v50 = vld [vmem:[%s12349_s5 + $0x640] sm:$0xff] }
 0x579   :  { %4395 = vmatmul.mubr.f32.vlgmr.msra.gmra.mrb[14].mxu0 %v3681_v26  ;;  %5784 = vmatprep.subr.bf16.mxu1 %v5783_v49  ;;  %v3573_v49 = vsel %vm3571_vm3, %v7130_v37, %v11382_v10  ;;  %v5801_v55 = vpack.c.bf16 %v3892_v63, %v3891_v44  ;;  %v3937_v37 = vld [vmem:[%s12349_s5 + $0x790] sm:$0xff]  ;;  %v3938_v10 = vld [vmem:[%s12349_s5 + $0x798] sm:$0xff]  ;;  %v3644_v26 = vrot.slane %v3596_v45, 7  ;;  %v5829_v44 = vpack.c.bf16 %v3922_v16, %v3921_v39  ;;  %v3923_v48 = vld [vmem:[%s12349_s5 + $0x720] sm:$0xff] }
 0x57a   :  { %5794 = vmatpush3.bf16.msra.mxu0 %v5793_v20  ;;  %4534 = vmatprep.mubr.f32.mxu0 %v3686_v13  ;;  %v7175_v20 = vunpack.i.h.bf16 %v11456_v43  ;;  %v3639_v2 = vrot.slane %v3573_v49, 7  ;;  %v3913_v63 = vld [vmem:[%s12349_s5 + $0x6d0] sm:$0xff]  ;;  %v3924_v49 = vld [vmem:[%s12349_s5 + $0x728] sm:$0xff]  ;;  %v3927_v14 = vld [vmem:[%s12349_s5 + $0x740] sm:$0xff] }
 0x57b   :  { %5796 = vmatprep.subr.bf16.mxu0 %v5795_v56  ;;  %v3894_v56 = vld [vmem:[%s12349_s5 + $0x638] sm:$0xff]  ;;  %v3944_v27 = vld [vmem:[%s12349_s5 + $0x7c8] sm:$0xff]  ;;  %v3917_v16 = vld [vmem:[%s12349_s5 + $0x6f0] sm:$0xff] }
 0x57c   :  { %5786 = vmatpush3.bf16.msra.mxu1 %v5785_v0  ;;  %v3476_v8 = vsel %vm3473_vm14, %v11528_v46, %v7175_v20  ;;  %v5827_v0 = vpack.c.bf16 %v3938_v10, %v3937_v37  ;;  %v3683_v13 = vsel %vm817_vm2, %v3450_v18, %v3639_v2  ;;  %v3898_v37 = vld [vmem:[%s12349_s5 + $0x658] sm:$0xff]  ;;  %v5833_v10 = vpack.c.bf16 %v3924_v49, %v3923_v48  ;;  %v3915_v18 = vld [vmem:[%s12349_s5 + $0x6e0] sm:$0xff] }
 0x57d   :  { %5788 = vmatprep.subr.bf16.mxu1 %v5787_v58  ;;  %v5805_v58 = vpack.c.bf16 %v3894_v56, %v3893_v5  ;;  %v5835_v5 = vpack.c.bf16 %v3942_v7, %v3941_v33  ;;  %v3925_v56 = vld [vmem:[%s12349_s5 + $0x730] sm:$0xff]  ;;  %v3926_v2 = vld [vmem:[%s12349_s5 + $0x738] sm:$0xff]  ;;  %v5841_v48 = vpack.c.bf16 %v3928_v21, %v3927_v14  ;;  %v3967_v49 = vld [vmem:[%s12349_s5 + $0x880] sm:$0xff] }
 0x57e   :  { %5798 = vmatpush3.bf16.msra.mxu0 %v5797_v53  ;;  %v3688_v53 = vsel %vm817_vm2, %v3476_v8, %v3644_v26  ;;  %v3899_v26 = vld [vmem:[%s12349_s5 + $0x660] sm:$0xff]  ;;  %v5837_v39 = vpack.c.bf16 %v3926_v2, %v3925_v56  ;;  %v3929_v7 = vld [vmem:[%s12349_s5 + $0x750] sm:$0xff]  ;;  %v3952_v56 = vld [vmem:[%s12349_s5 + $0x808] sm:$0xff] }
 0x57f   :  { %5800 = vmatprep.subr.bf16.mxu0 %v5799_v47  ;;  %v3896_v47 = vld [vmem:[%s12349_s5 + $0x648] sm:$0xff]  ;;  %v3953_v21 = vld [vmem:[%s12349_s5 + $0x810] sm:$0xff] }
 0x580   :  { %5790 = vmatpush3.bf16.msra.mxu1 %v5789_v59  ;;  %v3914_v59 = vld [vmem:[%s12349_s5 + $0x6d8] sm:$0xff] }
 0x581   :  { %5824 = vmatprep.subr.bf16.mxu1 %v5823_v32  ;;  %v5809_v32 = vpack.c.bf16 %v3896_v47, %v3895_v50  ;;  %v5811_v45 = vpack.c.bf16 %v3914_v59, %v3913_v63  ;;  %v3945_v50 = vld [vmem:[%s12349_s5 + $0x7d0] sm:$0xff]  ;;  %v3946_v47 = vld [vmem:[%s12349_s5 + $0x7d8] sm:$0xff] }
 0x582   :  { %5802 = vmatpush3.bf16.msra.mxu0 %v5801_v55  ;;  %v3897_v55 = vld [vmem:[%s12349_s5 + $0x650] sm:$0xff]  ;;  %v3902_v59 = vld [vmem:[%s12349_s5 + $0x678] sm:$0xff]  ;;  %v5843_v33 = vpack.c.bf16 %v3946_v47, %v3945_v50  ;;  %v3971_v50 = vld [vmem:[%s12349_s5 + $0x8a0] sm:$0xff] }
 0x583   :  { %4465 = vmatmul.mubr.f32.vlgmr.msra.gmra.mrb[18].mxu1 %v3683_v13  ;;  %5804 = vmatprep.subr.bf16.mxu0 %v5803_v38  ;;  %v3916_v38 = vld [vmem:[%s12349_s5 + $0x6e8] sm:$0xff]  ;;  %v5813_v8 = vpack.c.bf16 %v3898_v37, %v3897_v55  ;;  %v3918_v13 = vld [vmem:[%s12349_s5 + $0x6f8] sm:$0xff]  ;;  %v3901_v63 = vld [vmem:[%s12349_s5 + $0x670] sm:$0xff]  ;;  %v7169_v37 = vunpack.i.l.bf16 %v11417_v42 }
 0x584   :  { %5826 = vmatpush3.bf16.msra.mxu1 %v5825_v3  ;;  %4604 = vmatprep.mubr.f32.mxu1 %v3688_v53  ;;  %v3943_v3 = vld [vmem:[%s12349_s5 + $0x7c0] sm:$0xff]  ;;  %v5815_v57 = vpack.c.bf16 %v3916_v38, %v3915_v18  ;;  %v7155_v53 = vunpack.i.h.bf16 %v11315_v24  ;;  %v3948_v38 = vld [vmem:[%s12349_s5 + $0x7e8] sm:$0xff] }
 0x585   :  { %5828 = vmatprep.subr.bf16.mxu1 %v5827_v0  ;;  %v3900_v0 = vld [vmem:[%s12349_s5 + $0x668] sm:$0xff]  ;;  %v3947_v18 = vld [vmem:[%s12349_s5 + $0x7e0] sm:$0xff] }
 0x586   :  { %5806 = vmatpush3.bf16.msra.mxu0 %v5805_v58  ;;  %v5839_v58 = vpack.c.bf16 %v3944_v27, %v3943_v3  ;;  %v3575_v55 = vsel %vm3571_vm3, %v7154_v62, %v7155_v53  ;;  %v3951_v62 = vld [vmem:[%s12349_s5 + $0x800] sm:$0xff]  ;;  %v3969_v27 = vld [vmem:[%s12349_s5 + $0x890] sm:$0xff]  ;;  %v3972_v47 = vld [vmem:[%s12349_s5 + $0x8a8] sm:$0xff] }
 0x587   :  { %5808 = vmatprep.subr.bf16.mxu0 %v5807_v40  ;;  %v5817_v40 = vpack.c.bf16 %v3900_v0, %v3899_v26  ;;  %v3932_v26 = vld [vmem:[%s12349_s5 + $0x768] sm:$0xff] }
 0x588   :  { %5830 = vmatpush3.bf16.msra.mxu1 %v5829_v44  ;;  %v5819_v44 = vpack.c.bf16 %v3918_v13, %v3917_v16  ;;  %v5857_v16 = vpack.c.bf16 %v3952_v56, %v3951_v62  ;;  %v3950_v13 = vld [vmem:[%s12349_s5 + $0x7f8] sm:$0xff]  ;;  %v3984_v62 = vld [vmem:[%s12349_s5 + $0x908] sm:$0xff] }
 0x589   :  { %5832 = vmatprep.subr.bf16.mxu1 %v5831_v34  ;;  %v7160_v34 = vunpack.i.h.bf16 %v11348_v12 }
 0x58a   :  { %5810 = vmatpush3.bf16.msra.mxu0 %v5809_v32  ;;  %v3968_v32 = vld [vmem:[%s12349_s5 + $0x888] sm:$0xff] }
 0x58b   :  { %5812 = vmatprep.subr.bf16.mxu0 %v5811_v45  ;;  %v3930_v45 = vld [vmem:[%s12349_s5 + $0x758] sm:$0xff]  ;;  %v5855_v24 = vpack.c.bf16 %v3968_v32, %v3967_v49  ;;  %v3452_v2 = vsel %vm3448_vm10, %v7159_v1, %v7160_v34  ;;  %v5847_v1 = vpack.c.bf16 %v3948_v38, %v3947_v18  ;;  %v3999_v49 = vld [vmem:[%s12349_s5 + $0x980] sm:$0xff]  ;;  %v4000_v32 = vld [vmem:[%s12349_s5 + $0x988] sm:$0xff]  ;;  %v3595_v38 = vsel %vm3593_vm7, %v7150_v6, %v11489_v25 }
 0x58c   :  { %5834 = vmatpush3.bf16.msra.mxu1 %v5833_v10  ;;  %v5821_v10 = vpack.c.bf16 %v3902_v59, %v3901_v63  ;;  %v5845_v3 = vpack.c.bf16 %v3930_v45, %v3929_v7  ;;  %v3511_v12 = vsel %vm3473_vm14, %v3452_v2, %v7164_v61  ;;  %v3949_v61 = vld [vmem:[%s12349_s5 + $0x7f0] sm:$0xff]  ;;  %v3934_v34 = vld [vmem:[%s12349_s5 + $0x778] sm:$0xff]  ;;  %v3955_v7 = vld [vmem:[%s12349_s5 + $0x820] sm:$0xff]  ;;  %v3475_v2 = vsel %vm3473_vm14, %v7165_v29, %v11528_v46 }
 0x58d   :  { %5836 = vmatprep.subr.bf16.mxu1 %v5835_v5  ;;  %v3623_v5 = vsel %vm3473_vm14, %v3575_v55, %v7149_v31  ;;  %v7174_v31 = vunpack.i.l.bf16 %v11456_v43  ;;  %v5851_v63 = vpack.c.bf16 %v3950_v13, %v3949_v61  ;;  %v3933_v59 = vld [vmem:[%s12349_s5 + $0x770] sm:$0xff]  ;;  %v3956_v45 = vld [vmem:[%s12349_s5 + $0x828] sm:$0xff]  ;;  %v3974_v18 = vld [vmem:[%s12349_s5 + $0x8b8] sm:$0xff]  ;;  %v3643_v22 = vrot.slane %v3595_v38, 7 }
 0x58e   :  { %5814 = vmatpush3.bf16.msra.mxu0 %v5813_v8  ;;  %v3624_v8 = vsel %vm3499_vm13, %v7169_v37, %v11454_v41  ;;  %v3931_v41 = vld [vmem:[%s12349_s5 + $0x760] sm:$0xff]  ;;  %v5853_v55 = vpack.c.bf16 %v3934_v34, %v3933_v59  ;;  %v5865_v56 = vpack.c.bf16 %v3956_v45, %v3955_v7  ;;  %v4001_v25 = vld [vmem:[%s12349_s5 + $0x990] sm:$0xff]  ;;  %v4002_v6 = vld [vmem:[%s12349_s5 + $0x998] sm:$0xff] }
 0x58f   :  { %5816 = vmatprep.subr.bf16.mxu0 %v5815_v57  ;;  %v3970_v57 = vld [vmem:[%s12349_s5 + $0x898] sm:$0xff]  ;;  %v3512_v0 = vsel %vm3499_vm13, %v7174_v31, %v11487_v17  ;;  %v3975_v46 = vld [vmem:[%s12349_s5 + $0x8c0] sm:$0xff]  ;;  %v3976_v29 = vld [vmem:[%s12349_s5 + $0x8c8] sm:$0xff]  ;;  %v3687_v4 = vsel %vm817_vm2, %v3475_v2, %v3643_v22  ;;  %v3477_v42 = vsel %vm3473_vm14, %v7175_v20, %v7174_v31 }
 0x590   :  { %5838 = vmatpush3.bf16.msra.mxu1 %v5837_v39  ;;  %v3641_v39 = vrot.slane %v3623_v5, 7  ;;  %v5859_v14 = vpack.c.bf16 %v3970_v57, %v3969_v27  ;;  %v3954_v17 = vld [vmem:[%s12349_s5 + $0x818] sm:$0xff]  ;;  %v5887_v5 = vpack.c.bf16 %v4000_v32, %v3999_v49  ;;  %v3648_v27 = vrot.slane %v3617_v51, 7  ;;  %v3977_v13 = vld [vmem:[%s12349_s5 + $0x8d0] sm:$0xff]  ;;  %v3979_v34 = vld [vmem:[%s12349_s5 + $0x8e0] sm:$0xff] }
 0x591   :  { %5840 = vmatprep.subr.bf16.mxu1 %v5839_v58  ;;  %v3646_v58 = vrot.slane %v3624_v8, 7  ;;  %v5891_v57 = vpack.c.bf16 %v4002_v6, %v4001_v25  ;;  %v3989_v32 = vld [vmem:[%s12349_s5 + $0x930] sm:$0xff]  ;;  %v4007_v45 = vld [vmem:[%s12349_s5 + $0x9c0] sm:$0xff]  ;;  %v3964_v38 = vld [vmem:[%s12349_s5 + $0x868] sm:$0xff] }
 0x592   :  { %5818 = vmatpush3.bf16.msra.mxu0 %v5817_v40  ;;  %v3685_v53 = vsel %vm817_vm2, %v3511_v12, %v3641_v39  ;;  %v5849_v40 = vpack.c.bf16 %v3932_v26, %v3931_v41  ;;  %v3985_v12 = vld [vmem:[%s12349_s5 + $0x910] sm:$0xff]  ;;  %v4004_v41 = vld [vmem:[%s12349_s5 + $0x9a8] sm:$0xff]  ;;  %v3692_v26 = vsel %vm817_vm2, %v3501_v35, %v3648_v27  ;;  %v3959_v39 = vld [vmem:[%s12349_s5 + $0x840] sm:$0xff] }
 0x593   :  { %5820 = vmatprep.subr.bf16.mxu0 %v5819_v44  ;;  %v3690_v44 = vsel %vm817_vm2, %v3512_v0, %v3646_v58  ;;  %v5871_v0 = vpack.c.bf16 %v3976_v29, %v3975_v46  ;;  %v5893_v61 = vpack.c.bf16 %v3986_v52, %v3985_v12  ;;  %v3978_v58 = vld [vmem:[%s12349_s5 + $0x8d8] sm:$0xff]  ;;  %v3991_v25 = vld [vmem:[%s12349_s5 + $0x940] sm:$0xff]  ;;  %v3992_v6 = vld [vmem:[%s12349_s5 + $0x948] sm:$0xff] }
 0x594   :  { %5842 = vmatpush3.bf16.msra.mxu1 %v5841_v48  ;;  %v5861_v48 = vpack.c.bf16 %v3954_v17, %v3953_v21  ;;  %v3987_v21 = vld [vmem:[%s12349_s5 + $0x920] sm:$0xff]  ;;  %v3988_v17 = vld [vmem:[%s12349_s5 + $0x928] sm:$0xff]  ;;  %v3965_v22 = vld [vmem:[%s12349_s5 + $0x870] sm:$0xff]  ;;  %v5905_v35 = vpack.c.bf16 %v3992_v6, %v3991_v25 }
 0x595   :  { %5844 = vmatprep.subr.bf16.mxu1 %v5843_v33  ;;  %v5863_v33 = vpack.c.bf16 %v3972_v47, %v3971_v50  ;;  %v4006_v50 = vld [vmem:[%s12349_s5 + $0x9b8] sm:$0xff]  ;;  %v5875_v47 = vpack.c.bf16 %v3978_v58, %v3977_v13  ;;  %v5897_v59 = vpack.c.bf16 %v3988_v17, %v3987_v21  ;;  %v3993_v29 = vld [vmem:[%s12349_s5 + $0x950] sm:$0xff]  ;;  %v4011_v12 = vld [vmem:[%s12349_s5 + $0x9e0] sm:$0xff] }
 0x596   :  { %5822 = vmatpush3.bf16.msra.mxu0 %v5821_v10  ;;  %v3973_v10 = vld [vmem:[%s12349_s5 + $0x8b0] sm:$0xff]  ;;  %v3994_v27 = vld [vmem:[%s12349_s5 + $0x958] sm:$0xff]  ;;  %v4012_v52 = vld [vmem:[%s12349_s5 + $0x9e8] sm:$0xff] }
 0x597   :  { %5856 = vmatprep.subr.bf16.mxu0 %v5855_v24  ;;  %v3983_v24 = vld [vmem:[%s12349_s5 + $0x900] sm:$0xff]  ;;  %v5867_v8 = vpack.c.bf16 %v3974_v18, %v3973_v10  ;;  %v4013_v43 = vld [vmem:[%s12349_s5 + $0x9f0] sm:$0xff]  ;;  %v4014_v20 = vld [vmem:[%s12349_s5 + $0x9f8] sm:$0xff] }
 0x598   :  { %5846 = vmatpush3.bf16.msra.mxu1 %v5845_v3  ;;  %v5889_v3 = vpack.c.bf16 %v3984_v62, %v3983_v24  ;;  %v3963_v18 = vld [vmem:[%s12349_s5 + $0x860] sm:$0xff]  ;;  %v3981_v24 = vld [vmem:[%s12349_s5 + $0x8f0] sm:$0xff]  ;;  %v3982_v62 = vld [vmem:[%s12349_s5 + $0x8f8] sm:$0xff]  ;;  %v5915_v17 = vpack.c.bf16 %v4014_v20, %v4013_v43 }
 0x599   :  { %4535 = vmatmul.mubr.f32.vlgmr.msra.gmra.mrb[16].mxu0 %v3685_v53  ;;  %5848 = vmatprep.subr.bf16.mxu1 %v5847_v1  ;;  %v4003_v1 = vld [vmem:[%s12349_s5 + $0x9a0] sm:$0xff]  ;;  %v5881_v2 = vpack.c.bf16 %v3964_v38, %v3963_v18  ;;  %v5883_v54 = vpack.c.bf16 %v3982_v62, %v3981_v24  ;;  %v4017_v13 = vld [vmem:[%s12349_s5 + $0xa10] sm:$0xff]  ;;  %v4028_v18 = vld [vmem:[%s12349_s5 + $0xa68] sm:$0xff] }
 0x59a   :  { %5858 = vmatpush3.bf16.msra.mxu0 %v5857_v16  ;;  %4674 = vmatprep.mubr.f32.mxu0 %v3690_v44  ;;  %v3960_v16 = vld [vmem:[%s12349_s5 + $0x848] sm:$0xff]  ;;  %v3961_v44 = vld [vmem:[%s12349_s5 + $0x850] sm:$0xff]  ;;  %v4030_v24 = vld [vmem:[%s12349_s5 + $0xa78] sm:$0xff] }
 0x59b   :  { %5860 = vmatprep.subr.bf16.mxu0 %v5859_v14  ;;  %v5895_v14 = vpack.c.bf16 %v4004_v41, %v4003_v1  ;;  %v5873_v53 = vpack.c.bf16 %v3960_v16, %v3959_v39  ;;  %v4015_v1 = vld [vmem:[%s12349_s5 + $0xa00] sm:$0xff]  ;;  %v4016_v41 = vld [vmem:[%s12349_s5 + $0xa08] sm:$0xff]  ;;  %v4033_v6 = vld [vmem:[%s12349_s5 + $0xa90] sm:$0xff] }
 0x59c   :  { %5850 = vmatpush3.bf16.msra.mxu1 %v5849_v40  ;;  %v4005_v40 = vld [vmem:[%s12349_s5 + $0x9b0] sm:$0xff]  ;;  %v3996_v39 = vld [vmem:[%s12349_s5 + $0x968] sm:$0xff]  ;;  %v4828_v20 = vld [vmem:[%s12351_s7 + $0x38] sm:$0xff] }
 0x59d   :  { %5852 = vmatprep.subr.bf16.mxu1 %v5851_v63  ;;  %v3962_v63 = vld [vmem:[%s12349_s5 + $0x858] sm:$0xff]  ;;  %v5899_v49 = vpack.c.bf16 %v4006_v50, %v4005_v40  ;;  %v4827_v43 = vld [vmem:[%s12351_s7 + $0x30] sm:$0xff] }
 0x59e   :  { %5862 = vmatpush3.bf16.msra.mxu0 %v5861_v48  ;;  %v3980_v48 = vld [vmem:[%s12349_s5 + $0x8e8] sm:$0xff]  ;;  %v5877_v7 = vpack.c.bf16 %v3962_v63, %v3961_v44  ;;  %v3998_v40 = vld [vmem:[%s12349_s5 + $0x978] sm:$0xff] }
 0x59f   :  { %5864 = vmatprep.subr.bf16.mxu0 %v5863_v33  ;;  %v3990_v33 = vld [vmem:[%s12349_s5 + $0x938] sm:$0xff]  ;;  %v5879_v10 = vpack.c.bf16 %v3980_v48, %v3979_v34  ;;  %v4020_v44 = vld [vmem:[%s12349_s5 + $0xa28] sm:$0xff]  ;;  %v4021_v34 = vld [vmem:[%s12349_s5 + $0xa30] sm:$0xff] }
 0x5a0   :  { %5854 = vmatpush3.bf16.msra.mxu1 %v5853_v55  ;;  %v4008_v55 = vld [vmem:[%s12349_s5 + $0x9c8] sm:$0xff]  ;;  %v4022_v48 = vld [vmem:[%s12349_s5 + $0xa38] sm:$0xff] }
 0x5a1   :  { %5888 = vmatprep.subr.bf16.mxu1 %v5887_v5  ;;  %v5901_v5 = vpack.c.bf16 %v3990_v33, %v3989_v32  ;;  %v5903_v51 = vpack.c.bf16 %v4008_v55, %v4007_v45  ;;  %v4023_v32 = vld [vmem:[%s12349_s5 + $0xa40] sm:$0xff]  ;;  %v4024_v33 = vld [vmem:[%s12349_s5 + $0xa48] sm:$0xff]  ;;  %v4026_v45 = vld [vmem:[%s12349_s5 + $0xa58] sm:$0xff] }
 0x5a2   :  { %5866 = vmatpush3.bf16.msra.mxu0 %v5865_v56  ;;  %v3614_v56 = vpop.permute.xlu1 %3613 }
 0x5a3   :  { %4605 = vmatmul.mubr.f32.vlgmr.msra.gmra.mrb[20].mxu1 %v3687_v4  ;;  %5868 = vmatprep.subr.bf16.mxu0 %v5867_v8  ;;  %v4009_v8 = vld [vmem:[%s12349_s5 + $0x9d0] sm:$0xff] }
 0x5a4   :  { %5890 = vmatpush3.bf16.msra.mxu1 %v5889_v3  ;;  %4744 = vmatprep.mubr.f32.mxu1 %v3692_v26  ;;  %v3966_v3 = vld [vmem:[%s12349_s5 + $0x878] sm:$0xff]  ;;  %v5907_v46 = vpack.c.bf16 %v4010_v30, %v4009_v8  ;;  %v3619_v26 = vsel %vm3615_vm12, %v11566_v60, %v3614_v56  ;;  %v4031_v56 = vld [vmem:[%s12349_s5 + $0xa80] sm:$0xff] }
 0x5a5   :  { %5892 = vmatprep.subr.bf16.mxu1 %v5891_v57  ;;  %v5885_v57 = vpack.c.bf16 %v3966_v3, %v3965_v22  ;;  %v3650_v31 = vrot.slane %v3619_v26, 7  ;;  %v4035_v30 = vld [vmem:[%s12349_s5 + $0xaa0] sm:$0xff]  ;;  %v4037_v3 = vld [vmem:[%s12349_s5 + $0xab0] sm:$0xff] }
 0x5a6   :  { %5870 = vmatpush3.bf16.msra.mxu0 %v5869_v19  ;;  %v3498_v4 = vpop.permute.xlu1 %3497  ;;  %v3597_v19 = vsel %vm3593_vm7, %v7170_v9, %v7169_v37  ;;  %v5911_v9 = vpack.c.bf16 %v4012_v52, %v4011_v12  ;;  %v3995_v37 = vld [vmem:[%s12349_s5 + $0x960] sm:$0xff] }
 0x5a7   :  { %5872 = vmatprep.subr.bf16.mxu0 %v5871_v0  ;;  %v5909_v0 = vpack.c.bf16 %v3994_v27, %v3993_v29  ;;  %v3503_v60 = vsel %vm3499_vm13, %v11602_v28, %v3498_v4  ;;  %v3645_v16 = vrot.slane %v3597_v19, 7  ;;  %v4018_v28 = vld [vmem:[%s12349_s5 + $0xa18] sm:$0xff]  ;;  %v4039_v29 = vld [vmem:[%s12349_s5 + $0xac0] sm:$0xff] }
 0x5a8   :  { %5894 = vmatpush3.bf16.msra.mxu1 %v5893_v61  ;;  %v5920_v61 = vpack.c.bf16 %v4016_v41, %v4015_v1  ;;  %v3694_v21 = vsel %vm817_vm2, %v3503_v60, %v3650_v31  ;;  %v5923_v50 = vpack.c.bf16 %v4018_v28, %v4017_v13  ;;  %v4981_v52 = vld [vmem:[%s12350_s6] ss:$0 sm:$0xff]  ;;  %v5965_v31 = vpack.c.bf16 %v4828_v20, %v4827_v43  ;;  %v4830_v28 = vld [vmem:[%s12351_s7 + $0x48] sm:$0xff] }
 0x5a9   :  { %5896 = vmatprep.subr.bf16.mxu1 %v5895_v14  ;;  %v3689_v58 = vsel %vm817_vm2, %v3477_v42, %v3645_v16  ;;  %v5913_v14 = vpack.c.bf16 %v3996_v39, %v3995_v37  ;;  %v4821_v26 = vld [vmem:[%s12351_s7] sm:$0xff]  ;;  %v4826_v16 = vld [vmem:[%s12351_s7 + $0x28] sm:$0xff]  ;;  %vm13038_vm2 = vcmask 818176  }
 0x5aa   :  { %5874 = vmatpush3.bf16.msra.mxu0 %v5873_v53  ;;  %v3997_v53 = vld [vmem:[%s12349_s5 + $0x970] sm:$0xff]  ;;  %v4825_v60 = vld [vmem:[%s12351_s7 + $0x20] sm:$0xff] }
 0x5ab   :  { %5876 = vmatprep.subr.bf16.mxu0 %v5875_v47  ;;  %v4019_v47 = vld [vmem:[%s12349_s5 + $0xa20] sm:$0xff]  ;;  %v5917_v63 = vpack.c.bf16 %v3998_v40, %v3997_v53 }
 0x5ac   :  { %5898 = vmatpush3.bf16.msra.mxu1 %v5897_v59  ;;  %v5926_v59 = vpack.c.bf16 %v4020_v44, %v4019_v47  ;;  %v4829_v13 = vld [vmem:[%s12351_s7 + $0x40] sm:$0xff] }
 0x5ad   :  { %5900 = vmatprep.subr.bf16.mxu1 %v5899_v49  ;;  %v5929_v49 = vpack.c.bf16 %v4022_v48, %v4021_v34 }
 0x5ae   :  { %5878 = vmatpush3.bf16.msra.mxu0 %v5877_v7  ;;  %v5932_v7 = vpack.c.bf16 %v4024_v33, %v4023_v32 }
 0x5af   :  { %5880 = vmatprep.subr.bf16.mxu0 %v5879_v10  ;;  %v4027_v10 = vld [vmem:[%s12349_s5 + $0xa60] sm:$0xff] }
 0x5b0   :  { %5902 = vmatpush3.bf16.msra.mxu1 %v5901_v5  ;;  %v5938_v38 = vpack.c.bf16 %v4028_v18, %v4027_v10  ;;  %v4029_v5 = vld [vmem:[%s12349_s5 + $0xa70] sm:$0xff] }
 0x5b1   :  { %5904 = vmatprep.subr.bf16.mxu1 %v5903_v51  ;;  %v5941_v62 = vpack.c.bf16 %v4030_v24, %v4029_v5  ;;  %v4032_v51 = vld [vmem:[%s12349_s5 + $0xa88] sm:$0xff] }
 0x5b2   :  { %5882 = vmatpush3.bf16.msra.mxu0 %v5881_v2  ;;  %v5944_v25 = vpack.c.bf16 %v4032_v51, %v4031_v56  ;;  %v4034_v2 = vld [vmem:[%s12349_s5 + $0xa98] sm:$0xff] }
 0x5b3   :  { %5884 = vmatprep.subr.bf16.mxu0 %v5883_v54  ;;  %v5947_v8 = vpack.c.bf16 %v4034_v2, %v4033_v6  ;;  %v4036_v54 = vld [vmem:[%s12349_s5 + $0xaa8] sm:$0xff] }
 0x5b4   :  { %5906 = vmatpush3.bf16.msra.mxu1 %v5905_v35  ;;  %v5950_v22 = vpack.c.bf16 %v4036_v54, %v4035_v30  ;;  %v4038_v35 = vld [vmem:[%s12349_s5 + $0xab8] sm:$0xff] }
 0x5b5   :  { %5908 = vmatprep.subr.bf16.mxu1 %v5907_v46  ;;  %v5953_v46 = vpack.c.bf16 %v4038_v35, %v4037_v3 }
 0x5b6   :  { %5886 = vmatpush3.bf16.msra.mxu0 %v5885_v57 }
 0x5b7   :  { %5919 = vmatprep.subr.bf16.mxu0 %v7235_v23 }
 0x5b8   :  { %5910 = vmatpush3.bf16.msra.mxu1 %v5909_v0  ;;  %v4822_v0 = vld [vmem:[%s12351_s7 + $0x8] sm:$0xff] }
 0x5b9   :  { %4675 = vmatmul.mubr.f32.vlgmr.msra.gmra.mrb[18].mxu0 %v3689_v58  ;;  %5912 = vmatprep.subr.bf16.mxu1 %v5911_v9  ;;  %v5956_v42 = vpack.c.bf16 %v4822_v0, %v4821_v26  ;;  %v4824_v9 = vld [vmem:[%s12351_s7 + $0x18] sm:$0xff]  ;;  %v5968_v58 = vpack.c.bf16 %v4830_v28, %v4829_v13 }
 0x5ba   :  { %5921 = vmatpush1.bf16.msra.mxu0 %v5920_v61  ;;  %4982 = vmatprep.mubr.msk.f32.mxu0 %vm13037_vm15, %v3694_v21  ;;  %v5962_v61 = vpack.c.bf16 %v4826_v16, %v4825_v60 }
 0x5bb   :  { %5922 = vmatprep.subr.bf16.mxu0 %v7235_v23 }
 0x5bc   :  { %5914 = vmatpush3.bf16.msra.mxu1 %v5913_v14 }
 0x5bd   :  { %5916 = vmatprep.subr.bf16.mxu1 %v5915_v17 }
 0x5be   :  { %5924 = vmatpush1.bf16.msra.mxu0 %v5923_v50 }
 0x5bf   :  { %5925 = vmatprep.subr.bf16.mxu0 %v7235_v23 }
 0x5c0   :  { %5918 = vmatpush3.bf16.msra.mxu1 %v5917_v63  ;;  %v4831_v63 = vld [vmem:[%s12351_s7 + $0x50] sm:$0xff] }
 0x5c1   :  { %5955 = vmatprep.subr.bf16.mxu1 %v7235_v23 }
 0x5c2   :  { %5927 = vmatpush1.bf16.msra.mxu0 %v5926_v59  ;;  %v4832_v59 = vld [vmem:[%s12351_s7 + $0x58] sm:$0xff] }
 0x5c3   :  { %4745 = vmatmul.mubr.f32.vlgmr.msra.gmra.mrb[22].mxu1 %v11611_v15  ;;  %5928 = vmatprep.subr.bf16.mxu0 %v7235_v23  ;;  %v4025_v15 = vld [vmem:[%s12349_s5 + $0xa50] sm:$0xff]  ;;  %v5971_v34 = vpack.c.bf16 %v4832_v59, %v4831_v63 }
 0x5c4   :  { %5410 = vmatprep.mubr.msk.f32.mxu1 %vm7236_vm1, %v12982_v36  ;;  %v5935_v55 = vpack.c.bf16 %v4026_v45, %v4025_v15  ;;  %5957 = vmatpush3.bf16.msra.mxu1 %v5956_v42 }
 0x5c5   :  { %5958 = vmatprep.subr.bf16.mxu1 %v7235_v23 }
 0x5c6   :  { %5930 = vmatpush1.bf16.msra.mxu0 %v5929_v49 }
 0x5c7   :  { %5931 = vmatprep.subr.bf16.mxu0 %v7235_v23 }
 0x5ca   :  { %5933 = vmatpush1.bf16.msra.mxu0 %v5932_v7 }
 0x5cb   :  { %5934 = vmatprep.subr.bf16.mxu0 %v7235_v23 }
 0x5ce   :  { %5936 = vmatpush1.bf16.msra.mxu0 %v5935_v55 }
 0x5cf   :  { %5937 = vmatprep.subr.bf16.mxu0 %v7235_v23 }
 0x5d2   :  { %5939 = vmatpush1.bf16.msra.mxu0 %v5938_v38 }
 0x5d3   :  { %5940 = vmatprep.subr.bf16.mxu0 %v7235_v23 }
 0x5d6   :  { %5942 = vmatpush1.bf16.msra.mxu0 %v5941_v62 }
 0x5d7   :  { %5943 = vmatprep.subr.bf16.mxu0 %v7235_v23 }
 0x5da   :  { %5945 = vmatpush1.bf16.msra.mxu0 %v5944_v25 }
 0x5db   :  { %5946 = vmatprep.subr.bf16.mxu0 %v7235_v23 }
 0x5de   :  { %5948 = vmatpush1.bf16.msra.mxu0 %v5947_v8 }
 0x5df   :  { %5949 = vmatprep.subr.bf16.mxu0 %v7235_v23 }
 0x5e2   :  { %5951 = vmatpush1.bf16.msra.mxu0 %v5950_v22 }
 0x5e3   :  { %5952 = vmatprep.subr.bf16.mxu0 %v7235_v23 }
 0x5e6   :  { %5954 = vmatpush1.bf16.msra.mxu0 %v5953_v46 }
 0x5e7   :  { %4798 = vmatprep.subr.mxu0 %v12982_v36 }
 0x5ea   :  { %4799 = vmatpush1.msra.mxu0 %v4039_v29 }
 0x5eb   :  { %4815 = vmatmul.mubr.f32.vlgmr.msra.gmra.mrb[20].mxu0 %v11630_v11  ;;  %v4823_v11 = vld [vmem:[%s12351_s7 + $0x10] sm:$0xff] }
 0x5ec   :  { %v5959_v39 = vpack.c.bf16 %v4824_v9, %v4823_v11 }
 0x5ee   :  { %5960 = vmatpush3.bf16.msra.mxu1 %v5959_v39 }
 0x5ef   :  { %5961 = vmatprep.subr.bf16.mxu1 %v7235_v23 }
 0x5f2   :  { %5963 = vmatpush3.bf16.msra.mxu1 %v5962_v61 }
 0x5f3   :  { %5964 = vmatprep.subr.bf16.mxu1 %v7235_v23 }
 0x5f6   :  { %5966 = vmatpush3.bf16.msra.mxu1 %v5965_v31 }
 0x5f7   :  { %5967 = vmatprep.subr.bf16.mxu1 %v7235_v23 }
 0x5fa   :  { %5969 = vmatpush3.bf16.msra.mxu1 %v5968_v58 }
 0x5fb   :  { %5970 = vmatprep.subr.bf16.mxu1 %v7235_v23  ;;  %v4833_v23 = vld [vmem:[%s12351_s7 + $0x60] sm:$0xf] }
 0x5fe   :  { %5972 = vmatpush3.bf16.msra.mxu1 %v5971_v34 }
 0x5ff   :  { %5408 = vmatprep.subr.mxu1 %v12982_v36 }
 0x602   :  { %5409 = vmatpush3.msk.msra.mxu1 %vm856_vm9, %v4833_v23  ;;  %vm4917_vm9 = vcmask 74752  }
 0x60c   :  { %v5029_v27 = vpop.f32.mrb[10].mxu0 }
 0x60d   :  { %v5030_v57 = vpop.f32.mrb[11].mxu0 }
 0x60e   :  { %v5031_v12 = vadd.f32 %v5030_v57, %v5029_v27  ;;  %v4983_v27 = vld [vmem:[%s12352_s8] ss:$0 sm:$0xff]  ;;  %s7246_s8 = smov [#allocation2]  }
 0x60f   :  { %s4938_s12 = sshll.u32 %s7246_s8, 4  ;;  %s4939_s12 = int_to_ptr.vmem [resolvable:$true] %s4938_s12 }
 0x610   :  { %v4117_v1 = vadd.f32 %v5031_v12, %v4981_v52  ;;  %s7191_s3 = scalar_lea.vmem %s4939_s12, 32  ;;  %p7196_p1 = scmp.lt.s32.totalorder %s4939_s12, %s4939_s12 }
 0x611   :  { %p7192_p0 = scmp.ne.s32.totalorder %s4939_s12, %s7191_s3  ;;  %p7197_p2 = scmp.lt.s32.totalorder %s7191_s3, %s7191_s3 }
 0x613   :  { %p7198_p3 = por %p7197_p2, %p7196_p1 }
 0x615   :  { %p7199_p4 = pnand %p7198_p3, %p7192_p0 }
 0x616   :  { %v5064_v4 = vpop.f32.mrb[14].mxu1 }
 0x617   :  { %v5065_v19 = vpop.f32.mrb[15].mxu1 }
 0x618   :  { %v5066_v41 = vadd.f32 %v5065_v19, %v5064_v4 }
 0x61a   :  { %v4187_v37 = vadd.f32 %v5066_v41, %v4117_v1 }
 0x62c   :  { %v5099_v14 = vpop.f32.mrb[12].mxu0 }
 0x62d   :  { %v5100_v21 = vpop.f32.mrb[13].mxu0 }
 0x62e   :  { %v5101_v17 = vadd.f32 %v5100_v21, %v5099_v14 }
 0x630   :  { %v4257_v53 = vadd.f32 %v5101_v17, %v4187_v37 }
 0x636   :  { %v5134_v40 = vpop.f32.mrb[16].mxu1 }
 0x637   :  { %v5135_v50 = vpop.f32.mrb[17].mxu1 }
 0x638   :  { %v5136_v47 = vadd.f32 %v5135_v50, %v5134_v40 }
 0x63a   :  { %v4327_v44 = vadd.f32 %v5136_v47, %v4257_v53 }
 0x64c   :  { %v5169_v48 = vpop.f32.mrb[14].mxu0 }
 0x64d   :  { %v5170_v49 = vpop.f32.mrb[15].mxu0 }
 0x64e   :  { %v5171_v32 = vadd.f32 %v5170_v49, %v5169_v48 }
 0x650   :  { %v4397_v33 = vadd.f32 %v5171_v32, %v4327_v44 }
 0x656   :  { %v5204_v7 = vpop.f32.mrb[18].mxu1 }
 0x657   :  { %v5205_v15 = vpop.f32.mrb[19].mxu1 }
 0x658   :  { %v5206_v45 = vadd.f32 %v5205_v15, %v5204_v7 }
 0x65a   :  { %v4467_v55 = vadd.f32 %v5206_v45, %v4397_v33 }
 0x66c   :  { %v5239_v10 = vpop.f32.mrb[16].mxu0 }
 0x66d   :  { %v5240_v18 = vpop.f32.mrb[17].mxu0 }
 0x66e   :  { %v5241_v38 = vadd.f32 %v5240_v18, %v5239_v10 }
 0x670   :  { %v4537_v5 = vadd.f32 %v5241_v38, %v4467_v55 }
 0x676   :  { %v5274_v24 = vpop.f32.mrb[20].mxu1 }
 0x677   :  { %v5275_v36 = vpop.f32.mrb[21].mxu1 }
 0x678   :  { %v5276_v62 = vadd.f32 %v5275_v36, %v5274_v24 }
 0x67a   :  { %v4607_v56 = vadd.f32 %v5276_v62, %v4537_v5 }
 0x68c   :  { %v5309_v51 = vpop.f32.mrb[18].mxu0 }
 0x68d   :  { %v5310_v25 = vpop.f32.mrb[19].mxu0 }
 0x68e   :  { %v5311_v6 = vadd.f32 %v5310_v25, %v5309_v51 }
 0x690   :  { %v4677_v2 = vadd.f32 %v5311_v6, %v4607_v56 }
 0x696   :  { %v5344_v8 = vpop.f32.mrb[22].mxu1 }
 0x697   :  { %v5345_v30 = vpop.f32.mrb[23].mxu1 }
 0x698   :  { %v5346_v54 = vadd.f32 %v5345_v30, %v5344_v8 }
 0x69a   :  { %v4747_v22 = vadd.f32 %v5346_v54, %v4677_v2 }
 0x6be   :  { %v4816_v3 = vpop.f32.mrb[20].mxu0 }
 0x6bf   :  { %v4817_v35 = vadd.f32 %v4816_v3, %v4747_v22  ;;  %v4818_v46 = vpop.f32.mrb[21].mxu0 }
 0x6c1   :  { %v4820_v29 = vmax.f32 %v4817_v35, 0.0 }
 0x6c3   :  { %5411 = vmatmul.mubr.msk.f32.vlgmr.msra.gmra.mrb[24].mxu1 %vm13038_vm2, %v4820_v29 }
 0x796   :  { %v4913_v57 = vpop.f32.mrb[24].mxu1 }
 0x797   :  { %v4914_v12 = vadd.f32 %v4983_v27, %v4913_v57  ;;  %v5412_v52 = vpop.f32.mrb[25].mxu1 }
 0x799   :  { %v4918_v4 = vsel %vm4917_vm9, %v4914_v12, -inf }
 0x79a   :  { %4919 = vmax.xlane.f32.xlu0 %v4918_v4 }
 0x827   :  { %v4920_v19 = vpop.xlane.xlu0 %4919 }
 0x828   :  { %v4921_v1 = vsub.f32 %v4914_v12, %v4920_v19 }
 0x82a   :  { %v4922_v41 = vmul.f32 1.442695, %v4921_v1 }
 0x82c   :  { %7187 = vpow2.f32 %v4922_v41 }
 0x836   :  { %v7188_v26 = vpop.eup %7187 }
 0x837   :  { %v4924_v0 = vsel %vm4917_vm9, %v7188_v26, 0.0 }
 0x838   :  { %4925 = vadd.xlane.f32.xlu1 %v4924_v0 }
 0x8c5   :  { %v4926_v11 = vpop.xlane.xlu1 %4925 }
 0x8c6   :  { %7189 = vlog2.f32 %v4926_v11 }
 0x8d0   :  { %v7190_v42 = vpop.eup %7189 }
 0x8d1   :  { %v4928_v9 = vmul.f32 0.6931472, %v7190_v42 }
 0x8d3   :  { %v4929_v37 = vadd.f32 %v4928_v9, %v4920_v19 }
 0x8d5   :  { %v4930_v39 = vsub.f32 %v4914_v12, %v4929_v37 }
 0x8d7   :  { %4931 = vst.msk [vmem:[#allocation2] sm:$0x3] %vm4917_vm9, %v4930_v39 }
 0x8d8   :  { %7202 = shalt.err (!%p7199_p4)
}
 0x8d9   :  { %s7203_s5 = scalar_lea.hbm %s12353_s9, 32 }
 0x8da   :  { %p7204_p5 = scmp.ne.s32.totalorder %s12353_s9, %s7203_s5  ;;  %p7207_p6 = scmp.lt.u32.totalorder %s7203_s5, %s12353_s9 }
 0x8dc   :  { %p7209_p7 = pnand %p7207_p6, %p7204_p5 }
 0x8de   :  { %7212 = shalt.err (!%p7209_p7)
}
 0x8df   :  { %4941 = dma.vmem_to_hbm [thread:$0]  %s4939_s12, 32, %s12353_s9, [#allocation3]  }
 0x8e0   :  { %7213 = dma.done.wait [#allocation3], 32  }
 0x8e1   :  { %7214 = vsyncadd [#allocation3], 4294967264 }
 0x8e2   :  { %4945 = vsyncpa [#allocation3], 1 }

</bundles_post_ra>
